<compile_context>
chip_gen: v6e
topology: v6e:2x2x1
jax: 0.10.0
libtpu: 0.0.40
codegen_flags: <defaults>
</compile_context>

<pallas_src>
import functools

import jax
import jax.numpy as jnp
import numpy as np
from jax import lax
from jax.experimental import pallas as pl
from jax.experimental.pallas import tpu as pltpu


# --------------------------------------------------------------------------- #
# Static helpers: tap enumeration / boundary masks for the dilated 3x3 conv
# --------------------------------------------------------------------------- #
def _noncenter_taps(d):
    """[(weight_col_index, oy, ox)] for the 8 non-center taps of a 3x3 kernel."""
    taps = []
    for ky in range(3):
        for kx in range(3):
            if ky == 1 and kx == 1:
                continue
            taps.append((ky * 3 + kx, (ky - 1) * d, (kx - 1) * d))
    return taps


def _make_tap_masks(H, W, d):
    """(8, H*W) f32 validity masks (1 inside the image, 0 where the shifted read
    would fall outside), rows in _noncenter_taps() order (static, built on host)."""
    y = np.arange(H)[:, None]
    x = np.arange(W)[None, :]
    rows = []
    for _, oy, ox in _noncenter_taps(d):
        valid = (y + oy >= 0) & (y + oy < H) & (x + ox >= 0) & (x + ox < W)
        rows.append(valid.reshape(-1))
    return jnp.asarray(np.stack(rows), dtype=jnp.float32)


# --------------------------------------------------------------------------- #
# Fused HDCB kernel (one grid step == one batch element, all data in VMEM)
# --------------------------------------------------------------------------- #
def _hdcb_kernel(x_ref,
                 wcd1_ref, a1_ref, m1_ref, pw1_ref, b1_ref,
                 wcd2_ref, a2_ref, m2_ref, pw2_ref, b2_ref,
                 wcd3_ref, a3_ref, m3_ref, pw3_ref, b3_ref,
                 o_ref, cat_ref, *, H, W, C, dil):
    HW = H * W

    def cdc_prelu(v, w_ref, a_ref, m_ref, d):
        # v: (C, HW).  Depthwise dilated 3x3 central-difference conv with the
        # center tap pre-folded (w[1,1] - sum(w)), fused with PReLU.
        acc = v * w_ref[:, 4:5]                                   # folded center tap
        for r, (t, oy, ox) in enumerate(_noncenter_taps(d)):
            off = oy * W + ox
            shifted = pltpu.roll(v, shift=(-off) % HW, axis=1)    # XLU lane rotate
            acc = acc + w_ref[:, t:t + 1] * (shifted * m_ref[r:r + 1, :])
        alpha = a_ref[...]                                        # (C, 1)
        return jnp.where(acc >= 0, acc, acc * alpha)              # PReLU

    def concat_1x1_lrelu(k, w_ref, b_ref):
        # Conv1x1 over the channel concat == one MXU matmul against the first
        # k*C rows of the shared cat scratch:  (C, k*C) @ (k*C, HW).
        y = jnp.dot(w_ref[...], cat_ref[0:k * C, :],
                    preferred_element_type=jnp.float32,
                    precision=lax.Precision.HIGHEST)
        y = y + b_ref[...]                                        # (C, 1) bias
        return jnp.where(y >= 0, y, 0.01 * y)                     # LeakyReLU(0.01)

    x = x_ref[0]                                                  # (C, HW) lane-dense
    cat_ref[0:C, :] = x
    d1 = cdc_prelu(x, wcd1_ref, a1_ref, m1_ref, dil[0])
    cat_ref[C:2 * C, :] = d1
    t1 = concat_1x1_lrelu(2, pw1_ref, b1_ref)
    d2 = cdc_prelu(t1, wcd2_ref, a2_ref, m2_ref, dil[1])
    cat_ref[2 * C:3 * C, :] = d2
    t2 = concat_1x1_lrelu(3, pw2_ref, b2_ref)
    d3 = cdc_prelu(t2, wcd3_ref, a3_ref, m3_ref, dil[2])
    cat_ref[3 * C:4 * C, :] = d3
    o_ref[0] = concat_1x1_lrelu(4, pw3_ref, b3_ref).astype(o_ref.dtype)


# --------------------------------------------------------------------------- #
# Wrapper: parameter prep (center-tap fold, reshapes) + pallas_call
# --------------------------------------------------------------------------- #
def hdcb_forward(x_nchw, params, dilation_rates):
    """x_nchw: (N, C, H, W) float32 (PyTorch layout).  Returns (N, C, H, W)."""
    N, C, H, W = x_nchw.shape
    HW = H * W
    x_flat = x_nchw.reshape(N, C, HW)                 # free reshape, stays NCHW

    def fold_center(w):                               # (C,3,3) -> (C,9), CDC folded
        wf = w.reshape(C, 9)
        return wf.at[:, 4].add(-jnp.sum(wf, axis=1))

    def const_spec(shape):                            # full-array block, fixed index
        nd = len(shape)
        return pl.BlockSpec(shape, lambda b: (0,) * nd)

    flat_args = []
    in_specs = [pl.BlockSpec((1, C, HW), lambda b: (b, 0, 0))]

    def add_const(arr):
        flat_args.append(arr)
        in_specs.append(const_spec(arr.shape))

    for i, d in enumerate(dilation_rates, start=1):
        add_const(fold_center(params[f"cdc{i}_w"]))           # (C, 9)
        add_const(params[f"prelu{i}"].reshape(C, 1))          # (C, 1)
        add_const(_make_tap_masks(H, W, int(d)))              # (8, HW)
        add_const(params[f"pw{i}_w"])                         # (C, (i+1)*C)
        add_const(params[f"pw{i}_b"].reshape(C, 1))           # (C, 1)

    kernel = functools.partial(_hdcb_kernel, H=H, W=W, C=C,
                               dil=tuple(int(d) for d in dilation_rates))
    out_flat = pl.pallas_call(
        kernel,
        out_shape=jax.ShapeDtypeStruct((N, C, HW), x_nchw.dtype),
        grid=(N,),
        in_specs=in_specs,
        out_specs=pl.BlockSpec((1, C, HW), lambda b: (b, 0, 0)),
        scratch_shapes=[pltpu.VMEM((4 * C, HW), jnp.float32)],   # shared concat buffer
        compiler_params=pltpu.CompilerParams(dimension_semantics=("parallel",)),
    )(x_flat, *flat_args)
    return out_flat.reshape(N, C, H, W)


# --------------------------------------------------------------------------- #
# Deterministic parameters (torch-style layouts) + pure-JAX reference
# --------------------------------------------------------------------------- #
def init_params(key, C):
    ks = jax.random.split(key, 9)

    def dw(k):       # depthwise weight, (C, 3, 3)  (== torch (C,1,3,3) squeezed)
        return 0.1 * jax.random.normal(k, (C, 3, 3), jnp.float32)

    def pw(k, cin):  # 1x1 conv weight, (Cout=C, Cin)
        return 0.1 * jax.random.normal(k, (C, cin), jnp.float32)

    prelu = jnp.full((C,), 0.25, jnp.float32)   # nn.PReLU() default init (0.25)
    return {
        "cdc1_w": dw(ks[0]), "prelu1": prelu,
        "pw1_w": pw(ks[1], 2 * C), "pw1_b": 0.05 * jax.random.normal(ks[2], (C,), jnp.float32),
        "cdc2_w": dw(ks[3]), "prelu2": prelu,
        "pw2_w": pw(ks[4], 3 * C), "pw2_b": 0.05 * jax.random.normal(ks[5], (C,), jnp.float32),
        "cdc3_w": dw(ks[6]), "prelu3": prelu,
        "pw3_w": pw(ks[7], 4 * C), "pw3_b": 0.05 * jax.random.normal(ks[8], (C,), jnp.float32),
    }


def _ref_cdc(x, w, d):
    # Conv2d_cd: depthwise dilated 3x3 conv minus sum(w)*x  (NCHW, groups=C).
    C = x.shape[1]
    conv = lax.conv_general_dilated(
        x, w[:, None, :, :], window_strides=(1, 1),
        padding=[(d, d), (d, d)], rhs_dilation=(d, d),
        dimension_numbers=("NCHW", "OIHW", "NCHW"),
        feature_group_count=C, precision=lax.Precision.HIGHEST)
    return conv - x * jnp.sum(w, axis=(1, 2))[None, :, None, None]


def _ref_prelu(x, a):
    return jnp.where(x >= 0, x, a[None, :, None, None] * x)


def _ref_conv1x1_lrelu(xs, w, b):
    cat = jnp.concatenate(xs, axis=1)
    y = jnp.einsum("oc,nchw->nohw", w, cat,
                   precision=lax.Precision.HIGHEST) + b[None, :, None, None]
    return jnp.where(y >= 0, y, 0.01 * y)


def hdcb_reference(x, params, dil):
    d1 = _ref_prelu(_ref_cdc(x, params["cdc1_w"], dil[0]), params["prelu1"])
    t1 = _ref_conv1x1_lrelu([x, d1], params["pw1_w"], params["pw1_b"])
    d2 = _ref_prelu(_ref_cdc(t1, params["cdc2_w"], dil[1]), params["prelu2"])
    t2 = _ref_conv1x1_lrelu([x, d1, d2], params["pw2_w"], params["pw2_b"])
    d3 = _ref_prelu(_ref_cdc(t2, params["cdc3_w"], dil[2]), params["prelu3"])
    return _ref_conv1x1_lrelu([x, d1, d2, d3], params["pw3_w"], params["pw3_b"])


# --------------------------------------------------------------------------- #
if __name__ == "__main__":
    N, C, H, W = 2, 32, 16, 16            # embedding_dim = 32 (module default)
    dilation_rates = (1, 2, 3)

    key = jax.random.PRNGKey(0)
    kx, kp = jax.random.split(key)
    params = init_params(kp, C)
    x = jax.random.normal(kx, (N, C, H, W), jnp.float32)   # NCHW, as in PyTorch

    fwd = jax.jit(lambda xx, pp: hdcb_forward(xx, pp, dilation_rates))
    out = fwd(x, params)
    jax.block_until_ready(out)

    ref = hdcb_reference(x, params, dilation_rates)
    np.testing.assert_allclose(np.asarray(out), np.asarray(ref),
                               atol=2e-5, rtol=2e-5)
    print("KERNEL_OK")
</pallas_src>

<mosaic_0001>
module attributes {stable_mosaic.version = 11 : i64} {
  func.func @_hdcb_kernel(%arg0: i32, %arg1: memref<1x32x256xf32, #tpu.memory_space<vmem>>, %arg2: memref<32x9xf32, #tpu.memory_space<vmem>>, %arg3: memref<32x1xf32, #tpu.memory_space<vmem>>, %arg4: memref<8x256xf32, #tpu.memory_space<vmem>>, %arg5: memref<32x64xf32, #tpu.memory_space<vmem>>, %arg6: memref<32x1xf32, #tpu.memory_space<vmem>>, %arg7: memref<32x9xf32, #tpu.memory_space<vmem>>, %arg8: memref<32x1xf32, #tpu.memory_space<vmem>>, %arg9: memref<8x256xf32, #tpu.memory_space<vmem>>, %arg10: memref<32x96xf32, #tpu.memory_space<vmem>>, %arg11: memref<32x1xf32, #tpu.memory_space<vmem>>, %arg12: memref<32x9xf32, #tpu.memory_space<vmem>>, %arg13: memref<32x1xf32, #tpu.memory_space<vmem>>, %arg14: memref<8x256xf32, #tpu.memory_space<vmem>>, %arg15: memref<32x128xf32, #tpu.memory_space<vmem>>, %arg16: memref<32x1xf32, #tpu.memory_space<vmem>>, %arg17: memref<1x32x256xf32, #tpu.memory_space<vmem>>, %arg18: memref<128x256xf32, #tpu.memory_space<vmem>>) attributes {dimension_semantics = [#tpu.dimension_semantics<parallel>], iteration_bounds = array<i64: 2>, scalar_prefetch = 0 : i64, scratch_operands = 1 : i64, tpu.core_type = #tpu.core_type<tc>, window_params = [{transform_indices = @transform_0, window_bounds = array<i64: 1, 32, 256>}, {pipeline_mode = #tpu.pipeline_mode<synchronous>, transform_indices = @transform_1, window_bounds = array<i64: 32, 9>}, {pipeline_mode = #tpu.pipeline_mode<synchronous>, transform_indices = @transform_2, window_bounds = array<i64: 32, 1>}, {pipeline_mode = #tpu.pipeline_mode<synchronous>, transform_indices = @transform_3, window_bounds = array<i64: 8, 256>}, {pipeline_mode = #tpu.pipeline_mode<synchronous>, transform_indices = @transform_4, window_bounds = array<i64: 32, 64>}, {pipeline_mode = #tpu.pipeline_mode<synchronous>, transform_indices = @transform_5, window_bounds = array<i64: 32, 1>}, {pipeline_mode = #tpu.pipeline_mode<synchronous>, transform_indices = @transform_6, window_bounds = array<i64: 32, 9>}, {pipeline_mode = #tpu.pipeline_mode<synchronous>, transform_indices = @transform_7, window_bounds = array<i64: 32, 1>}, {pipeline_mode = #tpu.pipeline_mode<synchronous>, transform_indices = @transform_8, window_bounds = array<i64: 8, 256>}, {pipeline_mode = #tpu.pipeline_mode<synchronous>, transform_indices = @transform_9, window_bounds = array<i64: 32, 96>}, {pipeline_mode = #tpu.pipeline_mode<synchronous>, transform_indices = @transform_10, window_bounds = array<i64: 32, 1>}, {pipeline_mode = #tpu.pipeline_mode<synchronous>, transform_indices = @transform_11, window_bounds = array<i64: 32, 9>}, {pipeline_mode = #tpu.pipeline_mode<synchronous>, transform_indices = @transform_12, window_bounds = array<i64: 32, 1>}, {pipeline_mode = #tpu.pipeline_mode<synchronous>, transform_indices = @transform_13, window_bounds = array<i64: 8, 256>}, {pipeline_mode = #tpu.pipeline_mode<synchronous>, transform_indices = @transform_14, window_bounds = array<i64: 32, 128>}, {pipeline_mode = #tpu.pipeline_mode<synchronous>, transform_indices = @transform_15, window_bounds = array<i64: 32, 1>}, {transform_indices = @transform_16, window_bounds = array<i64: 1, 32, 256>}]} {
    %c0 = arith.constant 0 : index
    %c0_0 = arith.constant 0 : index
    %c0_1 = arith.constant 0 : index
    %0 = vector.load %arg1[%c0, %c0_0, %c0_1] : memref<1x32x256xf32, #tpu.memory_space<vmem>>, vector<1x32x256xf32>
    %1 = vector.shape_cast %0 : vector<1x32x256xf32> to vector<32x256xf32>
    %c0_2 = arith.constant 0 : index
    %c0_3 = arith.constant 0 : index
    %2 = vector.load %arg18[%c0_2, %c0_3] : memref<128x256xf32, #tpu.memory_space<vmem>>, vector<32x256xf32>
    tpu.vector_store %arg18[%c0_2, %c0_3], %1 {strides = array<i32>} : memref<128x256xf32, #tpu.memory_space<vmem>>, vector<32x256xf32>,
    %c0_4 = arith.constant 0 : index
    %c4 = arith.constant 4 : index
    %3 = vector.load %arg2[%c0_4, %c4] : memref<32x9xf32, #tpu.memory_space<vmem>>, vector<32x1xf32>
    %4 = vector.broadcast %3 : vector<32x1xf32> to vector<32x256xf32>
    %5 = arith.mulf %1, %4 : vector<32x256xf32>
    %c17_i32 = arith.constant 17 : i32
    %6 = tpu.dynamic_rotate %1 by %c17_i32 dim 1 : vector<32x256xf32>, i32 -> vector<32x256xf32>
    %c0_5 = arith.constant 0 : index
    %c0_6 = arith.constant 0 : index
    %7 = vector.load %arg2[%c0_5, %c0_6] : memref<32x9xf32, #tpu.memory_space<vmem>>, vector<32x1xf32>
    %c0_7 = arith.constant 0 : index
    %c0_8 = arith.constant 0 : index
    %8 = vector.load %arg4[%c0_7, %c0_8] : memref<8x256xf32, #tpu.memory_space<vmem>>, vector<1x256xf32>
    %9 = vector.broadcast %8 : vector<1x256xf32> to vector<32x256xf32>
    %10 = arith.mulf %6, %9 : vector<32x256xf32>
    %11 = vector.broadcast %7 : vector<32x1xf32> to vector<32x256xf32>
    %12 = arith.mulf %11, %10 : vector<32x256xf32>
    %13 = arith.addf %5, %12 : vector<32x256xf32>
    %c16_i32 = arith.constant 16 : i32
    %14 = tpu.dynamic_rotate %1 by %c16_i32 dim 1 : vector<32x256xf32>, i32 -> vector<32x256xf32>
    %c0_9 = arith.constant 0 : index
    %c1 = arith.constant 1 : index
    %15 = vector.load %arg2[%c0_9, %c1] : memref<32x9xf32, #tpu.memory_space<vmem>>, vector<32x1xf32>
    %c1_10 = arith.constant 1 : index
    %c0_11 = arith.constant 0 : index
    %16 = vector.load %arg4[%c1_10, %c0_11] : memref<8x256xf32, #tpu.memory_space<vmem>>, vector<1x256xf32>
    %17 = vector.broadcast %16 : vector<1x256xf32> to vector<32x256xf32>
    %18 = arith.mulf %14, %17 : vector<32x256xf32>
    %19 = vector.broadcast %15 : vector<32x1xf32> to vector<32x256xf32>
    %20 = arith.mulf %19, %18 : vector<32x256xf32>
    %21 = arith.addf %13, %20 : vector<32x256xf32>
    %c15_i32 = arith.constant 15 : i32
    %22 = tpu.dynamic_rotate %1 by %c15_i32 dim 1 : vector<32x256xf32>, i32 -> vector<32x256xf32>
    %c0_12 = arith.constant 0 : index
    %c2 = arith.constant 2 : index
    %23 = vector.load %arg2[%c0_12, %c2] : memref<32x9xf32, #tpu.memory_space<vmem>>, vector<32x1xf32>
    %c2_13 = arith.constant 2 : index
    %c0_14 = arith.constant 0 : index
    %24 = vector.load %arg4[%c2_13, %c0_14] : memref<8x256xf32, #tpu.memory_space<vmem>>, vector<1x256xf32>
    %25 = vector.broadcast %24 : vector<1x256xf32> to vector<32x256xf32>
    %26 = arith.mulf %22, %25 : vector<32x256xf32>
    %27 = vector.broadcast %23 : vector<32x1xf32> to vector<32x256xf32>
    %28 = arith.mulf %27, %26 : vector<32x256xf32>
    %29 = arith.addf %21, %28 : vector<32x256xf32>
    %c1_i32 = arith.constant 1 : i32
    %30 = tpu.dynamic_rotate %1 by %c1_i32 dim 1 : vector<32x256xf32>, i32 -> vector<32x256xf32>
    %c0_15 = arith.constant 0 : index
    %c3 = arith.constant 3 : index
    %31 = vector.load %arg2[%c0_15, %c3] : memref<32x9xf32, #tpu.memory_space<vmem>>, vector<32x1xf32>
    %c3_16 = arith.constant 3 : index
    %c0_17 = arith.constant 0 : index
    %32 = vector.load %arg4[%c3_16, %c0_17] : memref<8x256xf32, #tpu.memory_space<vmem>>, vector<1x256xf32>
    %33 = vector.broadcast %32 : vector<1x256xf32> to vector<32x256xf32>
    %34 = arith.mulf %30, %33 : vector<32x256xf32>
    %35 = vector.broadcast %31 : vector<32x1xf32> to vector<32x256xf32>
    %36 = arith.mulf %35, %34 : vector<32x256xf32>
    %37 = arith.addf %29, %36 : vector<32x256xf32>
    %c255_i32 = arith.constant 255 : i32
    %38 = tpu.dynamic_rotate %1 by %c255_i32 dim 1 : vector<32x256xf32>, i32 -> vector<32x256xf32>
    %c0_18 = arith.constant 0 : index
    %c5 = arith.constant 5 : index
    %39 = vector.load %arg2[%c0_18, %c5] : memref<32x9xf32, #tpu.memory_space<vmem>>, vector<32x1xf32>
    %c4_19 = arith.constant 4 : index
    %c0_20 = arith.constant 0 : index
    %40 = vector.load %arg4[%c4_19, %c0_20] : memref<8x256xf32, #tpu.memory_space<vmem>>, vector<1x256xf32>
    %41 = vector.broadcast %40 : vector<1x256xf32> to vector<32x256xf32>
    %42 = arith.mulf %38, %41 : vector<32x256xf32>
    %43 = vector.broadcast %39 : vector<32x1xf32> to vector<32x256xf32>
    %44 = arith.mulf %43, %42 : vector<32x256xf32>
    %45 = arith.addf %37, %44 : vector<32x256xf32>
    %c241_i32 = arith.constant 241 : i32
    %46 = tpu.dynamic_rotate %1 by %c241_i32 dim 1 : vector<32x256xf32>, i32 -> vector<32x256xf32>
    %c0_21 = arith.constant 0 : index
    %c6 = arith.constant 6 : index
    %47 = vector.load %arg2[%c0_21, %c6] : memref<32x9xf32, #tpu.memory_space<vmem>>, vector<32x1xf32>
    %c5_22 = arith.constant 5 : index
    %c0_23 = arith.constant 0 : index
    %48 = vector.load %arg4[%c5_22, %c0_23] : memref<8x256xf32, #tpu.memory_space<vmem>>, vector<1x256xf32>
    %49 = vector.broadcast %48 : vector<1x256xf32> to vector<32x256xf32>
    %50 = arith.mulf %46, %49 : vector<32x256xf32>
    %51 = vector.broadcast %47 : vector<32x1xf32> to vector<32x256xf32>
    %52 = arith.mulf %51, %50 : vector<32x256xf32>
    %53 = arith.addf %45, %52 : vector<32x256xf32>
    %c240_i32 = arith.constant 240 : i32
    %54 = tpu.dynamic_rotate %1 by %c240_i32 dim 1 : vector<32x256xf32>, i32 -> vector<32x256xf32>
    %c0_24 = arith.constant 0 : index
    %c7 = arith.constant 7 : index
    %55 = vector.load %arg2[%c0_24, %c7] : memref<32x9xf32, #tpu.memory_space<vmem>>, vector<32x1xf32>
    %c6_25 = arith.constant 6 : index
    %c0_26 = arith.constant 0 : index
    %56 = vector.load %arg4[%c6_25, %c0_26] : memref<8x256xf32, #tpu.memory_space<vmem>>, vector<1x256xf32>
    %57 = vector.broadcast %56 : vector<1x256xf32> to vector<32x256xf32>
    %58 = arith.mulf %54, %57 : vector<32x256xf32>
    %59 = vector.broadcast %55 : vector<32x1xf32> to vector<32x256xf32>
    %60 = arith.mulf %59, %58 : vector<32x256xf32>
    %61 = arith.addf %53, %60 : vector<32x256xf32>
    %c239_i32 = arith.constant 239 : i32
    %62 = tpu.dynamic_rotate %1 by %c239_i32 dim 1 : vector<32x256xf32>, i32 -> vector<32x256xf32>
    %c0_27 = arith.constant 0 : index
    %c8 = arith.constant 8 : index
    %63 = vector.load %arg2[%c0_27, %c8] : memref<32x9xf32, #tpu.memory_space<vmem>>, vector<32x1xf32>
    %c7_28 = arith.constant 7 : index
    %c0_29 = arith.constant 0 : index
    %64 = vector.load %arg4[%c7_28, %c0_29] : memref<8x256xf32, #tpu.memory_space<vmem>>, vector<1x256xf32>
    %65 = vector.broadcast %64 : vector<1x256xf32> to vector<32x256xf32>
    %66 = arith.mulf %62, %65 : vector<32x256xf32>
    %67 = vector.broadcast %63 : vector<32x1xf32> to vector<32x256xf32>
    %68 = arith.mulf %67, %66 : vector<32x256xf32>
    %69 = arith.addf %61, %68 : vector<32x256xf32>
    %c0_30 = arith.constant 0 : index
    %c0_31 = arith.constant 0 : index
    %70 = vector.load %arg3[%c0_30, %c0_31] : memref<32x1xf32, #tpu.memory_space<vmem>>, vector<32x1xf32>
    %cst = arith.constant 0.000000e+00 : f32
    %71 = vector.broadcast %cst : f32 to vector<32x256xf32>
    %72 = arith.cmpf oge, %69, %71 : vector<32x256xf32>
    %73 = vector.broadcast %70 : vector<32x1xf32> to vector<32x256xf32>
    %74 = arith.mulf %69, %73 : vector<32x256xf32>
    %75 = arith.select %72, %69, %74 : vector<32x256xi1>, vector<32x256xf32>
    %c32 = arith.constant 32 : index
    %c0_32 = arith.constant 0 : index
    %76 = vector.load %arg18[%c32, %c0_32] : memref<128x256xf32, #tpu.memory_space<vmem>>, vector<32x256xf32>
    tpu.vector_store %arg18[%c32, %c0_32], %75 {strides = array<i32>} : memref<128x256xf32, #tpu.memory_space<vmem>>, vector<32x256xf32>,
    %c0_33 = arith.constant 0 : index
    %c0_34 = arith.constant 0 : index
    %77 = vector.load %arg5[%c0_33, %c0_34] : memref<32x64xf32, #tpu.memory_space<vmem>>, vector<32x64xf32>
    %c0_35 = arith.constant 0 : index
    %c0_36 = arith.constant 0 : index
    %78 = vector.load %arg18[%c0_35, %c0_36] : memref<128x256xf32, #tpu.memory_space<vmem>>, vector<64x256xf32>
    %cst_37 = arith.constant dense<0.000000e+00> : vector<32x256xf32>
    %79 = tpu.matmul %77, %78, %cst_37 {dimension_numbers = #tpu.dot_dimension_numbers<[1], [0], [0], [1], [0, 0, 1, 1], [], []>, precision = #tpu.contract_precision<fp32>} : vector<32x64xf32>, vector<64x256xf32>, vector<32x256xf32> -> vector<32x256xf32>
    %c0_38 = arith.constant 0 : index
    %c0_39 = arith.constant 0 : index
    %80 = vector.load %arg6[%c0_38, %c0_39] : memref<32x1xf32, #tpu.memory_space<vmem>>, vector<32x1xf32>
    %81 = vector.broadcast %80 : vector<32x1xf32> to vector<32x256xf32>
    %82 = arith.addf %79, %81 : vector<32x256xf32>
    %cst_40 = arith.constant 0.000000e+00 : f32
    %83 = vector.broadcast %cst_40 : f32 to vector<32x256xf32>
    %84 = arith.cmpf oge, %82, %83 : vector<32x256xf32>
    %cst_41 = arith.constant 0.00999999977 : f32
    %85 = vector.broadcast %cst_41 : f32 to vector<32x256xf32>
    %86 = arith.mulf %85, %82 : vector<32x256xf32>
    %87 = arith.select %84, %82, %86 : vector<32x256xi1>, vector<32x256xf32>
    %c0_42 = arith.constant 0 : index
    %c4_43 = arith.constant 4 : index
    %88 = vector.load %arg7[%c0_42, %c4_43] : memref<32x9xf32, #tpu.memory_space<vmem>>, vector<32x1xf32>
    %89 = vector.broadcast %88 : vector<32x1xf32> to vector<32x256xf32>
    %90 = arith.mulf %87, %89 : vector<32x256xf32>
    %c34_i32 = arith.constant 34 : i32
    %91 = tpu.dynamic_rotate %87 by %c34_i32 dim 1 : vector<32x256xf32>, i32 -> vector<32x256xf32>
    %c0_44 = arith.constant 0 : index
    %c0_45 = arith.constant 0 : index
    %92 = vector.load %arg7[%c0_44, %c0_45] : memref<32x9xf32, #tpu.memory_space<vmem>>, vector<32x1xf32>
    %c0_46 = arith.constant 0 : index
    %c0_47 = arith.constant 0 : index
    %93 = vector.load %arg9[%c0_46, %c0_47] : memref<8x256xf32, #tpu.memory_space<vmem>>, vector<1x256xf32>
    %94 = vector.broadcast %93 : vector<1x256xf32> to vector<32x256xf32>
    %95 = arith.mulf %91, %94 : vector<32x256xf32>
    %96 = vector.broadcast %92 : vector<32x1xf32> to vector<32x256xf32>
    %97 = arith.mulf %96, %95 : vector<32x256xf32>
    %98 = arith.addf %90, %97 : vector<32x256xf32>
    %c32_i32 = arith.constant 32 : i32
    %99 = tpu.dynamic_rotate %87 by %c32_i32 dim 1 : vector<32x256xf32>, i32 -> vector<32x256xf32>
    %c0_48 = arith.constant 0 : index
    %c1_49 = arith.constant 1 : index
    %100 = vector.load %arg7[%c0_48, %c1_49] : memref<32x9xf32, #tpu.memory_space<vmem>>, vector<32x1xf32>
    %c1_50 = arith.constant 1 : index
    %c0_51 = arith.constant 0 : index
    %101 = vector.load %arg9[%c1_50, %c0_51] : memref<8x256xf32, #tpu.memory_space<vmem>>, vector<1x256xf32>
    %102 = vector.broadcast %101 : vector<1x256xf32> to vector<32x256xf32>
    %103 = arith.mulf %99, %102 : vector<32x256xf32>
    %104 = vector.broadcast %100 : vector<32x1xf32> to vector<32x256xf32>
    %105 = arith.mulf %104, %103 : vector<32x256xf32>
    %106 = arith.addf %98, %105 : vector<32x256xf32>
    %c30_i32 = arith.constant 30 : i32
    %107 = tpu.dynamic_rotate %87 by %c30_i32 dim 1 : vector<32x256xf32>, i32 -> vector<32x256xf32>
    %c0_52 = arith.constant 0 : index
    %c2_53 = arith.constant 2 : index
    %108 = vector.load %arg7[%c0_52, %c2_53] : memref<32x9xf32, #tpu.memory_space<vmem>>, vector<32x1xf32>
    %c2_54 = arith.constant 2 : index
    %c0_55 = arith.constant 0 : index
    %109 = vector.load %arg9[%c2_54, %c0_55] : memref<8x256xf32, #tpu.memory_space<vmem>>, vector<1x256xf32>
    %110 = vector.broadcast %109 : vector<1x256xf32> to vector<32x256xf32>
    %111 = arith.mulf %107, %110 : vector<32x256xf32>
    %112 = vector.broadcast %108 : vector<32x1xf32> to vector<32x256xf32>
    %113 = arith.mulf %112, %111 : vector<32x256xf32>
    %114 = arith.addf %106, %113 : vector<32x256xf32>
    %c2_i32 = arith.constant 2 : i32
    %115 = tpu.dynamic_rotate %87 by %c2_i32 dim 1 : vector<32x256xf32>, i32 -> vector<32x256xf32>
    %c0_56 = arith.constant 0 : index
    %c3_57 = arith.constant 3 : index
    %116 = vector.load %arg7[%c0_56, %c3_57] : memref<32x9xf32, #tpu.memory_space<vmem>>, vector<32x1xf32>
    %c3_58 = arith.constant 3 : index
    %c0_59 = arith.constant 0 : index
    %117 = vector.load %arg9[%c3_58, %c0_59] : memref<8x256xf32, #tpu.memory_space<vmem>>, vector<1x256xf32>
    %118 = vector.broadcast %117 : vector<1x256xf32> to vector<32x256xf32>
    %119 = arith.mulf %115, %118 : vector<32x256xf32>
    %120 = vector.broadcast %116 : vector<32x1xf32> to vector<32x256xf32>
    %121 = arith.mulf %120, %119 : vector<32x256xf32>
    %122 = arith.addf %114, %121 : vector<32x256xf32>
    %c254_i32 = arith.constant 254 : i32
    %123 = tpu.dynamic_rotate %87 by %c254_i32 dim 1 : vector<32x256xf32>, i32 -> vector<32x256xf32>
    %c0_60 = arith.constant 0 : index
    %c5_61 = arith.constant 5 : index
    %124 = vector.load %arg7[%c0_60, %c5_61] : memref<32x9xf32, #tpu.memory_space<vmem>>, vector<32x1xf32>
    %c4_62 = arith.constant 4 : index
    %c0_63 = arith.constant 0 : index
    %125 = vector.load %arg9[%c4_62, %c0_63] : memref<8x256xf32, #tpu.memory_space<vmem>>, vector<1x256xf32>
    %126 = vector.broadcast %125 : vector<1x256xf32> to vector<32x256xf32>
    %127 = arith.mulf %123, %126 : vector<32x256xf32>
    %128 = vector.broadcast %124 : vector<32x1xf32> to vector<32x256xf32>
    %129 = arith.mulf %128, %127 : vector<32x256xf32>
    %130 = arith.addf %122, %129 : vector<32x256xf32>
    %c226_i32 = arith.constant 226 : i32
    %131 = tpu.dynamic_rotate %87 by %c226_i32 dim 1 : vector<32x256xf32>, i32 -> vector<32x256xf32>
    %c0_64 = arith.constant 0 : index
    %c6_65 = arith.constant 6 : index
    %132 = vector.load %arg7[%c0_64, %c6_65] : memref<32x9xf32, #tpu.memory_space<vmem>>, vector<32x1xf32>
    %c5_66 = arith.constant 5 : index
    %c0_67 = arith.constant 0 : index
    %133 = vector.load %arg9[%c5_66, %c0_67] : memref<8x256xf32, #tpu.memory_space<vmem>>, vector<1x256xf32>
    %134 = vector.broadcast %133 : vector<1x256xf32> to vector<32x256xf32>
    %135 = arith.mulf %131, %134 : vector<32x256xf32>
    %136 = vector.broadcast %132 : vector<32x1xf32> to vector<32x256xf32>
    %137 = arith.mulf %136, %135 : vector<32x256xf32>
    %138 = arith.addf %130, %137 : vector<32x256xf32>
    %c224_i32 = arith.constant 224 : i32
    %139 = tpu.dynamic_rotate %87 by %c224_i32 dim 1 : vector<32x256xf32>, i32 -> vector<32x256xf32>
    %c0_68 = arith.constant 0 : index
    %c7_69 = arith.constant 7 : index
    %140 = vector.load %arg7[%c0_68, %c7_69] : memref<32x9xf32, #tpu.memory_space<vmem>>, vector<32x1xf32>
    %c6_70 = arith.constant 6 : index
    %c0_71 = arith.constant 0 : index
    %141 = vector.load %arg9[%c6_70, %c0_71] : memref<8x256xf32, #tpu.memory_space<vmem>>, vector<1x256xf32>
    %142 = vector.broadcast %141 : vector<1x256xf32> to vector<32x256xf32>
    %143 = arith.mulf %139, %142 : vector<32x256xf32>
    %144 = vector.broadcast %140 : vector<32x1xf32> to vector<32x256xf32>
    %145 = arith.mulf %144, %143 : vector<32x256xf32>
    %146 = arith.addf %138, %145 : vector<32x256xf32>
    %c222_i32 = arith.constant 222 : i32
    %147 = tpu.dynamic_rotate %87 by %c222_i32 dim 1 : vector<32x256xf32>, i32 -> vector<32x256xf32>
    %c0_72 = arith.constant 0 : index
    %c8_73 = arith.constant 8 : index
    %148 = vector.load %arg7[%c0_72, %c8_73] : memref<32x9xf32, #tpu.memory_space<vmem>>, vector<32x1xf32>
    %c7_74 = arith.constant 7 : index
    %c0_75 = arith.constant 0 : index
    %149 = vector.load %arg9[%c7_74, %c0_75] : memref<8x256xf32, #tpu.memory_space<vmem>>, vector<1x256xf32>
    %150 = vector.broadcast %149 : vector<1x256xf32> to vector<32x256xf32>
    %151 = arith.mulf %147, %150 : vector<32x256xf32>
    %152 = vector.broadcast %148 : vector<32x1xf32> to vector<32x256xf32>
    %153 = arith.mulf %152, %151 : vector<32x256xf32>
    %154 = arith.addf %146, %153 : vector<32x256xf32>
    %c0_76 = arith.constant 0 : index
    %c0_77 = arith.constant 0 : index
    %155 = vector.load %arg8[%c0_76, %c0_77] : memref<32x1xf32, #tpu.memory_space<vmem>>, vector<32x1xf32>
    %cst_78 = arith.constant 0.000000e+00 : f32
    %156 = vector.broadcast %cst_78 : f32 to vector<32x256xf32>
    %157 = arith.cmpf oge, %154, %156 : vector<32x256xf32>
    %158 = vector.broadcast %155 : vector<32x1xf32> to vector<32x256xf32>
    %159 = arith.mulf %154, %158 : vector<32x256xf32>
    %160 = arith.select %157, %154, %159 : vector<32x256xi1>, vector<32x256xf32>
    %c64 = arith.constant 64 : index
    %c0_79 = arith.constant 0 : index
    %161 = vector.load %arg18[%c64, %c0_79] : memref<128x256xf32, #tpu.memory_space<vmem>>, vector<32x256xf32>
    tpu.vector_store %arg18[%c64, %c0_79], %160 {strides = array<i32>} : memref<128x256xf32, #tpu.memory_space<vmem>>, vector<32x256xf32>,
    %c0_80 = arith.constant 0 : index
    %c0_81 = arith.constant 0 : index
    %162 = vector.load %arg10[%c0_80, %c0_81] : memref<32x96xf32, #tpu.memory_space<vmem>>, vector<32x96xf32>
    %c0_82 = arith.constant 0 : index
    %c0_83 = arith.constant 0 : index
    %163 = vector.load %arg18[%c0_82, %c0_83] : memref<128x256xf32, #tpu.memory_space<vmem>>, vector<96x256xf32>
    %cst_84 = arith.constant dense<0.000000e+00> : vector<32x256xf32>
    %164 = tpu.matmul %162, %163, %cst_84 {dimension_numbers = #tpu.dot_dimension_numbers<[1], [0], [0], [1], [0, 0, 1, 1], [], []>, precision = #tpu.contract_precision<fp32>} : vector<32x96xf32>, vector<96x256xf32>, vector<32x256xf32> -> vector<32x256xf32>
    %c0_85 = arith.constant 0 : index
    %c0_86 = arith.constant 0 : index
    %165 = vector.load %arg11[%c0_85, %c0_86] : memref<32x1xf32, #tpu.memory_space<vmem>>, vector<32x1xf32>
    %166 = vector.broadcast %165 : vector<32x1xf32> to vector<32x256xf32>
    %167 = arith.addf %164, %166 : vector<32x256xf32>
    %cst_87 = arith.constant 0.000000e+00 : f32
    %168 = vector.broadcast %cst_87 : f32 to vector<32x256xf32>
    %169 = arith.cmpf oge, %167, %168 : vector<32x256xf32>
    %cst_88 = arith.constant 0.00999999977 : f32
    %170 = vector.broadcast %cst_88 : f32 to vector<32x256xf32>
    %171 = arith.mulf %170, %167 : vector<32x256xf32>
    %172 = arith.select %169, %167, %171 : vector<32x256xi1>, vector<32x256xf32>
    %c0_89 = arith.constant 0 : index
    %c4_90 = arith.constant 4 : index
    %173 = vector.load %arg12[%c0_89, %c4_90] : memref<32x9xf32, #tpu.memory_space<vmem>>, vector<32x1xf32>
    %174 = vector.broadcast %173 : vector<32x1xf32> to vector<32x256xf32>
    %175 = arith.mulf %172, %174 : vector<32x256xf32>
    %c51_i32 = arith.constant 51 : i32
    %176 = tpu.dynamic_rotate %172 by %c51_i32 dim 1 : vector<32x256xf32>, i32 -> vector<32x256xf32>
    %c0_91 = arith.constant 0 : index
    %c0_92 = arith.constant 0 : index
    %177 = vector.load %arg12[%c0_91, %c0_92] : memref<32x9xf32, #tpu.memory_space<vmem>>, vector<32x1xf32>
    %c0_93 = arith.constant 0 : index
    %c0_94 = arith.constant 0 : index
    %178 = vector.load %arg14[%c0_93, %c0_94] : memref<8x256xf32, #tpu.memory_space<vmem>>, vector<1x256xf32>
    %179 = vector.broadcast %178 : vector<1x256xf32> to vector<32x256xf32>
    %180 = arith.mulf %176, %179 : vector<32x256xf32>
    %181 = vector.broadcast %177 : vector<32x1xf32> to vector<32x256xf32>
    %182 = arith.mulf %181, %180 : vector<32x256xf32>
    %183 = arith.addf %175, %182 : vector<32x256xf32>
    %c48_i32 = arith.constant 48 : i32
    %184 = tpu.dynamic_rotate %172 by %c48_i32 dim 1 : vector<32x256xf32>, i32 -> vector<32x256xf32>
    %c0_95 = arith.constant 0 : index
    %c1_96 = arith.constant 1 : index
    %185 = vector.load %arg12[%c0_95, %c1_96] : memref<32x9xf32, #tpu.memory_space<vmem>>, vector<32x1xf32>
    %c1_97 = arith.constant 1 : index
    %c0_98 = arith.constant 0 : index
    %186 = vector.load %arg14[%c1_97, %c0_98] : memref<8x256xf32, #tpu.memory_space<vmem>>, vector<1x256xf32>
    %187 = vector.broadcast %186 : vector<1x256xf32> to vector<32x256xf32>
    %188 = arith.mulf %184, %187 : vector<32x256xf32>
    %189 = vector.broadcast %185 : vector<32x1xf32> to vector<32x256xf32>
    %190 = arith.mulf %189, %188 : vector<32x256xf32>
    %191 = arith.addf %183, %190 : vector<32x256xf32>
    %c45_i32 = arith.constant 45 : i32
    %192 = tpu.dynamic_rotate %172 by %c45_i32 dim 1 : vector<32x256xf32>, i32 -> vector<32x256xf32>
    %c0_99 = arith.constant 0 : index
    %c2_100 = arith.constant 2 : index
    %193 = vector.load %arg12[%c0_99, %c2_100] : memref<32x9xf32, #tpu.memory_space<vmem>>, vector<32x1xf32>
    %c2_101 = arith.constant 2 : index
    %c0_102 = arith.constant 0 : index
    %194 = vector.load %arg14[%c2_101, %c0_102] : memref<8x256xf32, #tpu.memory_space<vmem>>, vector<1x256xf32>
    %195 = vector.broadcast %194 : vector<1x256xf32> to vector<32x256xf32>
    %196 = arith.mulf %192, %195 : vector<32x256xf32>
    %197 = vector.broadcast %193 : vector<32x1xf32> to vector<32x256xf32>
    %198 = arith.mulf %197, %196 : vector<32x256xf32>
    %199 = arith.addf %191, %198 : vector<32x256xf32>
    %c3_i32 = arith.constant 3 : i32
    %200 = tpu.dynamic_rotate %172 by %c3_i32 dim 1 : vector<32x256xf32>, i32 -> vector<32x256xf32>
    %c0_103 = arith.constant 0 : index
    %c3_104 = arith.constant 3 : index
    %201 = vector.load %arg12[%c0_103, %c3_104] : memref<32x9xf32, #tpu.memory_space<vmem>>, vector<32x1xf32>
    %c3_105 = arith.constant 3 : index
    %c0_106 = arith.constant 0 : index
    %202 = vector.load %arg14[%c3_105, %c0_106] : memref<8x256xf32, #tpu.memory_space<vmem>>, vector<1x256xf32>
    %203 = vector.broadcast %202 : vector<1x256xf32> to vector<32x256xf32>
    %204 = arith.mulf %200, %203 : vector<32x256xf32>
    %205 = vector.broadcast %201 : vector<32x1xf32> to vector<32x256xf32>
    %206 = arith.mulf %205, %204 : vector<32x256xf32>
    %207 = arith.addf %199, %206 : vector<32x256xf32>
    %c253_i32 = arith.constant 253 : i32
    %208 = tpu.dynamic_rotate %172 by %c253_i32 dim 1 : vector<32x256xf32>, i32 -> vector<32x256xf32>
    %c0_107 = arith.constant 0 : index
    %c5_108 = arith.constant 5 : index
    %209 = vector.load %arg12[%c0_107, %c5_108] : memref<32x9xf32, #tpu.memory_space<vmem>>, vector<32x1xf32>
    %c4_109 = arith.constant 4 : index
    %c0_110 = arith.constant 0 : index
    %210 = vector.load %arg14[%c4_109, %c0_110] : memref<8x256xf32, #tpu.memory_space<vmem>>, vector<1x256xf32>
    %211 = vector.broadcast %210 : vector<1x256xf32> to vector<32x256xf32>
    %212 = arith.mulf %208, %211 : vector<32x256xf32>
    %213 = vector.broadcast %209 : vector<32x1xf32> to vector<32x256xf32>
    %214 = arith.mulf %213, %212 : vector<32x256xf32>
    %215 = arith.addf %207, %214 : vector<32x256xf32>
    %c211_i32 = arith.constant 211 : i32
    %216 = tpu.dynamic_rotate %172 by %c211_i32 dim 1 : vector<32x256xf32>, i32 -> vector<32x256xf32>
    %c0_111 = arith.constant 0 : index
    %c6_112 = arith.constant 6 : index
    %217 = vector.load %arg12[%c0_111, %c6_112] : memref<32x9xf32, #tpu.memory_space<vmem>>, vector<32x1xf32>
    %c5_113 = arith.constant 5 : index
    %c0_114 = arith.constant 0 : index
    %218 = vector.load %arg14[%c5_113, %c0_114] : memref<8x256xf32, #tpu.memory_space<vmem>>, vector<1x256xf32>
    %219 = vector.broadcast %218 : vector<1x256xf32> to vector<32x256xf32>
    %220 = arith.mulf %216, %219 : vector<32x256xf32>
    %221 = vector.broadcast %217 : vector<32x1xf32> to vector<32x256xf32>
    %222 = arith.mulf %221, %220 : vector<32x256xf32>
    %223 = arith.addf %215, %222 : vector<32x256xf32>
    %c208_i32 = arith.constant 208 : i32
    %224 = tpu.dynamic_rotate %172 by %c208_i32 dim 1 : vector<32x256xf32>, i32 -> vector<32x256xf32>
    %c0_115 = arith.constant 0 : index
    %c7_116 = arith.constant 7 : index
    %225 = vector.load %arg12[%c0_115, %c7_116] : memref<32x9xf32, #tpu.memory_space<vmem>>, vector<32x1xf32>
    %c6_117 = arith.constant 6 : index
    %c0_118 = arith.constant 0 : index
    %226 = vector.load %arg14[%c6_117, %c0_118] : memref<8x256xf32, #tpu.memory_space<vmem>>, vector<1x256xf32>
    %227 = vector.broadcast %226 : vector<1x256xf32> to vector<32x256xf32>
    %228 = arith.mulf %224, %227 : vector<32x256xf32>
    %229 = vector.broadcast %225 : vector<32x1xf32> to vector<32x256xf32>
    %230 = arith.mulf %229, %228 : vector<32x256xf32>
    %231 = arith.addf %223, %230 : vector<32x256xf32>
    %c205_i32 = arith.constant 205 : i32
    %232 = tpu.dynamic_rotate %172 by %c205_i32 dim 1 : vector<32x256xf32>, i32 -> vector<32x256xf32>
    %c0_119 = arith.constant 0 : index
    %c8_120 = arith.constant 8 : index
    %233 = vector.load %arg12[%c0_119, %c8_120] : memref<32x9xf32, #tpu.memory_space<vmem>>, vector<32x1xf32>
    %c7_121 = arith.constant 7 : index
    %c0_122 = arith.constant 0 : index
    %234 = vector.load %arg14[%c7_121, %c0_122] : memref<8x256xf32, #tpu.memory_space<vmem>>, vector<1x256xf32>
    %235 = vector.broadcast %234 : vector<1x256xf32> to vector<32x256xf32>
    %236 = arith.mulf %232, %235 : vector<32x256xf32>
    %237 = vector.broadcast %233 : vector<32x1xf32> to vector<32x256xf32>
    %238 = arith.mulf %237, %236 : vector<32x256xf32>
    %239 = arith.addf %231, %238 : vector<32x256xf32>
    %c0_123 = arith.constant 0 : index
    %c0_124 = arith.constant 0 : index
    %240 = vector.load %arg13[%c0_123, %c0_124] : memref<32x1xf32, #tpu.memory_space<vmem>>, vector<32x1xf32>
    %cst_125 = arith.constant 0.000000e+00 : f32
    %241 = vector.broadcast %cst_125 : f32 to vector<32x256xf32>
    %242 = arith.cmpf oge, %239, %241 : vector<32x256xf32>
    %243 = vector.broadcast %240 : vector<32x1xf32> to vector<32x256xf32>
    %244 = arith.mulf %239, %243 : vector<32x256xf32>
    %245 = arith.select %242, %239, %244 : vector<32x256xi1>, vector<32x256xf32>
    %c96 = arith.constant 96 : index
    %c0_126 = arith.constant 0 : index
    %246 = vector.load %arg18[%c96, %c0_126] : memref<128x256xf32, #tpu.memory_space<vmem>>, vector<32x256xf32>
    tpu.vector_store %arg18[%c96, %c0_126], %245 {strides = array<i32>} : memref<128x256xf32, #tpu.memory_space<vmem>>, vector<32x256xf32>,
    %c0_127 = arith.constant 0 : index
    %c0_128 = arith.constant 0 : index
    %247 = vector.load %arg15[%c0_127, %c0_128] : memref<32x128xf32, #tpu.memory_space<vmem>>, vector<32x128xf32>
    %c0_129 = arith.constant 0 : index
    %c0_130 = arith.constant 0 : index
    %248 = vector.load %arg18[%c0_129, %c0_130] : memref<128x256xf32, #tpu.memory_space<vmem>>, vector<128x256xf32>
    %cst_131 = arith.constant dense<0.000000e+00> : vector<32x256xf32>
    %249 = tpu.matmul %247, %248, %cst_131 {dimension_numbers = #tpu.dot_dimension_numbers<[1], [0], [0], [1], [0, 0, 1, 1], [], []>, precision = #tpu.contract_precision<fp32>} : vector<32x128xf32>, vector<128x256xf32>, vector<32x256xf32> -> vector<32x256xf32>
    %c0_132 = arith.constant 0 : index
    %c0_133 = arith.constant 0 : index
    %250 = vector.load %arg16[%c0_132, %c0_133] : memref<32x1xf32, #tpu.memory_space<vmem>>, vector<32x1xf32>
    %251 = vector.broadcast %250 : vector<32x1xf32> to vector<32x256xf32>
    %252 = arith.addf %249, %251 : vector<32x256xf32>
    %cst_134 = arith.constant 0.000000e+00 : f32
    %253 = vector.broadcast %cst_134 : f32 to vector<32x256xf32>
    %254 = arith.cmpf oge, %252, %253 : vector<32x256xf32>
    %cst_135 = arith.constant 0.00999999977 : f32
    %255 = vector.broadcast %cst_135 : f32 to vector<32x256xf32>
    %256 = arith.mulf %255, %252 : vector<32x256xf32>
    %257 = arith.select %254, %252, %256 : vector<32x256xi1>, vector<32x256xf32>
    %c0_136 = arith.constant 0 : index
    %c0_137 = arith.constant 0 : index
    %c0_138 = arith.constant 0 : index
    %258 = vector.load %arg17[%c0_136, %c0_137, %c0_138] : memref<1x32x256xf32, #tpu.memory_space<vmem>>, vector<1x32x256xf32>
    %259 = vector.shape_cast %258 : vector<1x32x256xf32> to vector<32x256xf32>
    %260 = vector.shape_cast %257 : vector<32x256xf32> to vector<1x32x256xf32>
    tpu.vector_store %arg17[%c0_136, %c0_137, %c0_138], %260 {strides = array<i32>} : memref<1x32x256xf32, #tpu.memory_space<vmem>>, vector<1x32x256xf32>,
    return
  }
  func.func @transform_0(%arg0: i32) -> (i32, i32, i32) {
    %c0_i32 = arith.constant 0 : i32
    %c0_i32_0 = arith.constant 0 : i32
    %c0_i32_1 = arith.constant 0 : i32
    return %arg0, %c0_i32, %c0_i32_0 : i32, i32, i32
  }
  func.func @transform_1(%arg0: i32) -> (i32, i32) {
    %c0_i32 = arith.constant 0 : i32
    %c0_i32_0 = arith.constant 0 : i32
    %c0_i32_1 = arith.constant 0 : i32
    return %c0_i32, %c0_i32_0 : i32, i32
  }
  func.func @transform_2(%arg0: i32) -> (i32, i32) {
    %c0_i32 = arith.constant 0 : i32
    %c0_i32_0 = arith.constant 0 : i32
    %c0_i32_1 = arith.constant 0 : i32
    return %c0_i32, %c0_i32_0 : i32, i32
  }
  func.func @transform_3(%arg0: i32) -> (i32, i32) {
    %c0_i32 = arith.constant 0 : i32
    %c0_i32_0 = arith.constant 0 : i32
    %c0_i32_1 = arith.constant 0 : i32
    return %c0_i32, %c0_i32_0 : i32, i32
  }
  func.func @transform_4(%arg0: i32) -> (i32, i32) {
    %c0_i32 = arith.constant 0 : i32
    %c0_i32_0 = arith.constant 0 : i32
    %c0_i32_1 = arith.constant 0 : i32
    return %c0_i32, %c0_i32_0 : i32, i32
  }
  func.func @transform_5(%arg0: i32) -> (i32, i32) {
    %c0_i32 = arith.constant 0 : i32
    %c0_i32_0 = arith.constant 0 : i32
    %c0_i32_1 = arith.constant 0 : i32
    return %c0_i32, %c0_i32_0 : i32, i32
  }
  func.func @transform_6(%arg0: i32) -> (i32, i32) {
    %c0_i32 = arith.constant 0 : i32
    %c0_i32_0 = arith.constant 0 : i32
    %c0_i32_1 = arith.constant 0 : i32
    return %c0_i32, %c0_i32_0 : i32, i32
  }
  func.func @transform_7(%arg0: i32) -> (i32, i32) {
    %c0_i32 = arith.constant 0 : i32
    %c0_i32_0 = arith.constant 0 : i32
    %c0_i32_1 = arith.constant 0 : i32
    return %c0_i32, %c0_i32_0 : i32, i32
  }
  func.func @transform_8(%arg0: i32) -> (i32, i32) {
    %c0_i32 = arith.constant 0 : i32
    %c0_i32_0 = arith.constant 0 : i32
    %c0_i32_1 = arith.constant 0 : i32
    return %c0_i32, %c0_i32_0 : i32, i32
  }
  func.func @transform_9(%arg0: i32) -> (i32, i32) {
    %c0_i32 = arith.constant 0 : i32
    %c0_i32_0 = arith.constant 0 : i32
    %c0_i32_1 = arith.constant 0 : i32
    return %c0_i32, %c0_i32_0 : i32, i32
  }
  func.func @transform_10(%arg0: i32) -> (i32, i32) {
    %c0_i32 = arith.constant 0 : i32
    %c0_i32_0 = arith.constant 0 : i32
    %c0_i32_1 = arith.constant 0 : i32
    return %c0_i32, %c0_i32_0 : i32, i32
  }
  func.func @transform_11(%arg0: i32) -> (i32, i32) {
    %c0_i32 = arith.constant 0 : i32
    %c0_i32_0 = arith.constant 0 : i32
    %c0_i32_1 = arith.constant 0 : i32
    return %c0_i32, %c0_i32_0 : i32, i32
  }
  func.func @transform_12(%arg0: i32) -> (i32, i32) {
    %c0_i32 = arith.constant 0 : i32
    %c0_i32_0 = arith.constant 0 : i32
    %c0_i32_1 = arith.constant 0 : i32
    return %c0_i32, %c0_i32_0 : i32, i32
  }
  func.func @transform_13(%arg0: i32) -> (i32, i32) {
    %c0_i32 = arith.constant 0 : i32
    %c0_i32_0 = arith.constant 0 : i32
    %c0_i32_1 = arith.constant 0 : i32
    return %c0_i32, %c0_i32_0 : i32, i32
  }
  func.func @transform_14(%arg0: i32) -> (i32, i32) {
    %c0_i32 = arith.constant 0 : i32
    %c0_i32_0 = arith.constant 0 : i32
    %c0_i32_1 = arith.constant 0 : i32
    return %c0_i32, %c0_i32_0 : i32, i32
  }
  func.func @transform_15(%arg0: i32) -> (i32, i32) {
    %c0_i32 = arith.constant 0 : i32
    %c0_i32_0 = arith.constant 0 : i32
    %c0_i32_1 = arith.constant 0 : i32
    return %c0_i32, %c0_i32_0 : i32, i32
  }
  func.func @transform_16(%arg0: i32) -> (i32, i32, i32) {
    %c0_i32 = arith.constant 0 : i32
    %c0_i32_0 = arith.constant 0 : i32
    %c0_i32_1 = arith.constant 0 : i32
    return %arg0, %c0_i32, %c0_i32_0 : i32, i32, i32
  }
}

</mosaic_0001>

<bundles_post_ra>
// kernel: _lambda_.1
= control target key start
LH: loop header
LB: loop body
LE: loop exit
PB: predicated region body
PF: predicated region fallthrough
CT: control target
= control target key end

     0   :  { %s5971_s21 = smov 0   ;;  %s9828_s0 = inlined_call_operand.vmem [shape: f32[2,32,256], index: 0, kind: input, shape index: {}]   ;;  %s9829_s1 = inlined_call_operand.vmem [shape: f32[32,9], index: 1, kind: input, shape index: {}]   ;;  %s9830_s2 = inlined_call_operand.vmem [shape: f32[32,1], index: 2, kind: input, shape index: {}]   ;;  %s9831_s3 = inlined_call_operand.vmem [shape: f32[8,256], index: 3, kind: input, shape index: {}]   ;;  %s9832_s4 = inlined_call_operand.vmem [shape: f32[32,64], index: 4, kind: input, shape index: {}]   ;;  %s9833_s5 = inlined_call_operand.vmem [shape: f32[32,1], index: 5, kind: input, shape index: {}]   ;;  %s9834_s6 = inlined_call_operand.vmem [shape: f32[32,9], index: 6, kind: input, shape index: {}]   ;;  %s9835_s7 = inlined_call_operand.vmem [shape: f32[32,1], index: 7, kind: input, shape index: {}]   ;;  %s9836_s8 = inlined_call_operand.vmem [shape: f32[8,256], index: 8, kind: input, shape index: {}]   ;;  %s9837_s9 = inlined_call_operand.vmem [shape: f32[32,96], index: 9, kind: input, shape index: {}]   ;;  %s9838_s10 = inlined_call_operand.vmem [shape: f32[32,1], index: 10, kind: input, shape index: {}]   ;;  %s9839_s11 = inlined_call_operand.vmem [shape: f32[32,9], index: 11, kind: input, shape index: {}]   ;;  %s9840_s12 = inlined_call_operand.vmem [shape: f32[32,1], index: 12, kind: input, shape index: {}]   ;;  %s9841_s13 = inlined_call_operand.vmem [shape: f32[8,256], index: 13, kind: input, shape index: {}]   ;;  %s9842_s14 = inlined_call_operand.vmem [shape: f32[32,128], index: 14, kind: input, shape index: {}]   ;;  %s9843_s15 = inlined_call_operand.vmem [shape: f32[32,1], index: 15, kind: input, shape index: {}]   ;;  %s9844_s16 = inlined_call_operand.vmem [shape: f32[2,32,256], index: 16, kind: output, shape index: {}]  }
   0x1   :  { %10203 = sst [smem:[#allocation119_spill]] %s9828_s0 }
   0x2 LB: > { %s5684_s22 = sadd.s32 4294967295, %s5850_s21   ;;  %p5688_p0 = scmp.ge.s32.totalorder %s5850_s21, 1  ;;  %s5850_s21 = sphi %s5971_s21, %s26_s21  }
   0x3   : > { %p462_p1 = scmp.lt.s32.totalorder %s5850_s21, 3 }
   0x5   : > { %p463_p2 = pnand %p5688_p0, %p462_p1 }
   0x7   : > { %466 = sbr.rel (%p463_p2) target bundleno = 1869 (0x74d), region = 84 }
   0xc   : > { %v5982_v0 = vld [vmem:[%s9829_s1 + $0x10] sm:$0xff]  ;;  %v5987_v1 = vld [vmem:[%s9829_s1 + $0x18] sm:$0xff]  ;;  %p512_p3 = scmp.lt.s32.totalorder %s5684_s22, 1  ;;  %v9861_v2 = vmov 4   ;;  %v5998_v3 = vld [vmem:[%s9829_s1 + $0x8] sm:$0xff]  ;;  %s10204_s17 = sld [smem:[#allocation119_spill]] }
   0xd   : > { %5761 = vset.pattern.permute.xlu1 %v9861_v2  ;;  %5760 = vset.pattern.permute.xlu0 %v9861_v2  ;;  %v9857_v5 = vmov 1   ;;  %s5854_s19 = smov 17   ;;  %v9859_v7 = vmov 0   ;;  %v9855_v10 = vmov 2   ;;  %v6044_v12 = vld [vmem:[%s9829_s1] sm:$0xff]  ;;  %s5857_s24 = smov 16  }
   0xe   : > { %554 = vperm.xlu1 %5761, %v5982_v0   ;;  %559 = vperm.xlu0 %5760, %v5987_v1   ;;  %s10768_s22 = smov (!%p512_p3, %s5684_s22), 1  ;;  %v9853_v15 = vmov 3   ;;  %s5859_s25 = smov 15   ;;  %v9851_v17 = vmov 5   ;;  %v9849_v18 = vmov 6   ;;  %v9847_v19 = vmov 7  }
   0xf   : > { %s5716_s29 = sshll.u32 %s10768_s22, 6  ;;  %s5860_s26 = smov 1   ;;  %v9845_v32 = vmov 8   ;;  %v1198_v44 = vld [vmem:[%s9830_s2 + $0x18] sm:$0xff]  ;;  %v1195_v49 = vld [vmem:[%s9830_s2] sm:$0xff]  ;;  %vm1295_vm8 = vcmask 523264  }
  0x10   : > { %s5863_s27 = smov 127   ;;  %s5864_s28 = smov 113   ;;  %v6267_v53 = vld [vmem:[%s9834_s6 + $0x18] sm:$0xff] }
  0x11   : > { %s5866_s30 = smov 112   ;;  %s5867_s0 = smov 111   ;;  %10211 = vst [vmem:[#allocation9_spill] sm:$0xff] %v6267_v53 }
  0x12   : > { %s6006_s18 = scalar_lea.vmem %s10204_s17, %s5716_s29  ;;  %549 = vperm.xlu0 %5760, %v5998_v3   ;;  %5762 = vset.pattern.permute.xlu1 %v9857_v5  ;;  %s5875_s17 = smov 98  }
  0x13   : > { %v6009_v4 = vld [vmem:[%s6006_s18 + $0x30] sm:$0xff]  ;;  %v6016_v6 = vld [vmem:[%s6006_s18 + $0x38] sm:$0xff]  ;;  %v6025_v8 = vld [vmem:[%s6006_s18 + $0x20] sm:$0xff]  ;;  %s5878_s23 = smov 83  }
  0x14   : > { %10205 = vst [vmem:[#allocation3_spill] sm:$0xff] %v6009_v4  ;;  %576 = vrot.lane.b32.xlu1 %v6009_v4, %s5854_s19  ;;  %10206 = vst [vmem:[#allocation4_spill] sm:$0xff] %v6025_v8  ;;  %v6031_v9 = vld [vmem:[%s6006_s18 + $0x28] sm:$0xff]  ;;  %v6035_v11 = vld [vmem:[%s6006_s18 + $0x10] sm:$0xff] }
  0x15   : > { %10207 = vst [vmem:[#allocation5_spill] sm:$0xff] %v6031_v9  ;;  %10208 = vst [vmem:[#allocation6_spill] sm:$0xff] %v6035_v11  ;;  %v6059_v13 = vld [vmem:[%s6006_s18 + $0x18] sm:$0xff]  ;;  %v6063_v14 = vld [vmem:[%s6006_s18 + $0x8] sm:$0xff] }
  0x16   : > { %5763 = vset.pattern.permute.xlu0 %v9859_v7  ;;  %10209 = vst [vmem:[#allocation7_spill] sm:$0xff] %v6059_v13  ;;  %v6087_v16 = vld [vmem:[%s6006_s18] sm:$0xff] }
  0x17   : > { %630 = vperm.xlu0 %5763, %v5987_v1  }
  0x18   : > { %584 = vrot.lane.b32.xlu1 %v6016_v6, %s5854_s19 }
  0x1b   : > { %626 = vperm.xlu0 %5763, %v5982_v0  }
  0x1c   : > { %708 = vperm.xlu1 %5762, %v5987_v1  }
  0x1f   : > { %622 = vperm.xlu0 %5763, %v5998_v3  }
  0x20   : > { %574 = vrot.lane.b32.xlu1 %v6025_v8, %s5854_s19 }
  0x21   : > { %5764 = vset.pattern.permute.xlu1 %v9855_v10 }
  0x23   : > { %572 = vrot.lane.b32.xlu0 %v6035_v11, %s5854_s19 }
  0x24   : > { %582 = vrot.lane.b32.xlu1 %v6031_v9, %s5854_s19 }
  0x27   : > { %618 = vperm.xlu0 %5763, %v6044_v12  }
  0x28   : > { %655 = vrot.lane.b32.xlu1 %v6009_v4, %s5857_s24 }
  0x2b   : > { %5766 = vset.pattern.permute.xlu0 %v9857_v5 }
  0x2c   : > { %663 = vrot.lane.b32.xlu1 %v6016_v6, %s5857_s24  ;;  %704 = vperm.xlu0 %5766, %v5982_v0  }
  0x30   : > { %786 = vperm.xlu1 %5764, %v5987_v1   ;;  %700 = vperm.xlu0 %5766, %v5998_v3  }
  0x34   : > { %5765 = vset.pattern.permute.xlu1 %v9861_v2  ;;  %5767 = vset.pattern.permute.xlu0 %v9855_v10 }
  0x35   : > { %544 = vperm.xlu1 %5765, %v6044_v12   ;;  %782 = vperm.xlu0 %5767, %v5982_v0  }
  0x39   : > { %580 = vrot.lane.b32.xlu1 %v6059_v13, %s5854_s19  ;;  %578 = vrot.lane.b32.xlu0 %v6063_v14, %s5854_s19 }
  0x3a   : > { %5768 = vset.pattern.permute.xlu1 %v9853_v15 }
  0x3d   : > { %653 = vrot.lane.b32.xlu1 %v6025_v8, %s5857_s24  ;;  %659 = vrot.lane.b32.xlu0 %v6059_v13, %s5857_s24 }
  0x41   : > { %661 = vrot.lane.b32.xlu1 %v6031_v9, %s5857_s24  ;;  %731 = vrot.lane.b32.xlu0 %v6025_v8, %s5859_s25 }
  0x45   : > { %733 = vrot.lane.b32.xlu1 %v6009_v4, %s5859_s25  ;;  %778 = vperm.xlu0 %5767, %v5998_v3  }
  0x49   : > { %741 = vrot.lane.b32.xlu1 %v6016_v6, %s5859_s25  ;;  %819 = vrot.lane.b32.xlu0 %v6016_v6, %s5860_s26 }
  0x4d   : > { %864 = vperm.xlu1 %5768, %v5987_v1   ;;  %729 = vrot.lane.b32.xlu0 %v6035_v11, %s5859_s25 }
  0x51   : > { %570 = vrot.lane.b32.xlu1 %v6087_v16, %s5854_s19  ;;  %774 = vperm.xlu0 %5767, %v6044_v12   ;;  %s5885_s19 = smov 77  }
  0x52   : > { %5769 = vset.pattern.permute.xlu1 %v9857_v5 }
  0x55   : > { %651 = vrot.lane.b32.xlu1 %v6035_v11, %s5857_s24  ;;  %5771 = vset.pattern.permute.xlu0 %v9853_v15 }
  0x56   : > { %856 = vperm.xlu0 %5771, %v5998_v3  }
  0x59   : > { %696 = vperm.xlu1 %5769, %v6044_v12  }
  0x5a   : > { %5772 = vset.pattern.permute.xlu0 %v9851_v17 }
  0x5b   : > { %942 = vperm.xlu0 %5772, %v5987_v1  }
  0x5d   : > { %739 = vrot.lane.b32.xlu1 %v6031_v9, %s5859_s25 }
  0x5e   : > { %5770 = vset.pattern.permute.xlu1 %v9853_v15 }
  0x5f   : > { %938 = vperm.xlu0 %5772, %v5982_v0  }
  0x61   : > { %811 = vrot.lane.b32.xlu1 %v6009_v4, %s5860_s26 }
  0x63   : > { %735 = vrot.lane.b32.xlu0 %v6063_v14, %s5859_s25 }
  0x65   : > { %860 = vperm.xlu1 %5770, %v5982_v0  }
  0x67   : > { %815 = vrot.lane.b32.xlu0 %v6059_v13, %s5860_s26 }
  0x69   : > { %649 = vrot.lane.b32.xlu1 %v6087_v16, %s5857_s24 }
  0x6a   : > { %5773 = vset.pattern.permute.xlu1 %v9849_v18 }
  0x6b   : > { %887 = vrot.lane.b32.xlu0 %v6025_v8, %s5863_s27 }
  0x6d   : > { %657 = vrot.lane.b32.xlu1 %v6063_v14, %s5857_s24  ;;  %s5879_s24 = smov 51  }
  0x6f   : > { %934 = vperm.xlu0 %5772, %v5998_v3  }
  0x71   : > { %737 = vrot.lane.b32.xlu1 %v6059_v13, %s5859_s25 }
  0x73   : > { %975 = vrot.lane.b32.xlu0 %v6016_v6, %s5864_s28 }
  0x75   : > { %809 = vrot.lane.b32.xlu1 %v6025_v8, %s5860_s26 }
  0x77   : > { %885 = vrot.lane.b32.xlu0 %v6035_v11, %s5863_s27 }
  0x79   : > { %817 = vrot.lane.b32.xlu1 %v6031_v9, %s5860_s26 }
  0x7b   : > { %930 = vperm.xlu0 %5772, %v6044_v12  }
  0x7d   : > { %889 = vrot.lane.b32.xlu1 %v6009_v4, %s5863_s27 }
  0x7f   : > { %5776 = vset.pattern.permute.xlu0 %v9849_v18 }
  0x80   : > { %1012 = vperm.xlu0 %5776, %v5998_v3  }
  0x81   : > { %897 = vrot.lane.b32.xlu1 %v6016_v6, %s5863_s27 }
  0x84   : > { %5777 = vset.pattern.permute.xlu0 %v9847_v19 }
  0x85   : > { %1020 = vperm.xlu1 %5773, %v5987_v1   ;;  %1098 = vperm.xlu0 %5777, %v5987_v1  }
  0x89   : > { %727 = vrot.lane.b32.xlu1 %v6087_v16, %s5859_s25  ;;  %v6143_v20 = vpop.permute.xlu1 %554  ;;  %v6145_v21 = vpop.permute.xlu0 %559  ;;  %1094 = vperm.xlu0 %5777, %v5982_v0   ;;  %s5877_s25 = smov 94  }
  0x8a   : > { %5774 = vset.pattern.permute.xlu1 %v9853_v15 }
  0x8d   : > { %807 = vrot.lane.b32.xlu1 %v6035_v11, %s5860_s26  ;;  %v6151_v22 = vpop.permute.xlu1 %576  ;;  %v6153_v23 = vpop.permute.xlu0 %549  ;;  %891 = vrot.lane.b32.xlu0 %v6063_v14, %s5863_s27 }
  0x91   : > { %852 = vperm.xlu1 %5774, %v6044_v12   ;;  %v6158_v24 = vpop.permute.xlu1 %584  ;;  %971 = vrot.lane.b32.xlu0 %v6059_v13, %s5864_s28 }
  0x92   : > { %v6162_v25 = vpop.permute.xlu0 %630 }
  0x95   : > { %895 = vrot.lane.b32.xlu1 %v6031_v9, %s5863_s27  ;;  %1043 = vrot.lane.b32.xlu0 %v6025_v8, %s5866_s30 }
  0x96   : > { %5775 = vset.pattern.permute.xlu1 %v9849_v18  ;;  %v6171_v27 = vpop.permute.xlu0 %626 }
  0x97   : > { %v6169_v26 = vpop.permute.xlu1 %708 }
  0x99   : > { %967 = vrot.lane.b32.xlu1 %v6009_v4, %s5864_s28  ;;  %1090 = vperm.xlu0 %5777, %v5998_v3  }
  0x9a   : > { %v6178_v29 = vpop.permute.xlu0 %622 }
  0x9b   : > { %v6176_v28 = vpop.permute.xlu1 %574 }
  0x9d   : > { %1016 = vperm.xlu1 %5775, %v5982_v0   ;;  %1131 = vrot.lane.b32.xlu0 %v6016_v6, %s5867_s0 }
  0x9e   : > { %v6185_v31 = vpop.permute.xlu0 %572 }
  0x9f   : > { %v6183_v30 = vpop.permute.xlu1 %582 }
  0xa1   : > { %805 = vrot.lane.b32.xlu1 %v6087_v16, %s5860_s26  ;;  %961 = vrot.lane.b32.xlu0 %v6087_v16, %s5864_s28 }
  0xa2   : > { %5778 = vset.pattern.permute.xlu1 %v9845_v32  ;;  %v6194_v34 = vpop.permute.xlu0 %618 }
  0xa3   : > { %v6192_v33 = vpop.permute.xlu1 %655 }
  0xa5   : > { %813 = vrot.lane.b32.xlu1 %v6063_v14, %s5860_s26  ;;  %1041 = vrot.lane.b32.xlu0 %v6035_v11, %s5866_s30  ;;  %s5871_s26 = smov 32  }
  0xa7   : > { %v6200_v35 = vpop.permute.xlu1 %663  ;;  %v6202_v36 = vpop.permute.xlu0 %704 }
  0xa9   : > { %893 = vrot.lane.b32.xlu1 %v6059_v13, %s5863_s27  ;;  %1086 = vperm.xlu0 %5777, %v6044_v12  }
  0xab   : > { %v6207_v37 = vpop.permute.xlu1 %786  ;;  %v6209_v38 = vpop.permute.xlu0 %700 }
  0xad   : > { %965 = vrot.lane.b32.xlu1 %v6025_v8, %s5864_s28  ;;  %1129 = vrot.lane.b32.xlu0 %v6031_v9, %s5867_s0 }
  0xae   : > { %5781 = vset.pattern.permute.xlu0 %v9845_v32 }
  0xb0   : > { %v6216_v39 = vpop.permute.xlu1 %544  ;;  %v6220_v40 = vpop.permute.xlu0 %782 }
  0xb1   : > { %973 = vrot.lane.b32.xlu1 %v6031_v9, %s5864_s28  ;;  %1119 = vrot.lane.b32.xlu0 %v6035_v11, %s5867_s0 }
  0xb4   : > { %v6224_v41 = vpop.permute.xlu1 %580  ;;  %v6228_v42 = vpop.permute.xlu0 %578 }
  0xb5   : > { %1045 = vrot.lane.b32.xlu1 %v6009_v4, %s5866_s30  ;;  %1164 = vperm.xlu0 %5781, %v6044_v12  }
  0xb8   : > { %v6231_v43 = vpop.permute.xlu1 %653  ;;  %v6238_v45 = vpop.permute.xlu0 %659 }
  0xb9   : > { %1053 = vrot.lane.b32.xlu1 %v6016_v6, %s5866_s30  ;;  %5782 = vset.pattern.permute.xlu0 %v9859_v7 }
  0xba   : > { %1224 = vperm.xlu0 %5782, %v1198_v44  }
  0xbc   : > { %v6241_v46 = vpop.permute.xlu1 %661  ;;  %v6244_v47 = vpop.permute.xlu0 %731 }
  0xbd   : > { %1176 = vperm.xlu1 %5778, %v5987_v1  }
  0xbe   : > { %1125 = vrot.lane.b32.xlu0 %v6063_v14, %s5867_s0 }
  0xc0   : > { %v6248_v48 = vpop.permute.xlu1 %733  ;;  %v6255_v50 = vpop.permute.xlu0 %778 }
  0xc1   : > { %883 = vrot.lane.b32.xlu1 %v6087_v16, %s5863_s27  ;;  %10210 = vst [vmem:[#allocation8_spill] sm:$0xff] %v6255_v50  ;;  %s5872_s27 = smov 30  }
  0xc2   : > { %5779 = vset.pattern.permute.xlu1 %v9849_v18  ;;  %1209 = vperm.xlu0 %5782, %v1195_v49  }
  0xc4   : > { %v6258_v51 = vpop.permute.xlu1 %741  ;;  %v6262_v52 = vpop.permute.xlu0 %819 }
  0xc5   : > { %963 = vrot.lane.b32.xlu1 %v6035_v11, %s5864_s28 }
  0xc6   : > { %5784 = vset.pattern.permute.xlu0 %v9861_v2 }
  0xc7   : > { %2147 = vperm.xlu0 %5784, %v6267_v53  }
  0xc8   : > { %v6270_v54 = vpop.permute.xlu1 %864  ;;  %v6274_v55 = vpop.permute.xlu0 %729 }
  0xc9   : > { %10212 = vst [vmem:[#allocation10_spill] sm:$0xff] %v6270_v54  ;;  %1008 = vperm.xlu1 %5779, %v6044_v12   ;;  %v5696_v54 = vld [vmem:[%s9831_s3 + $0x4] ss:$8 sm:$0x3] }
  0xcb   : > { %5785 = vset.pattern.permute.xlu0 %v9859_v7 }
  0xcc   : > { %v6276_v56 = vpop.permute.xlu1 %570  ;;  %v6281_v57 = vpop.permute.xlu0 %774 }
  0xcd   : > { %1051 = vrot.lane.b32.xlu1 %v6031_v9, %s5866_s30  ;;  %10213 = vst [vmem:[#allocation11_spill] sm:$0xff] %v6281_v57 }
  0xce   : > { %5780 = vset.pattern.permute.xlu1 %v9845_v32 }
  0xd0   : > { %v6284_v58 = vpop.permute.xlu1 %651 }
  0xd1   : > { %1123 = vrot.lane.b32.xlu1 %v6009_v4, %s5867_s0  ;;  %v6288_v59 = vpop.permute.xlu0 %856 }
  0xd2   : > { %10214 = vst [vmem:[#allocation12_spill] sm:$0xff] %v6288_v59 }
  0xd4   : > { %v6290_v60 = vpop.permute.xlu1 %696 }
  0xd5   : > { %10215 = vst [vmem:[#allocation13_spill] sm:$0xff] %v6290_v60  ;;  %1172 = vperm.xlu1 %5780, %v5982_v0  }
  0xd6   : > { %v6293_v61 = vpop.permute.xlu0 %942 }
  0xd7   : > { %10216 = vst [vmem:[#allocation14_spill] sm:$0xff] %v6293_v61 }
  0xd8   : > { %v6295_v62 = vpop.permute.xlu1 %739 }
  0xd9   : > { %969 = vrot.lane.b32.xlu1 %v6063_v14, %s5864_s28  ;;  %s5873_s28 = smov 2  }
  0xda   : > { %v6299_v63 = vpop.permute.xlu0 %938 }
  0xdb   : > { %10217 = vst [vmem:[#allocation15_spill] sm:$0xff] %v6299_v63  ;;  %v1196_v63 = vld [vmem:[%s9830_s2 + $0x8] sm:$0xff] }
  0xdc   : > { %v6301_v1 = vpop.permute.xlu1 %811 }
  0xdd   : > { %1049 = vrot.lane.b32.xlu1 %v6059_v13, %s5866_s30 }
  0xde   : > { %v6305_v12 = vpop.permute.xlu0 %735 }
  0xdf   : > { %10218 = vst [vmem:[#allocation16_spill] sm:$0xff] %v6305_v12 }
  0xe0   : > { %v6307_v44 = vpop.permute.xlu1 %860 }
  0xe1   : > { %10219 = vst [vmem:[#allocation17_spill] sm:$0xff] %v6307_v44  ;;  %1121 = vrot.lane.b32.xlu1 %v6025_v8, %s5867_s0 }
  0xe2   : > { %v6311_v0 = vpop.permute.xlu0 %815 }
  0xe3   : > { %10220 = vst [vmem:[#allocation18_spill] sm:$0xff] %v6311_v0 }
  0xe4   : > { %v6313_v49 = vpop.permute.xlu1 %649 }
  0xe5   : > { %1168 = vperm.xlu1 %5780, %v5998_v3   ;;  %v1197_v3 = vld [vmem:[%s9830_s2 + $0x10] sm:$0xff] }
  0xe6   : > { %v6316_v32 = vpop.permute.xlu0 %887 }
  0xe7   : > { %10221 = vst [vmem:[#allocation19_spill] sm:$0xff] %v6316_v32 }
  0xe8   : > { %v6318_v19 = vpop.permute.xlu1 %657 }
  0xe9   : > { %1039 = vrot.lane.b32.xlu1 %v6087_v16, %s5866_s30 }
  0xea   : > { %5783 = vset.pattern.permute.xlu1 %v9859_v7  ;;  %v6323_v18 = vpop.permute.xlu0 %934 }
  0xeb   : > { %10222 = vst [vmem:[#allocation20_spill] sm:$0xff] %v6323_v18 }
  0xec   : > { %v6325_v17 = vpop.permute.xlu1 %737 }
  0xed   : > { %10223 = vst [vmem:[#allocation21_spill] sm:$0xff] %v6325_v17  ;;  %1047 = vrot.lane.b32.xlu1 %v6063_v14, %s5866_s30  ;;  %v567_v17 = vmul.f32 %v6143_v20, %v6031_v9  ;;  %s5874_s30 = smov 126  }
  0xee   : > { %v6329_v15 = vpop.permute.xlu0 %975 }
  0xef   : > { %10224 = vst [vmem:[#allocation22_spill] sm:$0xff] %v6329_v15 }
  0xf0   : > { %v6331_v10 = vpop.permute.xlu1 %809 }
  0xf1   : > { %10225 = vst [vmem:[#allocation23_spill] sm:$0xff] %v6331_v10  ;;  %1127 = vrot.lane.b32.xlu1 %v6059_v13, %s5867_s0 }
  0xf2   : > { %v6338_v5 = vpop.permute.xlu0 %885 }
  0xf3   : > { %10226 = vst [vmem:[#allocation24_spill] sm:$0xff] %v6338_v5  ;;  %v1274_v5 = vld [vmem:[%s9833_s5 + $0x18] sm:$0xff] }
  0xf4   : > { %v6340_v7 = vpop.permute.xlu1 %817 }
  0xf5   : > { %10227 = vst [vmem:[#allocation25_spill] sm:$0xff] %v6340_v7  ;;  %1219 = vperm.xlu1 %5783, %v1197_v3  }
  0xf6   : > { %v6346_v18 = vpop.permute.xlu0 %930 }
  0xf7   : > { %10229 = vst [vmem:[#allocation27_spill] sm:$0xff] %v6346_v18  ;;  %v1273_v18 = vld [vmem:[%s9833_s5 + $0x10] sm:$0xff] }
  0xf8   : > { %v6342_v2 = vpop.permute.xlu1 %889 }
  0xf9   : > { %10228 = vst [vmem:[#allocation26_spill] sm:$0xff] %v6342_v2  ;;  %1117 = vrot.lane.b32.xlu1 %v6087_v16, %s5867_s0  ;;  %s5876_s0 = smov 96  }
  0xfb   : > { %v6356_v57 = vpop.permute.xlu0 %1012 }
  0xfc   : > { %v6351_v59 = vpop.permute.xlu1 %897  ;;  %10231 = vst [vmem:[#allocation29_spill] sm:$0xff] %v6356_v57 }
  0xfd   : > { %10230 = vst [vmem:[#allocation28_spill] sm:$0xff] %v6351_v59  ;;  %1214 = vperm.xlu1 %5783, %v1196_v63   ;;  %v1271_v63 = vld [vmem:[%s9833_s5] sm:$0xff] }
 0x100   : > { %v6358_v3 = vpop.permute.xlu1 %1020  ;;  %v6365_v0 = vpop.permute.xlu0 %1098 }
 0x101   : > { %10232 = vst [vmem:[#allocation30_spill] sm:$0xff] %v6358_v3  ;;  %1292 = vperm.xlu1 %5783, %v1274_v5   ;;  %10234 = vst [vmem:[#allocation32_spill] sm:$0xff] %v6365_v0  ;;  %v9882_v5 = vmov 0.0   ;;  %v10240_v0 = vmov 4  }
 0x102   : > { %1388 = vmatprep.mubr.f32.mxu0 %v9882_v5  ;;  %1577 = vmatprep.mubr.f32.mxu1 %v9882_v5 }
 0x104   : > { %v6363_v32 = vpop.permute.xlu1 %727  ;;  %v6372_v57 = vpop.permute.xlu0 %1094 }
 0x105   : > { %10233 = vst [vmem:[#allocation31_spill] sm:$0xff] %v6363_v32  ;;  %1287 = vperm.xlu1 %5783, %v1273_v18   ;;  %10236 = vst [vmem:[#allocation34_spill] sm:$0xff] %v6372_v57 }
 0x108   : > { %v6370_v12 = vpop.permute.xlu1 %807  ;;  %v6381_v32 = vpop.permute.xlu0 %891 }
 0x109   : > { %10235 = vst [vmem:[#allocation33_spill] sm:$0xff] %v6370_v12  ;;  %1277 = vperm.xlu1 %5783, %v1271_v63   ;;  %10239 = vst [vmem:[#allocation37_spill] sm:$0xff] %v6381_v32  ;;  %v597_v32 = vld [vmem:[%s9831_s3] ss:$8 sm:$0x3] }
 0x10c   : > { %v6374_v3 = vpop.permute.xlu1 %852  ;;  %v6386_v63 = vpop.permute.xlu0 %971 }
 0x10d   : > { %10237 = vst [vmem:[#allocation35_spill] sm:$0xff] %v6374_v3  ;;  %2216 = vperm.xlu1 %5783, %v6267_v53   ;;  %10242 = vst [vmem:[#allocation39_spill] sm:$0xff] %v6386_v63  ;;  %v586_v3 = vlaneseq }
 0x10f   : > { %v600_v44 = vshrl.u32 %v586_v3, 7  ;;  %v6394_v5 = vand.u32 127, %v586_v3 }
 0x110   : > { %v6379_v18 = vpop.permute.xlu1 %895  ;;  %v6392_v50 = vpop.permute.xlu0 %1043 }
 0x111   : > { %10238 = vst [vmem:[#allocation36_spill] sm:$0xff] %v6379_v18  ;;  %5786 = vset.pattern.permute.xlu1 %v10240_v0  ;;  %10245 = vst [vmem:[#allocation42_spill] sm:$0xff] %v6392_v50  ;;  %v6398_v18 = vsub.s32 0, %v600_v44  ;;  %v6403_v0 = vsub.s32 1, %v600_v44  ;;  %vm588_vm0 = vcmp.lt.s32.totalorder %v6394_v5, 17  ;;  %vm665_vm1 = vcmp.lt.s32.totalorder %v6394_v5, 16 }
 0x112   : > { %10246 = vst [vmem:[#allocation43_spill] sm:$0xff] %v6394_v5  ;;  %vm743_vm2 = vcmp.lt.s32.totalorder %v6394_v5, 15  ;;  %v591_v2 = vsel %vm588_vm0, %v6176_v28, %v6183_v30  ;;  %v669_v59 = vsel %vm665_vm1, %v6192_v33, %v6200_v35  ;;  %vm821_vm3 = vcmp.lt.s32.totalorder %v6394_v5, 1 }
 0x113   : > { %10248 = vst [vmem:[#allocation45_spill] sm:$0xff] %v6398_v18  ;;  %10249 = vst [vmem:[#allocation46_spill] sm:$0xff] %v6403_v0  ;;  %v6414_v50 = vrot.slane %v597_v32, %v6398_v18  ;;  %v6420_v44 = vrot.slane %v597_v32, %v6403_v0  ;;  %v5695_v32 = vld [vmem:[%s9831_s3 + $0x3] ss:$8 sm:$0x3]  ;;  %vm899_vm4 = vcmp.lt.s32.totalorder %v6394_v5, 127 }
 0x114   : > { %v6384_v61 = vpop.permute.xlu1 %967  ;;  %v6406_v63 = vpop.permute.xlu0 %1090  ;;  %v6476_v10 = vrot.slane %v5695_v32, %v6403_v0  ;;  %vm977_vm5 = vcmp.lt.s32.totalorder %v6394_v5, 113  ;;  %vm1055_vm6 = vcmp.lt.s32.totalorder %v6394_v5, 112  ;;  %vm1133_vm7 = vcmp.lt.s32.totalorder %v6394_v5, 111 }
 0x115   : > { %10241 = vst [vmem:[#allocation38_spill] sm:$0xff] %v6384_v61  ;;  %10250 = vst [vmem:[#allocation47_spill] sm:$0xff] %v6406_v63  ;;  %v596_v63 = vsel %vm588_vm0, %v6158_v24, %v6151_v22  ;;  %v595_v61 = vsel %vm588_vm0, %v6183_v30, %v6176_v28  ;;  %v6479_v28 = vrot.slane %v5696_v54, %v6398_v18 }
 0x116   : > { %v615_v15 = vmul.f32 %v6414_v50, %v596_v63  ;;  %v6473_v63 = vrot.slane %v5695_v32, %v6398_v18  ;;  %10254 = vst [vmem:[#allocation51_spill] sm:$0xff] %v6476_v10  ;;  %v566_v30 = vmul.f32 %v6143_v20, %v6025_v8  ;;  %v614_v32 = vmul.f32 %v6420_v44, %v591_v2  ;;  %v5697_v8 = vld [vmem:[%s9831_s3 + $0x5] ss:$8 sm:$0x3] }
 0x117   : > { %10255 = vst [vmem:[#allocation52_spill] sm:$0xff] %v6479_v28  ;;  %v569_v20 = vmul.f32 %v6145_v21, %v6016_v6 }
 0x118   : > { %v6388_v57 = vpop.permute.xlu1 %1016  ;;  %v6469_v7 = vpop.permute.xlu0 %1131  ;;  %v639_v2 = vmul.f32 %v6162_v25, %v615_v15  ;;  %v668_v15 = vsel %vm665_vm1, %v6231_v43, %v6241_v46 }
 0x119   : > { %10243 = vst [vmem:[#allocation40_spill] sm:$0xff] %v6388_v57  ;;  %v5693_v57 = vld [vmem:[%s9831_s3 + $0x1] ss:$8 sm:$0x3]  ;;  %10253 = vst [vmem:[#allocation50_spill] sm:$0xff] %v6469_v7 }
 0x11a   : > { %v6435_v60 = vrot.slane %v5693_v57, %v6403_v0 }
 0x11c   : > { %v6390_v12 = vpop.permute.xlu1 %805  ;;  %v694_v28 = vmul.f32 %v6435_v60, %v669_v59  ;;  %v590_v59 = vsel %vm588_vm0, %v6185_v31, %v6224_v41 }
 0x11d   : > { %10244 = vst [vmem:[#allocation41_spill] sm:$0xff] %v6390_v12  ;;  %v6432_v12 = vrot.slane %v5693_v57, %v6398_v18  ;;  %v612_v9 = vmul.f32 %v6420_v44, %v590_v59 }
 0x120   : > { %v6396_v53 = vpop.permute.xlu1 %813 }
 0x121   : > { %10247 = vst [vmem:[#allocation44_spill] sm:$0xff] %v6396_v53  ;;  %v5694_v53 = vld [vmem:[%s9831_s3 + $0x2] ss:$8 sm:$0x3] }
 0x124   : > { %v6411_v3 = vpop.permute.xlu1 %893 }
 0x125   : > { %10251 = vst [vmem:[#allocation48_spill] sm:$0xff] %v6411_v3  ;;  %v592_v3 = vsel %vm588_vm0, %v6151_v22, %v6158_v24  ;;  %v6449_v22 = vrot.slane %v5694_v53, %v6398_v18  ;;  %v6452_v24 = vrot.slane %v5694_v53, %v6403_v0  ;;  %v673_v53 = vsel %vm665_vm1, %v6200_v35, %v6192_v33 }
 0x126   : > { %v613_v33 = vmul.f32 %v6414_v50, %v595_v61  ;;  %v6487_v35 = vrot.slane %v5696_v54, %v6403_v0  ;;  %v693_v7 = vmul.f32 %v6432_v12, %v673_v53  ;;  %v564_v54 = vmul.f32 %v6153_v23, %v6035_v11 }
 0x127   : > { %v565_v61 = vmul.f32 %v6153_v23, %v6059_v13 }
 0x128   : > { %v6454_v57 = vpop.permute.xlu1 %965  ;;  %v637_v23 = vmul.f32 %v6171_v27, %v613_v33  ;;  %v717_v11 = vmul.f32 %v6169_v26, %v693_v7  ;;  %v718_v33 = vmul.f32 %v6169_v26, %v694_v28  ;;  %v692_v28 = vmul.f32 %v6435_v60, %v668_v15 }
 0x129   : > { %10252 = vst [vmem:[#allocation49_spill] sm:$0xff] %v6454_v57  ;;  %v616_v57 = vmul.f32 %v6420_v44, %v592_v3  ;;  %v568_v3 = vmul.f32 %v6145_v21, %v6009_v4  ;;  %v594_v21 = vsel %vm588_vm0, %v6224_v41, %v6185_v31  ;;  %v6531_v31 = vpop.permute.xlu0 %961  ;;  %v638_v41 = vmul.f32 %v6171_v27, %v614_v32 }
 0x12a   : > { %v611_v13 = vmul.f32 %v6414_v50, %v594_v21  ;;  %v6547_v27 = vrot.slane %v5697_v8, %v6403_v0  ;;  %v636_v15 = vmul.f32 %v6178_v29, %v612_v9 }
 0x12b   : > { %v640_v53 = vmul.f32 %v6162_v25, %v616_v57  ;;  %v751_v25 = vsel %vm743_vm2, %v6258_v51, %v6248_v48  ;;  %v6529_v57 = vrot.slane %v5697_v8, %v6398_v18  ;;  %v647_v7 = vadd.f32 %v639_v2, %v568_v3 }
 0x12c   : > { %v6497_v10 = vpop.permute.xlu1 %973  ;;  %v771_v32 = vmul.f32 %v6449_v22, %v751_v25  ;;  %v671_v8 = vsel %vm665_vm1, %v6238_v45, %v6284_v58  ;;  %v645_v3 = vadd.f32 %v637_v23, %v566_v30  ;;  %v635_v21 = vmul.f32 %v6178_v29, %v611_v13 }
 0x12d   : > { %10256 = vst [vmem:[#allocation53_spill] sm:$0xff] %v6497_v10  ;;  %v672_v10 = vsel %vm665_vm1, %v6241_v46, %v6231_v43  ;;  %v747_v43 = vsel %vm743_vm2, %v6248_v48, %v6258_v51  ;;  %v648_v26 = vadd.f32 %v640_v53, %v569_v20  ;;  %v589_v51 = vsel %vm588_vm0, %v6276_v56, %v6228_v42 }
 0x12e   : > { %v691_v4 = vmul.f32 %v6432_v12, %v672_v10  ;;  %v772_v48 = vmul.f32 %v6452_v24, %v747_v43  ;;  %v593_v10 = vsel %vm588_vm0, %v6228_v42, %v6276_v56  ;;  %v646_v20 = vadd.f32 %v638_v41, %v567_v17  ;;  %v6577_v17 = vpop.permute.xlu0 %1041 }
 0x12f   : > { %v725_v2 = vadd.f32 %v717_v11, %v647_v7  ;;  %v726_v53 = vadd.f32 %v718_v33, %v648_v26  ;;  %v667_v42 = vsel %vm665_vm1, %v6284_v58, %v6238_v45  ;;  %v5698_v11 = vld [vmem:[%s9831_s3 + $0x6] ss:$8 sm:$0x3]  ;;  %v609_v56 = vmul.f32 %v6414_v50, %v593_v10 }
 0x130   : > { %v6540_v46 = vpop.permute.xlu1 %1045  ;;  %v715_v25 = vmul.f32 %v6202_v36, %v691_v4  ;;  %v610_v13 = vmul.f32 %v6420_v44, %v589_v51  ;;  %v689_v9 = vmul.f32 %v6432_v12, %v671_v8  ;;  %v750_v4 = vsel %vm743_vm2, %v6295_v62, %v6244_v47 }
 0x131   : > { %v562_v29 = vmul.f32 %v6216_v39, %v6087_v16  ;;  %v716_v45 = vmul.f32 %v6202_v36, %v692_v28  ;;  %v795_v58 = vmul.f32 %v6207_v37, %v771_v32  ;;  %v796_v30 = vmul.f32 %v6207_v37, %v772_v48  ;;  %v5699_v36 = vld [vmem:[%s9831_s3 + $0x7] ss:$8 sm:$0x3] }
 0x132   : > { %v563_v50 = vmul.f32 %v6216_v39, %v6063_v14  ;;  %v690_v44 = vmul.f32 %v6435_v60, %v667_v42  ;;  %v6596_v23 = vrot.slane %v5698_v11, %v6398_v18  ;;  %v6599_v41 = vrot.slane %v5698_v11, %v6403_v0 }
 0x133   : > { %v643_v37 = vadd.f32 %v635_v21, %v564_v54  ;;  %v644_v43 = vadd.f32 %v636_v15, %v565_v61  ;;  %v723_v7 = vadd.f32 %v715_v25, %v645_v3  ;;  %v769_v39 = vmul.f32 %v6449_v22, %v750_v4  ;;  %v6617_v61 = vpop.permute.xlu0 %1086  ;;  %v10257_v25 = vld [vmem:[#allocation21_spill] sm:$0xff]  ;;  %v10259_v4 = vld [vmem:[#allocation23_spill] sm:$0xff] }
 0x134   : > { %v6564_v59 = vpop.permute.xlu1 %1053  ;;  %v633_v26 = vmul.f32 %v6194_v34, %v609_v56  ;;  %v634_v28 = vmul.f32 %v6194_v34, %v610_v13  ;;  %v713_v32 = vmul.f32 %v6209_v38, %v689_v9  ;;  %v746_v48 = vsel %vm743_vm2, %v6244_v47, %v6295_v62  ;;  %v10258_v56 = vld [vmem:[#allocation51_spill] sm:$0xff] }
 0x135   : > { %v724_v51 = vadd.f32 %v716_v45, %v646_v20  ;;  %v803_v10 = vadd.f32 %v795_v58, %v725_v2  ;;  %v6615_v54 = vadd.f32 %v796_v30, %v726_v53  ;;  %v6620_v8 = vrot.slane %v5699_v36, %v6398_v18  ;;  %v10260_v45 = vld [vmem:[#allocation25_spill] sm:$0xff]  ;;  %v10261_v30 = vld [vmem:[#allocation28_spill] sm:$0xff] }
 0x136   : > { %v714_v34 = vmul.f32 %v6209_v38, %v690_v44  ;;  %v825_v3 = vsel %vm821_vm3, %v6301_v1, %v6262_v52  ;;  %v829_v47 = vsel %vm821_vm3, %v6262_v52, %v6301_v1  ;;  %v6634_v20 = vrot.slane %v5699_v36, %v6403_v0 }
 0x137   : > { %v770_v2 = vmul.f32 %v6452_v24, %v746_v48  ;;  %v793_v53 = vmul.f32 %v6220_v40, %v769_v39  ;;  %v666_v38 = vsel %vm665_vm1, %v6313_v49, %v6318_v19  ;;  %v670_v21 = vsel %vm665_vm1, %v6318_v19, %v6313_v49  ;;  %v6660_v49 = vpop.permute.xlu0 %1129 }
 0x138   : > { %v6601_v33 = vpop.permute.xlu1 %1176  ;;  %v641_v52 = vadd.f32 %v633_v26, %v562_v29  ;;  %v642_v1 = vadd.f32 %v634_v28, %v563_v50  ;;  %v721_v15 = vadd.f32 %v713_v32, %v643_v37  ;;  %v749_v42 = vsel %vm743_vm2, %v10257_v25, %v6274_v55  ;;  %v10262_v50 = vld [vmem:[#allocation26_spill] sm:$0xff] }
 0x139   : > { %v849_v11 = vmul.f32 %v6473_v63, %v829_v47  ;;  %v850_v13 = vmul.f32 %v10258_v56, %v825_v3  ;;  %v745_v9 = vsel %vm743_vm2, %v6274_v55, %v10257_v25  ;;  %v828_v19 = vsel %vm821_vm3, %v10260_v45, %v10259_v4  ;;  %v10265_v3 = vld [vmem:[#allocation38_spill] sm:$0xff]  ;;  %v10267_v25 = vld [vmem:[#allocation13_spill] sm:$0xff] }
 0x13a   : > { %v687_v29 = vmul.f32 %v6432_v12, %v670_v21  ;;  %v688_v58 = vmul.f32 %v6435_v60, %v666_v38  ;;  %v903_v44 = vsel %vm899_vm4, %v10262_v50, %v10261_v30  ;;  %v907_v55 = vsel %vm899_vm4, %v10261_v30, %v10262_v50 }
 0x13b   : > { %v722_v37 = vadd.f32 %v714_v34, %v644_v43  ;;  %v794_v39 = vmul.f32 %v6220_v40, %v770_v2  ;;  %v801_v26 = vadd.f32 %v793_v53, %v723_v7  ;;  %v767_v12 = vmul.f32 %v6449_v22, %v749_v42  ;;  %v1251_v43 = vld [vmem:[%s9832_s4] sm:$0xff]  ;;  %v10263_v40 = vld [vmem:[#allocation52_spill] sm:$0xff]  ;;  %v10264_v34 = vld [vmem:[#allocation22_spill] sm:$0xff]  ;;  %v6711_v50 = vpop.permute.xlu0 %1119 }
 0x13c   : > { %v6631_v62 = vpop.permute.xlu1 %883  ;;  %v768_v60 = vmul.f32 %v6452_v24, %v745_v9  ;;  %v824_v28 = vsel %vm821_vm3, %v10259_v4, %v10260_v45  ;;  %v847_v32 = vmul.f32 %v6473_v63, %v828_v19  ;;  %v927_v7 = vmul.f32 %v10263_v40, %v903_v44  ;;  %v10266_v53 = vld [vmem:[#allocation10_spill] sm:$0xff]  ;;  %v10268_v45 = vld [vmem:[#allocation8_spill] sm:$0xff] }
 0x13d   : > { %v928_v48 = vmul.f32 %v6487_v35, %v907_v55  ;;  %v981_v47 = vsel %vm977_vm5, %v10265_v3, %v10264_v34  ;;  %v985_v2 = vsel %vm977_vm5, %v10264_v34, %v10265_v3  ;;  %v873_v38 = vmul.f32 %v10266_v53, %v849_v11  ;;  %v10269_v34 = vld [vmem:[#allocation17_spill] sm:$0xff] }
 0x13e   : > { %v874_v21 = vmul.f32 %v10266_v53, %v850_v13  ;;  %v711_v42 = vmul.f32 %v10267_v25, %v687_v29  ;;  %v712_v9 = vmul.f32 %v10267_v25, %v688_v58  ;;  %v791_v19 = vmul.f32 %v10268_v45, %v767_v12  ;;  %v10270_v53 = vld [vmem:[#allocation14_spill] sm:$0xff] }
 0x13f   : > { %v1059_v30 = vsel %vm1055_vm6, %v6540_v46, %v6564_v59  ;;  %v1063_v11 = vsel %vm1055_vm6, %v6564_v59, %v6540_v46  ;;  %v1297_v13 = vsel %vm1295_vm8, %v1251_v43, 0  ;;  %v792_v29 = vmul.f32 %v10268_v45, %v768_v60 }
 0x140   : > { %v6672_v36 = vpop.permute.xlu1 %963  ;;  %v848_v58 = vmul.f32 %v10258_v56, %v824_v28  ;;  %v1005_v44 = vmul.f32 %v6529_v57, %v981_v47  ;;  %v1006_v55 = vmul.f32 %v6547_v27, %v985_v2  ;;  %v802_v12 = vadd.f32 %v794_v39, %v724_v51 }
 0x141   : > { %v871_v3 = vmul.f32 %v10269_v34, %v847_v32  ;;  %v951_v25 = vmul.f32 %v10270_v53, %v927_v7  ;;  %v952_v0 = vmul.f32 %v10270_v53, %v928_v48  ;;  %v881_v46 = vadd.f32 %v873_v38, %v803_v10  ;;  %v10272_v7 = vld [vmem:[#allocation30_spill] sm:$0xff] }
 0x142   : > { %v1083_v59 = vmul.f32 %v6596_v23, %v1059_v30  ;;  %v1084_v43 = vmul.f32 %v6599_v41, %v1063_v11  ;;  %v6725_v60 = vand.u32 4294901760, %v1297_v13  ;;  %v882_v28 = vadd.f32 %v874_v21, %v6615_v54  ;;  %v6741_v11 = vpop.permute.xlu0 %1164  ;;  %v10276_v21 = vld [vmem:[#allocation3_spill] sm:$0xff] }
 0x143   : > { %v6728_v47 = vadd.f32 %v711_v42, %v641_v52  ;;  %v6730_v51 = vadd.f32 %v712_v9, %v642_v1  ;;  %v6732_v39 = vadd.f32 %v791_v19, %v721_v15  ;;  %v6734_v32 = vadd.f32 %v792_v29, %v722_v37  ;;  %10273 = vst [vmem:[#allocation51_spill] sm:$0xff] %v6741_v11  ;;  %v10275_v52 = vld [vmem:[#allocation32_spill] sm:$0xff]  ;;  %v10280_v19 = vld [vmem:[#allocation31_spill] sm:$0xff] }
 0x144   : > { %v6700_v4 = vpop.permute.xlu1 %1008  ;;  %10271 = vst [vmem:[#allocation21_spill] sm:$0xff] %v6725_v60  ;;  %v872_v10 = vmul.f32 %v10269_v34, %v848_v58  ;;  %v1029_v48 = vmul.f32 %v10272_v7, %v1005_v44  ;;  %v1030_v2 = vmul.f32 %v10272_v7, %v1006_v55  ;;  %v6739_v38 = vadd.f32 %v871_v3, %v801_v26  ;;  %v10279_v26 = vld [vmem:[#allocation16_spill] sm:$0xff]  ;;  %v10281_v58 = vld [vmem:[#allocation50_spill] sm:$0xff] }
 0x145   : > { %v959_v45 = vadd.f32 %v951_v25, %v881_v46  ;;  %v960_v30 = vadd.f32 %v952_v0, %v882_v28  ;;  %v6744_v54 = vand.u32 4294901760, %v6016_v6  ;;  %v1107_v1 = vmul.f32 %v10275_v52, %v1083_v59  ;;  %v1272_v25 = vld [vmem:[%s9833_s5 + $0x8] sm:$0xff]  ;;  %v6776_v46 = vld [vmem:[%s9834_s6 + $0x10] sm:$0xff] }
 0x146   : > { %v1108_v15 = vmul.f32 %v10275_v52, %v1084_v43  ;;  %v6749_v42 = vand.u32 4294901760, %v10276_v21  ;;  %v6752_v9 = vsub.f32 %v1297_v13, %v6725_v60  ;;  %v744_v0 = vsel %vm743_vm2, %v10280_v19, %v10279_v26  ;;  %10282 = vst [vmem:[#allocation26_spill] sm:$0xff] %v6776_v46  ;;  %v10283_v43 = vld [vmem:[#allocation5_spill] sm:$0xff]  ;;  %v10285_v7 = vld [vmem:[#allocation4_spill] sm:$0xff]  ;;  %1282 = vperm.xlu0 %5785, %v1272_v25  }
 0x147   : > { %10274 = vst [vmem:[#allocation23_spill] sm:$0xff] %v6744_v54  ;;  %v748_v29 = vsel %vm743_vm2, %v10279_v26, %v10280_v19  ;;  %v1037_v13 = vadd.f32 %v1029_v48, %v959_v45  ;;  %v1038_v34 = vadd.f32 %v1030_v2, %v960_v30  ;;  %v6778_v59 = vadd.f32 %v872_v10, %v802_v12  ;;  %v1225_v19 = vpop.permute.xlu0 %1224 }
 0x148   : > { %v6723_v18 = vpop.permute.xlu1 %1051  ;;  %10277 = vst [vmem:[#allocation25_spill] sm:$0xff] %v6749_v42  ;;  %10278 = vst [vmem:[#allocation28_spill] sm:$0xff] %v6752_v9  ;;  %v6781_v28 = vand.u32 4294901760, %v10283_v43  ;;  %v6784_v48 = vand.u32 4294901760, %v10285_v7  ;;  %v6788_v2 = vsub.f32 %v6016_v6, %v6744_v54  ;;  %2142 = vperm.xlu1 %5786, %v6776_v46   ;;  %v766_v26 = vmul.f32 %v6452_v24, %v744_v0  ;;  %v10295_v0 = vld [vmem:[#allocation36_spill] sm:$0xff] }
 0x149   : > { %v1115_v45 = vadd.f32 %v1107_v1, %v1037_v13  ;;  %v1116_v30 = vadd.f32 %v1108_v15, %v1038_v34  ;;  %v6802_v6 = vsub.f32 %v10276_v21, %v6749_v42  ;;  %v10293_v34 = vld [vmem:[#allocation18_spill] sm:$0xff]  ;;  %v10296_v21 = vld [vmem:[#allocation19_spill] sm:$0xff]  ;;  %v10298_v25 = vmov 1  }
 0x14a   : > { %10284 = vst [vmem:[#allocation52_spill] sm:$0xff] %v6781_v28  ;;  %10286 = vst [vmem:[#allocation22_spill] sm:$0xff] %v6784_v48  ;;  %2212 = vperm.xlu0 %5785, %v6776_v46   ;;  %v6839_v60 = vsub.f32 %v10283_v43, %v6781_v28 }
 0x14b   : > { %10287 = vst [vmem:[#allocation38_spill] sm:$0xff] %v6788_v2  ;;  %10290 = vst [vmem:[#allocation13_spill] sm:$0xff] %v6802_v6 }
 0x14c   : > { %v1124_v37 = vpop.permute.xlu1 %1123  ;;  %5787 = vset.pattern.permute.xlu1 %v10298_v25  ;;  %10303 = vst [vmem:[#allocation14_spill] sm:$0xff] %v6839_v60 }
 0x14d   : > { %v1137_v44 = vsel %vm1133_vm7, %v1124_v37, %v10281_v58  ;;  %v1141_v55 = vsel %vm1133_vm7, %v10281_v58, %v1124_v37  ;;  %v765_v37 = vmul.f32 %v6449_v22, %v748_v29  ;;  %v10288_v58 = vld [vmem:[#allocation7_spill] sm:$0xff]  ;;  %v902_v29 = vsel %vm899_vm4, %v10296_v21, %v10295_v0 }
 0x14e   : > { %v1161_v3 = vmul.f32 %v6620_v8, %v1137_v44  ;;  %v1162_v53 = vmul.f32 %v6634_v20, %v1141_v55  ;;  %v6798_v44 = vand.u32 4294901760, %v10288_v58  ;;  %v10291_v55 = vld [vmem:[#allocation6_spill] sm:$0xff] }
 0x14f   : > { %v6805_v13 = vand.u32 4294901760, %v10291_v55  ;;  %v906_v55 = vsel %vm899_vm4, %v10295_v0, %v10296_v21  ;;  %v925_v0 = vmul.f32 %v10263_v40, %v902_v29  ;;  %v10307_v29 = vand.u32 4294901760, %v6752_v9 }
 0x150   : > { %v1185_v52 = vmul.f32 %v6601_v33, %v1161_v3  ;;  %v1186_v12 = vmul.f32 %v6601_v33, %v1162_v53  ;;  %v6793_v10 = vpop.permute.xlu1 %1172  ;;  %10289 = vst [vmem:[#allocation10_spill] sm:$0xff] %v6798_v44  ;;  %v10294_v3 = vld [vmem:[#allocation33_spill] sm:$0xff]  ;;  %v6821_v53 = vand.u32 4294901760, %v6788_v2 }
 0x151   : > { %10292 = vst [vmem:[#allocation8_spill] sm:$0xff] %v6805_v13  ;;  %v823_v22 = vsel %vm821_vm3, %v10294_v3, %v10293_v34  ;;  %v827_v24 = vsel %vm821_vm3, %v10293_v34, %v10294_v3  ;;  %v10301_v34 = vld [vmem:[#allocation41_spill] sm:$0xff]  ;;  %v10302_v3 = vld [vmem:[#allocation44_spill] sm:$0xff] }
 0x152   : > { %v1193_v1 = vadd.f32 %v1185_v52, %v1115_v45  ;;  %v1194_v15 = vadd.f32 %v1186_v12, %v1116_v30  ;;  %10297 = vst [vmem:[#allocation17_spill] sm:$0xff] %v6821_v53  ;;  %v10299_v52 = vld [vmem:[#allocation9_spill] sm:$0xff]  ;;  %v10300_v12 = vld [vmem:[#allocation11_spill] sm:$0xff]  ;;  %v826_v33 = vsel %vm821_vm3, %v10302_v3, %v10301_v34  ;;  %v846_v42 = vmul.f32 %v10258_v56, %v823_v22  ;;  %v6846_v13 = vld [vmem:[%s9834_s6 + $0x8] sm:$0xff] }
 0x153   : > { %2294 = vperm.xlu1 %5787, %v10299_v52   ;;  %v789_v58 = vmul.f32 %v10300_v12, %v765_v37  ;;  %10304 = vst [vmem:[#allocation30_spill] sm:$0xff] %v6846_v13  ;;  %v822_v21 = vsel %vm821_vm3, %v10301_v34, %v10302_v3  ;;  %2208 = vperm.xlu0 %5785, %v6846_v13  }
 0x154   : > { %vm1205_vm9 = vcmp.ge.f32.partialorder %v1193_v1, 0.0  ;;  %vm1206_vm10 = vcmp.ge.f32.partialorder %v1194_v15, 0.0  ;;  %v1233_v7 = vmul.f32 %v1225_v19, %v1193_v1  ;;  %v1234_v45 = vmul.f32 %v1225_v19, %v1194_v15  ;;  %v6825_v30 = vpop.permute.xlu1 %969 }
 0x155   : > { %v845_v19 = vmul.f32 %v6473_v63, %v827_v24  ;;  %v843_v22 = vmul.f32 %v6473_v63, %v826_v33  ;;  %v797_v34 = vadd.f32 %v789_v58, %v6728_v47  ;;  %v10312_v33 = vld [vmem:[#allocation12_spill] sm:$0xff]  ;;  %v10319_v63 = vld [vmem:[#allocation53_spill] sm:$0xff] }
 0x156   : > { %v1241_v54 = vsel %vm1205_vm9, %v1193_v1, %v1233_v7  ;;  %v1242_v37 = vsel %vm1206_vm10, %v1194_v15, %v1234_v45  ;;  %v790_v1 = vmul.f32 %v10300_v12, %v766_v26  ;;  %v926_v15 = vmul.f32 %v6487_v35, %v906_v55 }
 0x157   : > { %v6853_v43 = vand.u32 4294901760, %v1242_v37  ;;  %v6855_v28 = vand.u32 4294901760, %v1241_v54  ;;  %v6866_v7 = vsub.f32 %v6752_v9, %v10307_v29  ;;  %v10309_v45 = vmov 4   ;;  %v10313_v9 = vld [vmem:[#allocation48_spill] sm:$0xff]  ;;  %5792 = vset.pattern.permute.xlu0 %v10298_v25 }
 0x158   : > { %v6861_v24 = vpop.permute.xlu1 %1049  ;;  %5788 = vset.pattern.permute.xlu1 %v10309_v45  ;;  %v869_v12 = vmul.f32 %v10312_v33, %v845_v19  ;;  %v870_v55 = vmul.f32 %v10312_v33, %v846_v42  ;;  %v844_v29 = vmul.f32 %v10258_v56, %v822_v21  ;;  %v798_v56 = vadd.f32 %v790_v1, %v6730_v51 }
 0x159   : > { %10305 = vst [vmem:[#allocation32_spill] sm:$0xff] %v6853_v43  ;;  %10306 = vst [vmem:[#allocation3_spill] sm:$0xff] %v6855_v28  ;;  %v6871_v3 = vsub.f32 %v1242_v37, %v6853_v43  ;;  %v6874_v26 = vsub.f32 %v1241_v54, %v6855_v28  ;;  %1325 = vmatprep.subr.mxu0 %v6853_v43  ;;  %v10315_v54 = vld [vmem:[#allocation15_spill] sm:$0xff]  ;;  %2137 = vperm.xlu1 %5788, %v6846_v13  }
 0x15a   : > { %10308 = vst [vmem:[#allocation16_spill] sm:$0xff] %v6866_v7  ;;  %v10314_v7 = vld [vmem:[#allocation24_spill] sm:$0xff]  ;;  %1327 = vmatpush1.msra.mxu0 %v6855_v28  ;;  %v949_v58 = vmul.f32 %v10315_v54, %v925_v0  ;;  %v950_v21 = vmul.f32 %v10315_v54, %v926_v15  ;;  %v10318_v0 = vld [vmem:[#allocation35_spill] sm:$0xff]  ;;  %v10320_v28 = vld [vmem:[#allocation49_spill] sm:$0xff]  ;;  %2286 = vperm.xlu0 %5792, %v6846_v13  }
 0x15b   : > { %10310 = vst [vmem:[#allocation31_spill] sm:$0xff] %v6871_v3  ;;  %10311 = vst [vmem:[#allocation50_spill] sm:$0xff] %v6874_v26  ;;  %v901_v47 = vsel %vm899_vm4, %v10314_v7, %v10313_v9  ;;  %v905_v37 = vsel %vm899_vm4, %v10313_v9, %v10314_v7  ;;  %v6893_v19 = vand.u32 4294901760, %v6871_v3  ;;  %v6896_v42 = vand.u32 4294901760, %v6874_v26 }
 0x15c   : > { %v867_v33 = vmul.f32 %v10318_v0, %v843_v22  ;;  %v980_v9 = vsel %vm977_vm5, %v10320_v28, %v10319_v63  ;;  %v1122_v7 = vpop.permute.xlu1 %1121  ;;  %v923_v43 = vmul.f32 %v10263_v40, %v901_v47  ;;  %v984_v53 = vsel %vm977_vm5, %v10319_v63, %v10320_v28 }
 0x15d   : > { %10316 = vst [vmem:[#allocation5_spill] sm:$0xff] %v6893_v19  ;;  %10317 = vst [vmem:[#allocation4_spill] sm:$0xff] %v6896_v42  ;;  %v1452_v51 = vsub.f32 %v6871_v3, %v6893_v19  ;;  %v1458_v1 = vsub.f32 %v6874_v26, %v6896_v42  ;;  %v877_v15 = vadd.f32 %v869_v12, %v6732_v39  ;;  %5789 = vset.pattern.permute.xlu1 %v10298_v25  ;;  %v10323_v39 = vld [vmem:[#allocation42_spill] sm:$0xff] }
 0x15e   : > { %v878_v22 = vadd.f32 %v870_v55, %v6734_v32  ;;  %v868_v54 = vmul.f32 %v10318_v0, %v844_v29  ;;  %v924_v2 = vmul.f32 %v6487_v35, %v905_v37  ;;  %v957_v47 = vadd.f32 %v949_v58, %v6739_v38  ;;  %2290 = vperm.xlu1 %5789, %v6776_v46   ;;  %v10326_v37 = vld [vmem:[#allocation20_spill] sm:$0xff] }
 0x15f   : > { %v1003_v44 = vmul.f32 %v6529_v57, %v980_v9  ;;  %v6923_v11 = vand.u32 4294901760, %v1452_v51  ;;  %v6925_v28 = vand.u32 4294901760, %v1458_v1  ;;  %v1004_v63 = vmul.f32 %v6547_v27, %v984_v53  ;;  %v10328_v1 = vld [vmem:[#allocation37_spill] sm:$0xff] }
 0x160   : > { %v1058_v32 = vsel %vm1055_vm6, %v10323_v39, %v6723_v18  ;;  %v1062_v38 = vsel %vm1055_vm6, %v6723_v18, %v10323_v39  ;;  %v6937_v12 = vpop.permute.xlu1 %1168  ;;  %v6940_v55 = vand.u32 4294901760, %v6802_v6  ;;  %v10325_v29 = vmov 2   ;;  %v10330_v39 = vld [vmem:[#allocation39_spill] sm:$0xff] }
 0x161   : > { %10321 = vst [vmem:[#allocation7_spill] sm:$0xff] %v6923_v11  ;;  %10322 = vst [vmem:[#allocation6_spill] sm:$0xff] %v6925_v28  ;;  %5793 = vset.pattern.permute.xlu0 %v10325_v29  ;;  %v958_v53 = vadd.f32 %v950_v21, %v6778_v59  ;;  %v6945_v58 = vadd.f32 %v867_v33, %v797_v34  ;;  %v947_v0 = vmul.f32 %v10326_v37, %v923_v43  ;;  %v10375_v29 = vld [vmem:[#allocation52_spill] sm:$0xff] }
 0x162   : > { %10324 = vst [vmem:[#allocation18_spill] sm:$0xff] %v6940_v55  ;;  %1454 = vmatprep.subr.mxu1 %v6923_v11  ;;  %v6950_v9 = vand.u32 4294901760, %v6063_v14  ;;  %2372 = vperm.xlu0 %5793, %v10299_v52   ;;  %v6953_v18 = vadd.f32 %v868_v54, %v798_v56  ;;  %v948_v51 = vmul.f32 %v10326_v37, %v924_v2  ;;  %v6968_v14 = vld [vmem:[%s9834_s6] sm:$0xff] }
 0x163   : > { %v900_v59 = vsel %vm899_vm4, %v6631_v62, %v10328_v1  ;;  %v904_v43 = vsel %vm899_vm4, %v10328_v1, %v6631_v62  ;;  %1460 = vmatpush1.msra.mxu1 %v6925_v28  ;;  %v1081_v34 = vmul.f32 %v6596_v23, %v1058_v32  ;;  %v1082_v2 = vmul.f32 %v6599_v41, %v1062_v38  ;;  %v10329_v62 = vld [vmem:[#allocation40_spill] sm:$0xff] }
 0x164   : > { %10327 = vst [vmem:[#allocation33_spill] sm:$0xff] %v6950_v9  ;;  %v1136_v56 = vsel %vm1133_vm7, %v1122_v7, %v6660_v49  ;;  %v1140_v21 = vsel %vm1133_vm7, %v6660_v49, %v1122_v7  ;;  %v1027_v33 = vmul.f32 %v10329_v62, %v1003_v44  ;;  %v1028_v54 = vmul.f32 %v10329_v62, %v1004_v63  ;;  %v1040_v38 = vpop.permute.xlu1 %1039 }
 0x165   : > { %v979_v37 = vsel %vm977_vm5, %v6672_v36, %v10330_v39  ;;  %v983_v32 = vsel %vm977_vm5, %v10330_v39, %v6672_v36  ;;  %5790 = vset.pattern.permute.xlu1 %v10309_v45  ;;  %v955_v1 = vadd.f32 %v947_v0, %v877_v15  ;;  %v921_v49 = vmul.f32 %v10263_v40, %v900_v59  ;;  %v10332_v0 = vld [vmem:[#allocation34_spill] sm:$0xff] }
 0x166   : > { %v922_v44 = vmul.f32 %v6487_v35, %v904_v43  ;;  %v6992_v7 = vand.u32 4294901760, %v6087_v16  ;;  %2132 = vperm.xlu1 %5790, %v6968_v14   ;;  %2368 = vperm.xlu0 %5793, %v6776_v46   ;;  %v1057_v36 = vsel %vm1055_vm6, %v6577_v17, %v6861_v24  ;;  %v1061_v15 = vsel %vm1055_vm6, %v6861_v24, %v6577_v17 }
 0x167   : > { %v1159_v40 = vmul.f32 %v6620_v8, %v1136_v56  ;;  %v1160_v35 = vmul.f32 %v6634_v20, %v1140_v21  ;;  %v1001_v16 = vmul.f32 %v6529_v57, %v979_v37  ;;  %v1002_v63 = vmul.f32 %v6547_v27, %v983_v32 }
 0x168   : > { %10331 = vst [vmem:[#allocation36_spill] sm:$0xff] %v6992_v7  ;;  %v1105_v59 = vmul.f32 %v10332_v0, %v1081_v34  ;;  %v1106_v43 = vmul.f32 %v10332_v0, %v1082_v2  ;;  %v956_v62 = vadd.f32 %v948_v51, %v878_v22  ;;  %v1035_v39 = vadd.f32 %v1027_v33, %v957_v47  ;;  %v1048_v24 = vpop.permute.xlu1 %1047  ;;  %v10335_v47 = vld [vmem:[#allocation27_spill] sm:$0xff] }
 0x169   : > { %v1036_v28 = vadd.f32 %v1028_v54, %v958_v53  ;;  %v978_v17 = vsel %vm977_vm5, %v6531_v31, %v6825_v30  ;;  %v982_v56 = vsel %vm977_vm5, %v6825_v30, %v6531_v31  ;;  %v1079_v21 = vmul.f32 %v6596_v23, %v1057_v36  ;;  %v10336_v31 = vld [vmem:[#allocation29_spill] sm:$0xff] }
 0x16a   : > { %v1080_v34 = vmul.f32 %v6599_v41, %v1061_v15  ;;  %v7021_v2 = vand.u32 4294901760, %v6839_v60  ;;  %2364 = vperm.xlu0 %5793, %v6846_v13   ;;  %v10334_v22 = vmov 0   ;;  %v945_v53 = vmul.f32 %v10335_v47, %v921_v49 }
 0x16b   : > { %5791 = vset.pattern.permute.xlu1 %v10334_v22  ;;  %v946_v51 = vmul.f32 %v10335_v47, %v922_v44  ;;  %v1183_v33 = vmul.f32 %v6793_v10, %v1159_v40  ;;  %v1184_v54 = vmul.f32 %v6793_v10, %v1160_v35  ;;  %v1025_v30 = vmul.f32 %v10336_v31, %v1001_v16  ;;  %v10337_v10 = vld [vmem:[#allocation47_spill] sm:$0xff]  ;;  %v10379_v22 = vld [vmem:[#allocation38_spill] sm:$0xff] }
 0x16c   : > { %10333 = vst [vmem:[#allocation19_spill] sm:$0xff] %v7021_v2  ;;  %2204 = vperm.xlu1 %5791, %v6968_v14   ;;  %v1026_v37 = vmul.f32 %v10336_v31, %v1002_v63  ;;  %v1113_v32 = vadd.f32 %v1105_v59, %v1035_v39  ;;  %v1114_v36 = vadd.f32 %v1106_v43, %v1036_v28  ;;  %v1128_v40 = vpop.permute.xlu1 %1127  ;;  %v10338_v59 = vmov 3  }
 0x16d   : > { %v999_v15 = vmul.f32 %v6529_v57, %v978_v17  ;;  %v1000_v0 = vmul.f32 %v6547_v27, %v982_v56  ;;  %v1056_v49 = vsel %vm1055_vm6, %v1040_v38, %v1048_v24  ;;  %v1060_v44 = vsel %vm1055_vm6, %v1048_v24, %v1040_v38 }
 0x16e   : > { %v1103_v35 = vmul.f32 %v10337_v10, %v1079_v21  ;;  %v1104_v47 = vmul.f32 %v10337_v10, %v1080_v34  ;;  %v1135_v16 = vsel %vm1133_vm7, %v6711_v50, %v1128_v40  ;;  %v1139_v57 = vsel %vm1133_vm7, %v1128_v40, %v6711_v50  ;;  %2360 = vperm.xlu0 %5793, %v6968_v14  }
 0x16f   : > { %v1157_v27 = vmul.f32 %v6620_v8, %v1135_v16  ;;  %v1158_v28 = vmul.f32 %v6634_v20, %v1139_v57  ;;  %v1191_v38 = vadd.f32 %v1183_v33, %v1113_v32  ;;  %v1192_v63 = vadd.f32 %v1184_v54, %v1114_v36 }
 0x170   : > { %5794 = vset.pattern.permute.xlu1 %v10338_v59  ;;  %v953_v43 = vadd.f32 %v945_v53, %v6945_v58  ;;  %v954_v39 = vadd.f32 %v946_v51, %v6953_v18  ;;  %v1077_v17 = vmul.f32 %v6596_v23, %v1056_v49  ;;  %v1078_v24 = vmul.f32 %v6599_v41, %v1060_v44  ;;  %v1220_v33 = vpop.permute.xlu1 %1219 }
 0x171   : > { %2450 = vperm.xlu1 %5794, %v10299_v52   ;;  %v1033_v50 = vadd.f32 %v1025_v30, %v955_v1  ;;  %v1034_v56 = vadd.f32 %v1026_v37, %v956_v62  ;;  %v1023_v21 = vmul.f32 %v6700_v4, %v999_v15  ;;  %v1024_v34 = vmul.f32 %v6700_v4, %v1000_v0  ;;  %v1126_v30 = vpop.permute.xlu0 %1125  ;;  %v1252_v15 = vld [vmem:[%s9832_s4 + $0x8] sm:$0xff] }
 0x172   : > { %v1181_v54 = vmul.f32 %v6937_v12, %v1157_v27  ;;  %v1182_v31 = vmul.f32 %v6937_v12, %v1158_v28  ;;  %v1231_v58 = vmul.f32 %v1220_v33, %v1191_v38  ;;  %v1232_v53 = vmul.f32 %v1220_v33, %v1192_v63  ;;  %5797 = vset.pattern.permute.xlu0 %v10338_v59  ;;  %v5835_v27 = vld [vmem:[%s6006_s18 + $0x20] sm:$0xff] }
 0x173   : > { %v1111_v23 = vadd.f32 %v1103_v35, %v1033_v50  ;;  %v1112_v18 = vadd.f32 %v1104_v47, %v1034_v56  ;;  %vm1203_vm11 = vcmp.ge.f32.partialorder %v1191_v38, 0.0  ;;  %vm1204_vm12 = vcmp.ge.f32.partialorder %v1192_v63, 0.0  ;;  %2442 = vperm.xlu0 %5797, %v6846_v13   ;;  %v1253_v50 = vld [vmem:[%s9832_s4 + $0x10] sm:$0xff] }
 0x174   : > { %v1101_v41 = vmul.f32 %v6617_v61, %v1077_v17  ;;  %v1102_v1 = vmul.f32 %v6617_v61, %v1078_v24  ;;  %v1239_v4 = vsel %vm1203_vm11, %v1191_v38, %v1231_v58  ;;  %v1240_v62 = vsel %vm1204_vm12, %v1192_v63, %v1232_v53  ;;  %v1118_v36 = vpop.permute.xlu1 %1117 }
 0x175   : > { %5795 = vset.pattern.permute.xlu1 %v10298_v25  ;;  %v1031_v51 = vadd.f32 %v1023_v21, %v953_v43  ;;  %v1032_v12 = vadd.f32 %v1024_v34, %v954_v39  ;;  %v7064_v37 = vand.u32 4294901760, %v1240_v62  ;;  %v7066_v32 = vand.u32 4294901760, %v1239_v4  ;;  %v10345_v43 = vld [vmem:[#allocation51_spill] sm:$0xff]  ;;  %v1210_v58 = vpop.permute.xlu0 %1209 }
 0x176   : > { %2282 = vperm.xlu1 %5795, %v6968_v14   ;;  %v1134_v61 = vsel %vm1133_vm7, %v1118_v36, %v1126_v30  ;;  %v1138_v0 = vsel %vm1133_vm7, %v1126_v30, %v1118_v36  ;;  %v1189_v49 = vadd.f32 %v1181_v54, %v1111_v23  ;;  %v1190_v44 = vadd.f32 %v1182_v31, %v1112_v18 }
 0x177   : > { %10339 = vst [vmem:[#allocation9_spill] sm:$0xff] %v7064_v37  ;;  %10340 = vst [vmem:[#allocation11_spill] sm:$0xff] %v7066_v32  ;;  %v7077_v40 = vsub.f32 %v1240_v62, %v7064_v37  ;;  %v7080_v10 = vsub.f32 %v1239_v4, %v7066_v32  ;;  %v1155_v35 = vmul.f32 %v6620_v8, %v1134_v61  ;;  %1329 = vmatprep.subr.mxu0 %v7064_v37  ;;  %v10344_v63 = vmov 5   ;;  %v5836_v61 = vld [vmem:[%s6006_s18 + $0x18] sm:$0xff] }
 0x178   : > { %v1156_v47 = vmul.f32 %v6634_v20, %v1138_v0  ;;  %v1109_v16 = vadd.f32 %v1101_v41, %v1031_v51  ;;  %v1110_v57 = vadd.f32 %v1102_v1, %v1032_v12  ;;  %1331 = vmatpush1.msra.mxu0 %v7066_v32  ;;  %v7088_v28 = vsub.f32 %v5835_v27, %v6784_v48  ;;  %v1215_v17 = vpop.permute.xlu1 %1214  ;;  %v10353_v0 = vld [vmem:[#allocation10_spill] sm:$0xff] }
 0x179   : > { %10341 = vst [vmem:[#allocation41_spill] sm:$0xff] %v7077_v40  ;;  %10342 = vst [vmem:[#allocation44_spill] sm:$0xff] %v7080_v10  ;;  %v1300_v38 = vsel %vm1295_vm8, %v1252_v15, 0  ;;  %5798 = vset.pattern.permute.xlu0 %v10344_v63  ;;  %v1179_v39 = vmul.f32 %v10345_v43, %v1155_v35  ;;  %v7095_v20 = vand.u32 4294901760, %v7077_v40  ;;  %v7098_v24 = vand.u32 4294901760, %v7080_v10  ;;  %v10355_v35 = vld [vmem:[#allocation8_spill] sm:$0xff] }
 0x17a   : > { %10343 = vst [vmem:[#allocation12_spill] sm:$0xff] %v7088_v28  ;;  %v1180_v8 = vmul.f32 %v10345_v43, %v1156_v47  ;;  %2528 = vperm.xlu0 %5798, %v10299_v52   ;;  %5796 = vset.pattern.permute.xlu1 %v10338_v59  ;;  %vm1201_vm13 = vcmp.ge.f32.partialorder %v1189_v49, 0.0  ;;  %vm1202_vm14 = vcmp.ge.f32.partialorder %v1190_v44, 0.0  ;;  %v1229_v56 = vmul.f32 %v1215_v17, %v1189_v49 }
 0x17b   : > { %10346 = vst [vmem:[#allocation48_spill] sm:$0xff] %v7095_v20  ;;  %10347 = vst [vmem:[#allocation24_spill] sm:$0xff] %v7098_v24  ;;  %v1230_v21 = vmul.f32 %v1215_v17, %v1190_v44  ;;  %2446 = vperm.xlu1 %5796, %v6776_v46   ;;  %v1187_v34 = vadd.f32 %v1179_v39, %v1109_v16  ;;  %v1464_v54 = vsub.f32 %v7077_v40, %v7095_v20  ;;  %v10352_v30 = vmov 6   ;;  %v7134_v16 = vld [vmem:[%s9834_s6 + $0x18] sm:$0xff] }
 0x17c   : > { %v1188_v33 = vadd.f32 %v1180_v8, %v1110_v57  ;;  %v1470_v31 = vsub.f32 %v7080_v10, %v7098_v24  ;;  %v1237_v53 = vsel %vm1201_vm13, %v1189_v49, %v1229_v56  ;;  %v7110_v23 = vand.u32 4294901760, %v1300_v38  ;;  %10357 = vst [vmem:[#allocation37_spill] sm:$0xff] %v7134_v16 }
 0x17d   : > { %v1238_v52 = vsel %vm1202_vm14, %v1190_v44, %v1230_v21  ;;  %v1303_v18 = vsel %vm1295_vm8, %v1253_v50, 0  ;;  %vm1199_vm15 = vcmp.ge.f32.partialorder %v1187_v34, 0.0  ;;  %v1227_v41 = vmul.f32 %v1210_v58, %v1187_v34  ;;  %v5837_v44 = vld [vmem:[%s6006_s18 + $0x10] sm:$0xff] }
 0x17e   : > { %vm1200_vm0 = vcmp.ge.f32.partialorder %v1188_v33, 0.0  ;;  %v1228_v1 = vmul.f32 %v1210_v58, %v1188_v33  ;;  %2524 = vperm.xlu0 %5798, %v6776_v46   ;;  %v7114_v4 = vand.u32 4294901760, %v1238_v52  ;;  %v7116_v62 = vand.u32 4294901760, %v1237_v53 }
 0x17f   : > { %v7118_v51 = vand.u32 4294901760, %v1464_v54  ;;  %v7120_v12 = vand.u32 4294901760, %v1470_v31  ;;  %5799 = vset.pattern.permute.xlu1 %v10352_v30  ;;  %v1235_v36 = vsel %vm1199_vm15, %v1187_v34, %v1227_v41  ;;  %v7125_v49 = vsub.f32 %v5836_v61, %v10353_v0 }
 0x180   : > { %10348 = vst [vmem:[#allocation15_spill] sm:$0xff] %v7114_v4  ;;  %10349 = vst [vmem:[#allocation35_spill] sm:$0xff] %v7116_v62  ;;  %v1236_v15 = vsel %vm1200_vm0, %v1188_v33, %v1228_v1  ;;  %v7129_v47 = vsub.f32 %v5837_v44, %v10355_v35  ;;  %2606 = vperm.xlu1 %5799, %v7134_v16   ;;  %v7139_v27 = vand.u32 4294901760, %v1235_v36  ;;  %1333 = vmatprep.subr.mxu0 %v7114_v4  ;;  %v10370_v1 = vld [vmem:[#allocation23_spill] sm:$0xff] }
 0x181   : > { %10350 = vst [vmem:[#allocation53_spill] sm:$0xff] %v7118_v51  ;;  %10351 = vst [vmem:[#allocation49_spill] sm:$0xff] %v7120_v12  ;;  %v7137_v57 = vand.u32 4294901760, %v1236_v15  ;;  %v7142_v43 = vsub.f32 %v1238_v52, %v7114_v4  ;;  %v7145_v39 = vsub.f32 %v1237_v53, %v7116_v62  ;;  %1466 = vmatprep.subr.mxu1 %v7118_v51  ;;  %1335 = vmatpush1.msra.mxu0 %v7116_v62  ;;  %v5839_v52 = vld [vmem:[%s6006_s18 + $0x8] sm:$0xff]  ;;  %v5840_v51 = vld [vmem:[%s6006_s18] sm:$0xff]  ;;  %s5870_s18 = smov 34  }
 0x182   : > { %10354 = vst [vmem:[#allocation42_spill] sm:$0xff] %v7125_v49  ;;  %10356 = vst [vmem:[#allocation20_spill] sm:$0xff] %v7129_v47  ;;  %1472 = vmatpush1.msra.mxu1 %v7120_v12  ;;  %v1506_v8 = vsub.f32 %v6802_v6, %v6940_v55  ;;  %v1512_v17 = vsub.f32 %v6839_v60, %v7021_v2  ;;  %v7156_v50 = vsub.f32 %v1300_v38, %v7110_v23  ;;  %v1254_v38 = vld [vmem:[%s9832_s4 + $0x18] sm:$0xff] }
 0x183   : > { %10358 = vst [vmem:[#allocation40_spill] sm:$0xff] %v7137_v57  ;;  %10359 = vst [vmem:[#allocation39_spill] sm:$0xff] %v7139_v27  ;;  %v7158_v56 = vand.u32 4294901760, %v1303_v18  ;;  %v7161_v21 = vsub.f32 %v1236_v15, %v7137_v57  ;;  %v7164_v34 = vsub.f32 %v1235_v36, %v7139_v27  ;;  %1337 = vmatprep.subr.mxu0 %v7137_v57  ;;  %v7168_v33 = vand.u32 4294901760, %v7142_v43 }
 0x184   : > { %10360 = vst [vmem:[#allocation34_spill] sm:$0xff] %v7142_v43  ;;  %10361 = vst [vmem:[#allocation27_spill] sm:$0xff] %v7145_v39  ;;  %v7171_v54 = vand.u32 4294901760, %v7145_v39  ;;  %2520 = vperm.xlu0 %5798, %v6846_v13   ;;  %1339 = vmatpush1.msra.mxu0 %v7139_v27  ;;  %v7179_v31 = vand.u32 4294901760, %v7088_v28  ;;  %v7182_v58 = vand.u32 4294901760, %v7125_v49  ;;  %v7185_v53 = vand.u32 4294901760, %v7129_v47 }
 0x185   : > { %10362 = vst [vmem:[#allocation29_spill] sm:$0xff] %v7161_v21  ;;  %10363 = vst [vmem:[#allocation47_spill] sm:$0xff] %v7164_v34  ;;  %v7189_v41 = vsub.f32 %v5839_v52, %v6950_v9  ;;  %5800 = vset.pattern.permute.xlu1 %v10338_v59  ;;  %1341 = vmatprep.subr.mxu0 %v10370_v1  ;;  %v1476_v36 = vsub.f32 %v7142_v43, %v7168_v33  ;;  %v7198_v61 = vand.u32 4294901760, %v7161_v21  ;;  %v10373_v52 = vld [vmem:[#allocation25_spill] sm:$0xff] }
 0x186   : > { %10364 = vst [vmem:[#allocation51_spill] sm:$0xff] %v7168_v33  ;;  %10365 = vst [vmem:[#allocation54_spill] sm:$0xff] %v7171_v54  ;;  %v1482_v15 = vsub.f32 %v7145_v39, %v7171_v54  ;;  %v7201_v44 = vand.u32 4294901760, %v7164_v34  ;;  %2438 = vperm.xlu1 %5800, %v6968_v14   ;;  %1343 = vmatpush1.msra.mxu0 %v10373_v52  ;;  %v7208_v11 = vsub.f32 %v5840_v51, %v6992_v7 }
 0x187   : > { %10366 = vst [vmem:[#allocation55_spill] sm:$0xff] %v7179_v31  ;;  %10367 = vst [vmem:[#allocation56_spill] sm:$0xff] %v7182_v58  ;;  %v7211_v63 = vsub.f32 %v1303_v18, %v7158_v56  ;;  %v1306_v59 = vsel %vm1295_vm8, %v1254_v38, 0  ;;  %1345 = vmatprep.subr.mxu0 %v10375_v29  ;;  %v7215_v5 = vand.u32 4294901760, %v1476_v36  ;;  %v1488_v45 = vsub.f32 %v7161_v21, %v7198_v61  ;;  %v10378_v18 = vld [vmem:[#allocation16_spill] sm:$0xff]  ;;  %v10380_v38 = vld [vmem:[#allocation17_spill] sm:$0xff] }
 0x188   : > { %10368 = vst [vmem:[#allocation57_spill] sm:$0xff] %v7185_v53  ;;  %10369 = vst [vmem:[#allocation58_spill] sm:$0xff] %v7189_v41  ;;  %v7217_v25 = vand.u32 4294901760, %v1482_v15  ;;  %v1494_v12 = vsub.f32 %v7164_v34, %v7201_v44  ;;  %2516 = vperm.xlu0 %5798, %v6968_v14   ;;  %1347 = vmatpush1.msra.mxu0 %v6784_v48  ;;  %v1393_v51 = vand.u32 4294901760, %v10378_v18  ;;  %v7232_v36 = vand.u32 4294901760, %v7189_v41 }
 0x189   : > { %10371 = vst [vmem:[#allocation59_spill] sm:$0xff] %v7198_v61  ;;  %10372 = vst [vmem:[#allocation60_spill] sm:$0xff] %v7201_v44  ;;  %v10381_v16 = vsub.f32 %v10379_v22, %v10380_v38  ;;  %1478 = vmatprep.subr.mxu1 %v7215_v5  ;;  %1349 = vmatprep.subr.mxu0 %v10353_v0  ;;  %v7236_v15 = vand.u32 4294901760, %v1488_v45  ;;  %v1518_v14 = vsub.f32 %v7088_v28, %v7179_v31 }
 0x18a   : > { %10374 = vst [vmem:[#allocation61_spill] sm:$0xff] %v7208_v11  ;;  %10376 = vst [vmem:[#allocation62_spill] sm:$0xff] %v7215_v5  ;;  %v7238_v13 = vand.u32 4294901760, %v1494_v12  ;;  %v7242_v18 = vand.u32 4294901760, %v1306_v59  ;;  %1484 = vmatpush1.msra.mxu1 %v7217_v25  ;;  %1351 = vmatpush1.msra.mxu0 %v10355_v35  ;;  %v10387_v30 = vand.u32 4294901760, %v7156_v50  ;;  %v1524_v45 = vsub.f32 %v7125_v49, %v7182_v58 }
 0x18b   : > { %10377 = vst [vmem:[#allocation63_spill] sm:$0xff] %v7217_v25  ;;  %v7229_v46 = vand.u32 4294901760, %v10381_v16  ;;  %10383 = vst [vmem:[#allocation64_spill] sm:$0xff] %v7232_v36  ;;  %v7246_v16 = vand.u32 4294901760, %v1506_v8  ;;  %v7254_v12 = vand.u32 4294901760, %v7208_v11  ;;  %1353 = vmatprep.subr.mxu0 %v6950_v9  ;;  %1490 = vmatprep.subr.mxu1 %v7236_v15  ;;  %v7258_v31 = vand.u32 4294901760, %v1512_v17 }
 0x18c   : > { %10384 = vst [vmem:[#allocation65_spill] sm:$0xff] %v7236_v15  ;;  %10385 = vst [vmem:[#allocation66_spill] sm:$0xff] %v7238_v13  ;;  %v1403_v5 = vsub.f32 %v7156_v50, %v10387_v30  ;;  %v1530_v8 = vsub.f32 %v7129_v47, %v7185_v53  ;;  %1355 = vmatpush1.msra.mxu0 %v6992_v7  ;;  %1496 = vmatpush1.msra.mxu1 %v7238_v13  ;;  %v7268_v58 = vand.u32 4294901760, %v1518_v14 }
 0x18d   : > { %10382 = vst [vmem:[#allocation16_spill] sm:$0xff] %v7229_v46  ;;  %10386 = vst [vmem:[#allocation67_spill] sm:$0xff] %v7246_v16  ;;  %v1536_v30 = vsub.f32 %v7189_v41, %v7232_v36  ;;  %1394 = vmatmul.mubr.f32.vlgmr.msra.gmra.mxu0 %v1393_v51  ;;  %1502 = vmatprep.subr.mxu1 %v7229_v46  ;;  %v7271_v17 = vsub.f32 %v1306_v59, %v7242_v18  ;;  %v7275_v15 = vand.u32 4294901760, %v1524_v45 }
 0x18e   : > { %10388 = vst [vmem:[#allocation68_spill] sm:$0xff] %v7254_v12  ;;  %10389 = vst [vmem:[#allocation69_spill] sm:$0xff] %v7258_v31  ;;  %1624 = vmatprep.subr.mxu0 %v6871_v3  ;;  %1508 = vmatpush1.msra.mxu1 %v7246_v16  ;;  %v1404_v25 = vand.u32 4294901760, %v1403_v5  ;;  %v1542_v13 = vsub.f32 %v7208_v11, %v7254_v12  ;;  %v7281_v51 = vand.u32 4294901760, %v1530_v8  ;;  %v10393_v14 = vand.u32 4294901760, %v7211_v63 }
 0x18f   : > { %10390 = vst [vmem:[#allocation70_spill] sm:$0xff] %v7268_v58  ;;  %10391 = vst [vmem:[#allocation71_spill] sm:$0xff] %v7275_v15  ;;  %1627 = vmatpush1.msra.mxu0 %v6874_v26  ;;  %1514 = vmatprep.subr.mxu1 %v7258_v31  ;;  %v10394_v3 = vmov 0.0   ;;  %v7288_v5 = vand.u32 4294901760, %v1536_v30  ;;  %v1424_v45 = vand.u32 4294901760, %v7271_v17  ;;  %v10398_v30 = vld [vmem:[#allocation32_spill] sm:$0xff] }
 0x190   : > { %10392 = vst [vmem:[#allocation72_spill] sm:$0xff] %v7281_v51  ;;  %v1414_v59 = vsub.f32 %v7211_v63, %v10393_v14  ;;  %1630 = vmatprep.subr.mxu0 %v7077_v40  ;;  %1399 = vmatprep.mubr.f32.mxu0 %v10394_v3  ;;  %v7294_v8 = vand.u32 4294901760, %v1542_v13  ;;  %v10397_v13 = vld [vmem:[#allocation21_spill] sm:$0xff] }
 0x191   : > { %10395 = vst [vmem:[#allocation73_spill] sm:$0xff] %v7288_v5  ;;  %1520 = vmatpush1.msra.mxu1 %v7268_v58  ;;  %1633 = vmatpush1.msra.mxu0 %v7080_v10 }
 0x192   : > { %1405 = vmatmul.mubr.f32.gmra.mxu0 %v1404_v25  ;;  %1526 = vmatprep.subr.mxu1 %v7275_v15  ;;  %10396 = vst [vmem:[#allocation74_spill] sm:$0xff] %v7294_v8  ;;  %v1415_v14 = vand.u32 4294901760, %v1414_v59  ;;  %v1425_v25 = vsub.f32 %v7271_v17, %v1424_v45  ;;  %v10399_v59 = vld [vmem:[#allocation3_spill] sm:$0xff] }
 0x193   : > { %1636 = vmatprep.subr.mxu0 %v7142_v43  ;;  %1532 = vmatpush1.msra.mxu1 %v7281_v51 }
 0x194   : > { %1639 = vmatpush1.msra.mxu0 %v7145_v39  ;;  %1538 = vmatprep.subr.mxu1 %v7288_v5 }
 0x195   : > { %1642 = vmatprep.subr.mxu0 %v7161_v21  ;;  %1410 = vmatprep.mubr.f32.mxu0 %v10394_v3  ;;  %v1426_v21 = vand.u32 4294901760, %v1425_v25  ;;  %v10402_v25 = vld [vmem:[#allocation55_spill] sm:$0xff] }
 0x196   : > { %1544 = vmatpush1.msra.mxu1 %v7294_v8  ;;  %1645 = vmatpush1.msra.mxu0 %v7164_v34  ;;  %v7439_v34 = vpop.permute.xlu0 %2147 }
 0x197   : > { %1416 = vmatmul.mubr.f32.gmra.mxu0 %v1415_v14  ;;  %1579 = vmatmul.mubr.f32.vlgmr.msra.gmra.mxu1 %v10397_v13 }
 0x198   : > { %1648 = vmatprep.subr.mxu0 %v10379_v22  ;;  %1752 = vmatprep.subr.mxu1 %v10398_v30 }
 0x199   : > { %1651 = vmatpush1.msra.mxu0 %v6802_v6  ;;  %1754 = vmatpush1.msra.mxu1 %v10399_v59 }
 0x19a   : > { %1654 = vmatprep.subr.mxu0 %v6839_v60  ;;  %1756 = vmatprep.subr.mxu1 %v7064_v37 }
 0x19b   : > { %1421 = vmatprep.mubr.f32.mxu0 %v10394_v3  ;;  %1584 = vmatprep.mubr.f32.mxu1 %v10394_v3 }
 0x19c   : > { %1657 = vmatpush1.msra.mxu0 %v7088_v28  ;;  %1758 = vmatpush1.msra.mxu1 %v7066_v32 }
 0x19d   : > { %1427 = vmatmul.mubr.f32.gmra.mxu0 %v1426_v21  ;;  %1586 = vmatmul.mubr.f32.gmra.mxu1 %v7110_v23  ;;  %v10400_v21 = vld [vmem:[#allocation28_spill] sm:$0xff] }
 0x19e   : > { %1660 = vmatprep.subr.mxu0 %v7125_v49  ;;  %1760 = vmatprep.subr.mxu1 %v7114_v4  ;;  %v10401_v14 = vand.u32 4294901760, %v10400_v21 }
 0x19f   : > { %1663 = vmatpush1.msra.mxu0 %v7129_v47  ;;  %1762 = vmatpush1.msra.mxu1 %v7116_v62 }
 0x1a0   : > { %1666 = vmatprep.subr.mxu0 %v7189_v41  ;;  %1764 = vmatprep.subr.mxu1 %v7137_v57 }
 0x1a1   : > { %1591 = vmatprep.mubr.f32.mxu1 %v10394_v3  ;;  %1669 = vmatpush1.msra.mxu0 %v7208_v11 }
 0x1a2   : > { %1702 = vmatprep.mubr.f32.mxu0 %v10394_v3  ;;  %1766 = vmatpush1.msra.mxu1 %v7139_v27 }
 0x1a3   : > { %1593 = vmatmul.mubr.f32.gmra.mxu1 %v7158_v56  ;;  %1705 = vmatmul.mubr.f32.vlgmr.msra.gmra.mxu0 %v10400_v21  ;;  %v10403_v21 = vand.u32 4294901760, %v7156_v50 }
 0x1a4   : > { %1768 = vmatprep.subr.mxu1 %v10370_v1  ;;  %1871 = vmatprep.subr.mxu0 %v6893_v19 }
 0x1a5   : > { %1770 = vmatpush1.msra.mxu1 %v10373_v52  ;;  %1875 = vmatpush1.msra.mxu0 %v6896_v42 }
 0x1a6   : > { %1772 = vmatprep.subr.mxu1 %v10375_v29  ;;  %1879 = vmatprep.subr.mxu0 %v7095_v20 }
 0x1a7   : > { %1598 = vmatprep.mubr.f32.mxu1 %v10394_v3  ;;  %1710 = vmatprep.mubr.f32.mxu0 %v10394_v3 }
 0x1a8   : > { %1774 = vmatpush1.msra.mxu1 %v6784_v48  ;;  %1883 = vmatpush1.msra.mxu0 %v7098_v24 }
 0x1a9   : > { %1600 = vmatmul.mubr.f32.gmra.mxu1 %v7242_v18  ;;  %1713 = vmatmul.mubr.f32.gmra.mxu0 %v7156_v50  ;;  %v10405_v50 = vand.u32 4294901760, %v7211_v63 }
 0x1aa   : > { %1776 = vmatprep.subr.mxu1 %v10353_v0  ;;  %1887 = vmatprep.subr.mxu0 %v7168_v33 }
 0x1ab   : > { %1778 = vmatpush1.msra.mxu1 %v10355_v35  ;;  %1891 = vmatpush1.msra.mxu0 %v7171_v54 }
 0x1ac   : > { %1780 = vmatprep.subr.mxu1 %v6950_v9  ;;  %1895 = vmatprep.subr.mxu0 %v7198_v61 }
 0x1ad   : > { %1718 = vmatprep.mubr.f32.mxu0 %v10394_v3  ;;  %1782 = vmatpush1.msra.mxu1 %v6992_v7 }
 0x1ae   : > { %1815 = vmatprep.mubr.f32.mxu1 %v10394_v3  ;;  %1899 = vmatpush1.msra.mxu0 %v7201_v44 }
 0x1af   : > { %1721 = vmatmul.mubr.f32.gmra.mxu0 %v7211_v63  ;;  %1819 = vmatmul.mubr.f32.vlgmr.msra.gmra.mxu1 %v10401_v14  ;;  %v10404_v14 = vld [vmem:[#allocation56_spill] sm:$0xff]  ;;  %v10407_v63 = vld [vmem:[#allocation30_spill] sm:$0xff] }
 0x1b0   : > { %1903 = vmatprep.subr.mxu0 %v10380_v38  ;;  %2010 = vmatprep.subr.mxu1 %v10398_v30 }
 0x1b1   : > { %1907 = vmatpush1.msra.mxu0 %v6940_v55  ;;  %2012 = vmatpush1.msra.mxu1 %v10399_v59 }
 0x1b2   : > { %1911 = vmatprep.subr.mxu0 %v7021_v2  ;;  %2014 = vmatprep.subr.mxu1 %v7064_v37  ;;  %v7418_v2 = vpop.permute.xlu1 %1292 }
 0x1b3   : > { %1726 = vmatprep.mubr.f32.mxu0 %v10394_v3  ;;  %1824 = vmatprep.mubr.f32.mxu1 %v10394_v3 }
 0x1b4   : > { %1915 = vmatpush1.msra.mxu0 %v10402_v25  ;;  %2016 = vmatpush1.msra.mxu1 %v7066_v32 }
 0x1b5   : > { %1729 = vmatmul.mubr.f32.gmra.mxu0 %v7271_v17  ;;  %1828 = vmatmul.mubr.f32.gmra.mxu1 %v10403_v21  ;;  %v10406_v21 = vmov 6   ;;  %v10408_v17 = vld [vmem:[#allocation26_spill] sm:$0xff] }
 0x1b6   : > { %1919 = vmatprep.subr.mxu0 %v10404_v14  ;;  %2018 = vmatprep.subr.mxu1 %v7114_v4 }
 0x1b7   : > { %1923 = vmatpush1.msra.mxu0 %v7185_v53  ;;  %2020 = vmatpush1.msra.mxu1 %v7116_v62 }
 0x1b8   : > { %1927 = vmatprep.subr.mxu0 %v7232_v36  ;;  %2022 = vmatprep.subr.mxu1 %v7137_v57 }
 0x1b9   : > { %1833 = vmatprep.mubr.f32.mxu1 %v10394_v3  ;;  %1931 = vmatpush1.msra.mxu0 %v7254_v12 }
 0x1ba   : > { %1964 = vmatprep.mubr.f32.mxu0 %v10394_v3  ;;  %2024 = vmatpush1.msra.mxu1 %v7139_v27 }
 0x1bb   : > { %1837 = vmatmul.mubr.f32.gmra.mxu1 %v10405_v50  ;;  %1966 = vmatmul.mubr.f32.vlgmr.msra.gmra.mxu0 %v10397_v13  ;;  %v10411_v50 = vmov 8  }
 0x1bc   : > { %2026 = vmatprep.subr.mxu1 %v10370_v1  ;;  %1842 = vmatprep.mubr.f32.mxu1 %v10394_v3 }
 0x1bd   : > { %2028 = vmatpush1.msra.mxu1 %v10373_v52  ;;  %1971 = vmatprep.mubr.f32.mxu0 %v10394_v3 }
 0x1be   : > { %2030 = vmatprep.subr.mxu1 %v10375_v29  ;;  %5802 = vset.pattern.permute.xlu0 %v10406_v21 }
 0x1bf   : > { %2032 = vmatpush1.msra.mxu1 %v6784_v48  ;;  %1973 = vmatmul.mubr.f32.gmra.mxu0 %v7110_v23 }
 0x1c0   : > { %1846 = vmatmul.mubr.f32.gmra.mxu1 %v1424_v45  ;;  %2034 = vmatprep.subr.mxu1 %v10353_v0  ;;  %v10409_v45 = vmov 7  }
 0x1c1   : > { %2036 = vmatpush1.msra.mxu1 %v10355_v35  ;;  %1978 = vmatprep.mubr.f32.mxu0 %v10394_v3  ;;  %v1283_v40 = vpop.permute.xlu0 %1282 }
 0x1c2   : > { %2038 = vmatprep.subr.mxu1 %v6950_v9  ;;  %2073 = vmatprep.mubr.f32.mxu1 %v10394_v3 }
 0x1c3   : > { %2040 = vmatpush1.msra.mxu1 %v6992_v7  ;;  %1980 = vmatmul.mubr.f32.gmra.mxu0 %v7158_v56 }
 0x1c4   : > { %2075 = vmatmul.mubr.f32.vlgmr.msra.gmra.mxu1 %v10397_v13  ;;  %1985 = vmatprep.mubr.f32.mxu0 %v10394_v3  ;;  %v10410_v13 = vld [vmem:[#allocation37_spill] sm:$0xff] }
 0x1c5   : > { %2080 = vmatprep.mubr.f32.mxu1 %v10394_v3  ;;  %2598 = vperm.xlu0 %5802, %v10407_v63  }
 0x1c6   : > { %5801 = vset.pattern.permute.xlu1 %v10406_v21 }
 0x1c7   : > { %1987 = vmatmul.mubr.f32.gmra.mxu0 %v7242_v18  ;;  %2602 = vperm.xlu1 %5801, %v10408_v17  }
 0x1c8   : > { %2082 = vmatmul.mubr.f32.gmra.mxu1 %v7110_v23  ;;  %2990 = vmatprep.mubr.f32.mxu0 %v10394_v3 }
 0x1c9   : > { %2087 = vmatprep.mubr.f32.mxu1 %v10394_v3  ;;  %5803 = vset.pattern.permute.xlu0 %v10409_v45 }
 0x1ca   : > { %2684 = vperm.xlu0 %5803, %v10410_v13  }
 0x1cb   : > { %5804 = vset.pattern.permute.xlu1 %v10411_v50 }
 0x1cc   : > { %2089 = vmatmul.mubr.f32.gmra.mxu1 %v7158_v56 }
 0x1cd   : > { %2094 = vmatprep.mubr.f32.mxu1 %v10394_v3 }
 0x1d0   : > { %2096 = vmatmul.mubr.f32.gmra.mxu1 %v7242_v18  ;;  %v7424_v18 = vpop.permute.xlu1 %1287 }
 0x1d1   : > { %3219 = vmatprep.mubr.f32.mxu1 %v10394_v3 }
 0x24d   : > { %v1395_v63 = vpop.f32.mrf.mxu0 }
 0x24f   : > { %v1397_v23 = vpop.f32.mrf.mxu0 }
 0x252   : > { %v1406_v17 = vpop.f32.mrf.mxu0 }
 0x253   : > { %v1407_v58 = vadd.f32 %v1406_v17, %v1283_v40 }
 0x254   : > { %v1408_v12 = vpop.f32.mrf.mxu0 }
 0x257   : > { %v7416_v36 = vpop.f32.mrf.mxu0  ;;  %v1580_v53 = vpop.f32.mrf.mxu1 }
 0x259   : > { %v1419_v14 = vpop.f32.mrf.mxu0  ;;  %v1582_v25 = vpop.f32.mrf.mxu1 }
 0x25a   : > { %v1420_v33 = vadd.f32 %v1419_v14, %v7424_v18 }
 0x25d   : > { %v7420_v55 = vpop.f32.mrf.mxu0  ;;  %v1587_v56 = vpop.f32.mrf.mxu1 }
 0x25e   : > { %v1588_v35 = vadd.f32 %v1587_v56, %v1407_v58 }
 0x25f   : > { %v7422_v38 = vpop.f32.mrf.mxu0  ;;  %v1589_v44 = vpop.f32.mrf.mxu1 }
 0x263   : > { %v7426_v61 = vpop.f32.mrf.mxu1  ;;  %v1706_v54 = vpop.f32.mrf.mxu0 }
 0x265   : > { %v1596_v24 = vpop.f32.mrf.mxu1  ;;  %v1708_v20 = vpop.f32.mrf.mxu0 }
 0x266   : > { %v7429_v42 = vadd.f32 %v1596_v24, %v1420_v33  ;;  %v1278_v24 = vpop.permute.xlu1 %1277 }
 0x267   : > { %v1396_v43 = vadd.f32 %v1395_v63, %v1278_v24  ;;  %v1398_v26 = vadd.f32 %v1397_v23, %v1278_v24 }
 0x269   : > { %v7431_v19 = vpop.f32.mrf.mxu1  ;;  %v1714_v11 = vpop.f32.mrf.mxu0  ;;  %v1581_v8 = vadd.f32 %v1580_v53, %v1396_v43  ;;  %v1583_v15 = vadd.f32 %v1582_v25, %v1398_v26 }
 0x26a   : > { %v1715_v29 = vadd.f32 %v1714_v11, %v1588_v35 }
 0x26b   : > { %v7433_v41 = vpop.f32.mrf.mxu1  ;;  %v1716_v47 = vpop.f32.mrf.mxu0  ;;  %v1707_v3 = vadd.f32 %v1706_v54, %v1581_v8  ;;  %v1709_v16 = vadd.f32 %v1708_v20, %v1583_v15  ;;  %v1409_v8 = vadd.f32 %v1408_v12, %v1283_v40 }
 0x26f   : > { %v7435_v49 = vpop.f32.mrf.mxu0  ;;  %v1820_v28 = vpop.f32.mrf.mxu1 }
 0x270   : > { %v1821_v46 = vadd.f32 %v1820_v28, %v1707_v3 }
 0x271   : > { %v1822_v60 = vpop.f32.mrf.mxu1  ;;  %v7437_v6 = vpop.f32.mrf.mxu0 }
 0x272   : > { %v1823_v63 = vadd.f32 %v1822_v60, %v1709_v16  ;;  %v1590_v60 = vadd.f32 %v1589_v44, %v1409_v8 }
 0x275   : > { %v1829_v22 = vpop.f32.mrf.mxu1  ;;  %v7441_v14 = vpop.f32.mrf.mxu0 }
 0x276   : > { %v1830_v52 = vadd.f32 %v1829_v22, %v1715_v29 }
 0x277   : > { %v1831_v39 = vpop.f32.mrf.mxu1  ;;  %v7443_v33 = vpop.f32.mrf.mxu0 }
 0x27b   : > { %v7445_v10 = vpop.f32.mrf.mxu1  ;;  %v1967_v51 = vpop.f32.mrf.mxu0 }
 0x27c   : > { %v1968_v0 = vadd.f32 %v1967_v51, %v1821_v46 }
 0x27d   : > { %v7447_v5 = vpop.f32.mrf.mxu1  ;;  %v1969_v7 = vpop.f32.mrf.mxu0 }
 0x27e   : > { %v1970_v23 = vadd.f32 %v1969_v7, %v1823_v63 }
 0x27f   : > { %v1974_v53 = vpop.f32.mrf.mxu0 }
 0x280   : > { %v7449_v31 = vpop.f32.mrf.mxu1  ;;  %v1975_v20 = vadd.f32 %v1974_v53, %v1830_v52 }
 0x281   : > { %v1976_v29 = vpop.f32.mrf.mxu0 }
 0x282   : > { %v7451_v9 = vpop.f32.mrf.mxu1 }
 0x283   : > { %v1981_v15 = vpop.f32.mrf.mxu0 }
 0x284   : > { %v2076_v48 = vpop.f32.mrf.mxu1 }
 0x285   : > { %v2077_v43 = vadd.f32 %v2076_v48, %v1968_v0  ;;  %v1717_v48 = vadd.f32 %v1716_v47, %v1590_v60  ;;  %v1983_v17 = vpop.f32.mrf.mxu0 }
 0x286   : > { %v2078_v24 = vpop.f32.mrf.mxu1 }
 0x287   : > { %vm2102_vm1 = vcmp.ge.f32.partialorder %v2077_v43, 0.0  ;;  %v2110_v26 = vmul.f32 0.01, %v2077_v43  ;;  %v2079_v54 = vadd.f32 %v2078_v24, %v1970_v23  ;;  %v1832_v7 = vadd.f32 %v1831_v39, %v1717_v48  ;;  %v1988_v53 = vpop.f32.mrf.mxu0 }
 0x288   : > { %v2083_v25 = vpop.f32.mrf.mxu1  ;;  %v1418_v39 = vadd.f32 %v7416_v36, %v7424_v18  ;;  %v1431_v23 = vadd.f32 %v7422_v38, %v7418_v2  ;;  %v1725_v38 = vadd.f32 %v7437_v6, %v7429_v42 }
 0x289   : > { %v7453_v3 = vsel %vm2102_vm1, %v2077_v43, %v2110_v26  ;;  %vm2103_vm2 = vcmp.ge.f32.partialorder %v2079_v54, 0.0  ;;  %v2111_v28 = vmul.f32 0.01, %v2079_v54  ;;  %v2084_v46 = vadd.f32 %v2083_v25, %v1975_v20 }
 0x28a   : > { %2158 = vrot.lane.b32.xlu1 %v7453_v3, %s5870_s18  ;;  %v2085_v40 = vpop.f32.mrf.mxu1  ;;  %v1977_v0 = vadd.f32 %v1976_v29, %v1832_v7  ;;  %v1595_v58 = vadd.f32 %v7426_v61, %v1418_v39  ;;  %v1841_v25 = vadd.f32 %v7447_v5, %v1725_v38  ;;  %v10426_v38 = vmov 0  }
 0x28b   : > { %v7457_v11 = vsel %vm2103_vm2, %v2079_v54, %v2111_v28  ;;  %v2112_v22 = vmul.f32 0.01, %v2084_v46  ;;  %vm2104_vm3 = vcmp.ge.f32.partialorder %v2084_v46, 0.0  ;;  %v7523_v28 = vpop.permute.xlu1 %2216 }
 0x28c   : > { %2166 = vrot.lane.b32.xlu0 %v7457_v11, %s5870_s18  ;;  %v2086_v47 = vadd.f32 %v2085_v40, %v1977_v0  ;;  %v1723_v52 = vadd.f32 %v7435_v49, %v1595_v58  ;;  %v2090_v12 = vpop.f32.mrf.mxu1  ;;  %v1984_v60 = vadd.f32 %v1983_v17, %v1841_v25  ;;  %v2781_v25 = vld [vmem:[%s9835_s7] sm:$0xff] }
 0x28d   : > { %v7467_v35 = vsel %vm2104_vm3, %v2084_v46, %v2112_v22 }
 0x28e   : > { %2235 = vrot.lane.b32.xlu1 %v7453_v3, %s5871_s26  ;;  %v2113_v44 = vmul.f32 0.01, %v2086_v47  ;;  %vm2105_vm4 = vcmp.ge.f32.partialorder %v2086_v47, 0.0  ;;  %v1839_v36 = vadd.f32 %v7445_v10, %v1723_v52  ;;  %v1429_v10 = vadd.f32 %v7420_v55, %v7418_v2  ;;  %v2092_v63 = vpop.f32.mrf.mxu1  ;;  %v1990_v2 = vpop.f32.mrf.mxu0  ;;  %v7572_v52 = vld [vmem:[%s9834_s6 + $0x10] sm:$0xff] }
 0x28f   : > { %v1604_v55 = vadd.f32 %v7433_v41, %v1431_v23  ;;  %v2093_v42 = vadd.f32 %v2092_v63, %v1984_v60 }
 0x290   : > { %2321 = vrot.lane.b32.xlu0 %v7457_v11, %s5872_s27  ;;  %v7482_v16 = vsel %vm2105_vm4, %v2086_v47, %v2113_v44  ;;  %v1982_v61 = vadd.f32 %v1981_v15, %v1839_v36  ;;  %v1602_v56 = vadd.f32 %v7431_v19, %v1429_v10  ;;  %v7510_v19 = vpop.permute.xlu0 %2212  ;;  %v2097_v26 = vpop.f32.mrf.mxu1 }
 0x291   : > { %10412 = vst [vmem:[#allocation21_spill] sm:$0xff] %v7510_v19  ;;  %v1733_v54 = vadd.f32 %v7443_v33, %v1604_v55  ;;  %v2115_v7 = vmul.f32 0.01, %v2093_v42  ;;  %vm2107_vm8 = vcmp.ge.f32.partialorder %v2093_v42, 0.0 }
 0x292   : > { %2313 = vrot.lane.b32.xlu1 %v7453_v3, %s5872_s27  ;;  %v2091_v51 = vadd.f32 %v2090_v12, %v1982_v61  ;;  %v1731_v43 = vadd.f32 %v7441_v14, %v1602_v56 }
 0x293   : > { %v1850_v41 = vadd.f32 %v7451_v9, %v1733_v54  ;;  %v7531_v9 = vpop.permute.xlu1 %2142  ;;  %v7551_v47 = vsel %vm2107_vm8, %v2093_v42, %v2115_v7 }
 0x294   : > { %2315 = vrot.lane.b32.xlu0 %v7467_v35, %s5872_s27  ;;  %v2114_v49 = vmul.f32 0.01, %v2091_v51  ;;  %vm2106_vm5 = vcmp.ge.f32.partialorder %v2091_v51, 0.0  ;;  %v1848_v24 = vadd.f32 %v7449_v31, %v1731_v43  ;;  %v2099_v31 = vpop.f32.mrf.mxu1  ;;  %v7525_v33 = vpop.permute.xlu0 %2208 }
 0x295   : > { %v1991_v20 = vadd.f32 %v1990_v2, %v1850_v41  ;;  %v2784_v2 = vld [vmem:[%s9835_s7 + $0x18] sm:$0xff] }
 0x296   : > { %2391 = vrot.lane.b32.xlu1 %v7453_v3, %s5873_s28  ;;  %v7499_v18 = vsel %vm2106_vm5, %v2091_v51, %v2114_v49  ;;  %v1989_v8 = vadd.f32 %v1988_v53, %v1848_v24  ;;  %v7602_v49 = vld [vmem:[%s9834_s6 + $0x8] sm:$0xff]  ;;  %v5843_v53 = vld [vmem:[%s9834_s6] sm:$0xff]  ;;  %vm2889_vm5 = vcmask 785408  }
 0x297   : > { %v2100_v6 = vadd.f32 %v2099_v31, %v1991_v20  ;;  %v7545_v40 = vpop.permute.xlu1 %2294 }
 0x298   : > { %2471 = vrot.lane.b32.xlu0 %v7467_v35, %s5874_s30  ;;  %v2098_v14 = vadd.f32 %v2097_v26, %v1989_v8  ;;  %v7535_v5 = vpop.permute.xlu0 %2286 }
 0x299   : > { %10413 = vst [vmem:[#allocation28_spill] sm:$0xff] %v7535_v5  ;;  %v2117_v29 = vmul.f32 0.01, %v2100_v6  ;;  %vm2109_vm7 = vcmp.ge.f32.partialorder %v2100_v6, 0.0 }
 0x29a   : > { %2243 = vrot.lane.b32.xlu1 %v7457_v11, %s5871_s26  ;;  %v2116_v46 = vmul.f32 0.01, %v2098_v14  ;;  %vm2108_vm6 = vcmp.ge.f32.partialorder %v2098_v14, 0.0 }
 0x29b   : > { %v7543_v22 = vsel %vm2109_vm7, %v2100_v6, %v2117_v29  ;;  %v7557_v39 = vpop.permute.xlu1 %2137  ;;  %v10428_v6 = vmov 4  }
 0x29c   : > { %2168 = vrot.lane.b32.xlu0 %v7482_v16, %s5870_s18  ;;  %v7537_v48 = vsel %vm2108_vm6, %v2098_v14, %v2116_v46  ;;  %v7549_v0 = vpop.permute.xlu0 %2372 }
 0x29e   : > { %2399 = vrot.lane.b32.xlu1 %v7457_v11, %s5873_s28 }
 0x29f   : > { %v7567_v44 = vpop.permute.xlu1 %2290 }
 0x2a0   : > { %2245 = vrot.lane.b32.xlu0 %v7482_v16, %s5871_s26  ;;  %v7561_v58 = vpop.permute.xlu0 %2368  ;;  %10415 = vst [vmem:[#allocation26_spill] sm:$0xff] %v7567_v44 }
 0x2a1   : > { %10414 = vst [vmem:[#allocation30_spill] sm:$0xff] %v7561_v58 }
 0x2a2   : > { %2160 = vrot.lane.b32.xlu1 %v7467_v35, %s5870_s18 }
 0x2a3   : > { %v7581_v36 = vpop.permute.xlu1 %2132 }
 0x2a4   : > { %2401 = vrot.lane.b32.xlu0 %v7482_v16, %s5873_s28  ;;  %v7575_v15 = vpop.permute.xlu0 %2364 }
 0x2a5   : > { %10416 = vst [vmem:[#allocation37_spill] sm:$0xff] %v7575_v15  ;;  %v10455_v15 = vld [vmem:[#allocation43_spill] sm:$0xff] }
 0x2a6   : > { %2237 = vrot.lane.b32.xlu1 %v7467_v35, %s5871_s26  ;;  %vm2174_vm9 = vcmp.lt.s32.totalorder %v10455_v15, 34  ;;  %vm2329_vm10 = vcmp.lt.s32.totalorder %v10455_v15, 30  ;;  %vm2251_vm11 = vcmp.lt.s32.totalorder %v10455_v15, 32  ;;  %vm2407_vm12 = vcmp.lt.s32.totalorder %v10455_v15, 2 }
 0x2a7   : > { %v7591_v61 = vpop.permute.xlu1 %2204  ;;  %vm2485_vm13 = vcmp.lt.s32.totalorder %v10455_v15, 126  ;;  %vm2563_vm14 = vcmp.lt.s32.totalorder %v10455_v15, 98  ;;  %vm2641_vm15 = vcmp.lt.s32.totalorder %v10455_v15, 96  ;;  %vm2719_vm0 = vcmp.lt.s32.totalorder %v10455_v15, 94 }
 0x2a8   : > { %2162 = vrot.lane.b32.xlu0 %v7499_v18, %s5870_s18  ;;  %v7585_v12 = vpop.permute.xlu0 %2360 }
 0x2aa   : > { %2393 = vrot.lane.b32.xlu1 %v7467_v35, %s5873_s28 }
 0x2ab   : > { %v7605_v10 = vpop.permute.xlu1 %2450 }
 0x2ac   : > { %2239 = vrot.lane.b32.xlu0 %v7499_v18, %s5871_s26  ;;  %v7595_v51 = vpop.permute.xlu0 %2442 }
 0x2ad   : > { %10417 = vst [vmem:[#allocation75_spill] sm:$0xff] %v7595_v51 }
 0x2ae   : > { %2323 = vrot.lane.b32.xlu1 %v7482_v16, %s5872_s27 }
 0x2af   : > { %v7615_v56 = vpop.permute.xlu1 %2282 }
 0x2b0   : > { %2317 = vrot.lane.b32.xlu0 %v7499_v18, %s5872_s27  ;;  %v7609_v17 = vpop.permute.xlu0 %2528 }
 0x2b1   : > { %10418 = vst [vmem:[#allocation76_spill] sm:$0xff] %v7609_v17 }
 0x2b2   : > { %2479 = vrot.lane.b32.xlu1 %v7482_v16, %s5874_s30 }
 0x2b3   : > { %v7625_v23 = vpop.permute.xlu1 %2446 }
 0x2b4   : > { %2473 = vrot.lane.b32.xlu0 %v7499_v18, %s5874_s30  ;;  %v7619_v63 = vpop.permute.xlu0 %2524  ;;  %10420 = vst [vmem:[#allocation78_spill] sm:$0xff] %v7625_v23 }
 0x2b5   : > { %10419 = vst [vmem:[#allocation77_spill] sm:$0xff] %v7619_v63 }
 0x2b6   : > { %2395 = vrot.lane.b32.xlu1 %v7499_v18, %s5873_s28 }
 0x2b7   : > { %v7636_v55 = vpop.permute.xlu1 %2606 }
 0x2b8   : > { %2164 = vrot.lane.b32.xlu0 %v7537_v48, %s5870_s18  ;;  %v7629_v43 = vpop.permute.xlu0 %2520  ;;  %10422 = vst [vmem:[#allocation80_spill] sm:$0xff] %v7636_v55 }
 0x2b9   : > { %10421 = vst [vmem:[#allocation79_spill] sm:$0xff] %v7629_v43 }
 0x2ba   : > { %2551 = vrot.lane.b32.xlu1 %v7499_v18, %s5875_s17 }
 0x2bb   : > { %v7647_v26 = vpop.permute.xlu1 %2438 }
 0x2bc   : > { %2249 = vrot.lane.b32.xlu0 %v7543_v22, %s5871_s26  ;;  %v7640_v24 = vpop.permute.xlu0 %2516 }
 0x2bd   : > { %10423 = vst [vmem:[#allocation81_spill] sm:$0xff] %v7640_v24 }
 0x2be   : > { %2170 = vrot.lane.b32.xlu1 %v7551_v47, %s5870_s18 }
 0x2bf   : > { %v7655_v8 = vpop.permute.xlu1 %2602 }
 0x2c0   : > { %2405 = vrot.lane.b32.xlu0 %v7543_v22, %s5873_s28  ;;  %v7651_v54 = vpop.permute.xlu0 %2598  ;;  %10425 = vst [vmem:[#allocation83_spill] sm:$0xff] %v7655_v8 }
 0x2c1   : > { %10424 = vst [vmem:[#allocation82_spill] sm:$0xff] %v7651_v54 }
 0x2c2   : > { %2247 = vrot.lane.b32.xlu1 %v7551_v47, %s5871_s26 }
 0x2c4   : > { %2561 = vrot.lane.b32.xlu0 %v7543_v22, %s5875_s17  ;;  %v7661_v41 = vpop.permute.xlu0 %2684 }
 0x2c5   : > { %10427 = vst [vmem:[#allocation84_spill] sm:$0xff] %v7661_v41 }
 0x2c6   : > { %2325 = vrot.lane.b32.xlu1 %v7551_v47, %s5872_s27 }
 0x2c8   : > { %2680 = vperm.xlu0 %5803, %v7572_v52  }
 0x2ca   : > { %2403 = vrot.lane.b32.xlu1 %v7551_v47, %s5873_s28 }
 0x2cc   : > { %2477 = vrot.lane.b32.xlu0 %v7457_v11, %s5874_s30 }
 0x2ce   : > { %2481 = vrot.lane.b32.xlu1 %v7551_v47, %s5874_s30 }
 0x2d0   : > { %2557 = vrot.lane.b32.xlu0 %v7482_v16, %s5875_s17 }
 0x2d2   : > { %2559 = vrot.lane.b32.xlu1 %v7551_v47, %s5875_s17 }
 0x2d4   : > { %2629 = vrot.lane.b32.xlu0 %v7499_v18, %s5876_s0 }
 0x2d6   : > { %2241 = vrot.lane.b32.xlu1 %v7537_v48, %s5871_s26  ;;  %s5883_s26 = smov 3  }
 0x2d8   : > { %2676 = vperm.xlu0 %5803, %v7602_v49  }
 0x2da   : > { %2319 = vrot.lane.b32.xlu1 %v7537_v48, %s5872_s27 }
 0x2dc   : > { %2717 = vrot.lane.b32.xlu0 %v7543_v22, %s5877_s25 }
 0x2de   : > { %2397 = vrot.lane.b32.xlu1 %v7537_v48, %s5873_s28  ;;  %s5884_s28 = smov 80  }
 0x2e0   : > { %2547 = vrot.lane.b32.xlu0 %v7453_v3, %s5875_s17 }
 0x2e2   : > { %2475 = vrot.lane.b32.xlu1 %v7537_v48, %s5874_s30 }
 0x2e4   : > { %2627 = vrot.lane.b32.xlu0 %v7467_v35, %s5876_s0 }
 0x2e6   : > { %2553 = vrot.lane.b32.xlu1 %v7537_v48, %s5875_s17 }
 0x2e8   : > { %2672 = vperm.xlu0 %5803, %v5843_v53  }
 0x2ea   : > { %2631 = vrot.lane.b32.xlu1 %v7537_v48, %s5876_s0 }
 0x2ec   : > { %2715 = vrot.lane.b32.xlu0 %v7551_v47, %s5877_s25 }
 0x2ed   : > { %5807 = vset.pattern.permute.xlu0 %v10411_v50 }
 0x2ee   : > { %2172 = vrot.lane.b32.xlu1 %v7543_v22, %s5870_s18 }
 0x2f0   : > { %2705 = vrot.lane.b32.xlu0 %v7467_v35, %s5877_s25 }
 0x2f2   : > { %2327 = vrot.lane.b32.xlu1 %v7543_v22, %s5872_s27 }
 0x2f4   : > { %2750 = vperm.xlu0 %5807, %v5843_v53  }
 0x2f6   : > { %2483 = vrot.lane.b32.xlu1 %v7543_v22, %s5874_s30 }
 0x2f8   : > { %5808 = vset.pattern.permute.xlu0 %v10426_v38 }
 0x2f9   : > { %2810 = vperm.xlu0 %5808, %v2784_v2   ;;  %v10431_v2 = vmov 1  }
 0x2fa   : > { %2639 = vrot.lane.b32.xlu1 %v7543_v22, %s5876_s0 }
 0x2fc   : > { %v7665_v14 = vpop.permute.xlu1 %2158 }
 0x2fd   : > { %2711 = vrot.lane.b32.xlu0 %v7457_v11, %s5877_s25 }
 0x2fe   : > { %v7669_v31 = vpop.permute.xlu0 %2166  ;;  %2762 = vperm.xlu1 %5804, %v10410_v13   ;;  %v7687_v13 = vld [vmem:[%s9839_s11 + $0x18] sm:$0xff] }
 0x300   : > { %v7675_v20 = vpop.permute.xlu1 %2235 }
 0x301   : > { %2795 = vperm.xlu0 %5808, %v2781_v25  }
 0x302   : > { %v7677_v60 = vpop.permute.xlu0 %2321  ;;  %2469 = vrot.lane.b32.xlu1 %v7453_v3, %s5874_s30  ;;  %s5880_s30 = smov 48  }
 0x303   : > { %5805 = vset.pattern.permute.xlu1 %v10406_v21 }
 0x304   : > { %v7682_v46 = vpop.permute.xlu1 %2313 }
 0x305   : > { %5810 = vset.pattern.permute.xlu0 %v10428_v6 }
 0x306   : > { %v7690_v42 = vpop.permute.xlu0 %2315  ;;  %2549 = vrot.lane.b32.xlu1 %v7467_v35, %s5875_s17  ;;  %3845 = vperm.xlu0 %5810, %v7687_v13  }
 0x307   : > { %10429 = vst [vmem:[#allocation85_spill] sm:$0xff] %v7690_v42 }
 0x308   : > { %v7695_v29 = vpop.permute.xlu1 %2391 }
 0x30a   : > { %v7697_v7 = vpop.permute.xlu0 %2471  ;;  %2594 = vperm.xlu1 %5805, %v5843_v53   ;;  %5817 = vset.pattern.permute.xlu0 %v10431_v2 }
 0x30b   : > { %10430 = vst [vmem:[#allocation86_spill] sm:$0xff] %v7697_v7 }
 0x30c   : > { %v7700_v25 = vpop.permute.xlu1 %2243 }
 0x30e   : > { %v7702_v1 = vpop.permute.xlu0 %2168  ;;  %2637 = vrot.lane.b32.xlu1 %v7551_v47, %s5876_s0 }
 0x30f   : > { %5806 = vset.pattern.permute.xlu1 %v10411_v50 }
 0x310   : > { %v7707_v27 = vpop.permute.xlu1 %2399 }
 0x312   : > { %v7709_v57 = vpop.permute.xlu0 %2245  ;;  %2709 = vrot.lane.b32.xlu1 %v7537_v48, %s5877_s25 }
 0x314   : > { %v7713_v62 = vpop.permute.xlu1 %2160 }
 0x316   : > { %2758 = vperm.xlu1 %5806, %v7572_v52   ;;  %v7716_v53 = vpop.permute.xlu0 %2401 }
 0x317   : > { %10432 = vst [vmem:[#allocation87_spill] sm:$0xff] %v7716_v53 }
 0x318   : > { %v7718_v4 = vpop.permute.xlu1 %2237 }
 0x31a   : > { %2555 = vrot.lane.b32.xlu1 %v7457_v11, %s5875_s17  ;;  %v7724_v37 = vpop.permute.xlu0 %2162  ;;  %s5881_s17 = smov 45  }
 0x31b   : > { %10433 = vst [vmem:[#allocation88_spill] sm:$0xff] %v7724_v37  ;;  %v7835_v37 = vld [vmem:[%s9839_s11 + $0x8] sm:$0xff] }
 0x31c   : > { %v7722_v32 = vpop.permute.xlu1 %2393  ;;  %3984 = vperm.xlu0 %5817, %v7835_v37  }
 0x31e   : > { %2635 = vrot.lane.b32.xlu1 %v7482_v16, %s5876_s0  ;;  %v7732_v52 = vpop.permute.xlu0 %2239 }
 0x31f   : > { %10435 = vst [vmem:[#allocation90_spill] sm:$0xff] %v7732_v52 }
 0x320   : > { %v7728_v59 = vpop.permute.xlu1 %2323 }
 0x321   : > { %10434 = vst [vmem:[#allocation89_spill] sm:$0xff] %v7728_v59  ;;  %v2150_v59 = vmul.f32 %v7581_v36, %v7453_v3 }
 0x322   : > { %2707 = vrot.lane.b32.xlu1 %v7499_v18, %s5877_s25  ;;  %v7739_v54 = vpop.permute.xlu0 %2317 }
 0x323   : > { %10438 = vst [vmem:[#allocation93_spill] sm:$0xff] %v7739_v54 }
 0x324   : > { %v7734_v30 = vpop.permute.xlu1 %2479 }
 0x325   : > { %10436 = vst [vmem:[#allocation91_spill] sm:$0xff] %v7734_v30 }
 0x326   : > { %2754 = vperm.xlu1 %5806, %v7602_v49   ;;  %v7748_v8 = vpop.permute.xlu0 %2473  ;;  %v2783_v49 = vld [vmem:[%s9835_s7 + $0x10] sm:$0xff] }
 0x327   : > { %10440 = vst [vmem:[#allocation95_spill] sm:$0xff] %v7748_v8  ;;  %v2868_v8 = vld [vmem:[%s9838_s10 + $0x18] sm:$0xff] }
 0x328   : > { %v7737_v50 = vpop.permute.xlu1 %2395 }
 0x329   : > { %10437 = vst [vmem:[#allocation92_spill] sm:$0xff] %v7737_v50  ;;  %v2867_v50 = vld [vmem:[%s9838_s10 + $0x10] sm:$0xff] }
 0x32a   : > { %2625 = vrot.lane.b32.xlu1 %v7453_v3, %s5876_s0  ;;  %v2165_v43 = vpop.permute.xlu0 %2164 }
 0x32b   : > { %5809 = vset.pattern.permute.xlu1 %v10426_v38  ;;  %v2183_v38 = vld [vmem:[%s9836_s8] ss:$8 sm:$0x3] }
 0x32c   : > { %v7744_v24 = vpop.permute.xlu1 %2551 }
 0x32d   : > { %10439 = vst [vmem:[#allocation94_spill] sm:$0xff] %v7744_v24  ;;  %v2782_v24 = vld [vmem:[%s9835_s7 + $0x8] sm:$0xff] }
 0x32e   : > { %2633 = vrot.lane.b32.xlu1 %v7457_v11, %s5876_s0  ;;  %v7766_v23 = vpop.permute.xlu0 %2249  ;;  %s5882_s0 = smov 125  }
 0x330   : > { %v7750_v45 = vpop.permute.xlu1 %2170 }
 0x331   : > { %10441 = vst [vmem:[#allocation96_spill] sm:$0xff] %v7750_v45 }
 0x332   : > { %2713 = vrot.lane.b32.xlu1 %v7482_v16, %s5877_s25 }
 0x334   : > { %v7757_v63 = vpop.permute.xlu1 %2247 }
 0x335   : > { %10442 = vst [vmem:[#allocation97_spill] sm:$0xff] %v7757_v63 }
 0x336   : > { %2805 = vperm.xlu1 %5809, %v2783_v49   ;;  %v7775_v49 = vpop.permute.xlu0 %2405 }
 0x338   : > { %v7759_v21 = vpop.permute.xlu1 %2325 }
 0x339   : > { %10443 = vst [vmem:[#allocation98_spill] sm:$0xff] %v7759_v21 }
 0x33a   : > { %2703 = vrot.lane.b32.xlu1 %v7453_v3, %s5877_s25  ;;  %v2175_v3 = vsel %vm2174_vm9, %v7665_v14, %v7669_v31  ;;  %s9813_s25 = scalar_lea.vmem %s9844_s16, %s5716_s29 }
 0x33c   : > { %v7768_v58 = vpop.permute.xlu1 %2403 }
 0x33d   : > { %10444 = vst [vmem:[#allocation99_spill] sm:$0xff] %v7768_v58  ;;  %v7785_v58 = vpop.permute.xlu0 %2561 }
 0x33e   : > { %2800 = vperm.xlu1 %5809, %v2782_v24   ;;  %v2865_v24 = vld [vmem:[%s9838_s10] sm:$0xff]  ;;  %10447 = vst [vmem:[#allocation102_spill] sm:$0xff] %v7785_v58 }
 0x340   : > { %v7773_v44 = vpop.permute.xlu1 %2481 }
 0x341   : > { %10445 = vst [vmem:[#allocation100_spill] sm:$0xff] %v7773_v44 }
 0x342   : > { %2886 = vperm.xlu1 %5809, %v2868_v8  }
 0x343   : > { %v7789_v44 = vpop.permute.xlu0 %2680 }
 0x344   : > { %v7780_v19 = vpop.permute.xlu1 %2559  ;;  %10448 = vst [vmem:[#allocation103_spill] sm:$0xff] %v7789_v44 }
 0x345   : > { %10446 = vst [vmem:[#allocation101_spill] sm:$0xff] %v7780_v19 }
 0x346   : > { %2881 = vperm.xlu1 %5809, %v2867_v50  }
 0x347   : > { %v7796_v21 = vpop.permute.xlu0 %2477 }
 0x348   : > { %v7787_v7 = vpop.permute.xlu1 %2241  ;;  %10449 = vst [vmem:[#allocation104_spill] sm:$0xff] %v7796_v21  ;;  %v5701_v21 = vld [vmem:[%s9836_s8 + $0x2] ss:$8 sm:$0x3] }
 0x34a   : > { %2871 = vperm.xlu1 %5809, %v2865_v24  }
 0x34b   : > { %v7801_v19 = vpop.permute.xlu0 %2557 }
 0x34c   : > { %v7791_v30 = vpop.permute.xlu1 %2319  ;;  %10450 = vst [vmem:[#allocation105_spill] sm:$0xff] %v7801_v19  ;;  %v5700_v19 = vld [vmem:[%s9836_s8 + $0x1] ss:$8 sm:$0x3] }
 0x34e   : > { %3914 = vperm.xlu1 %5809, %v7687_v13  }
 0x34f   : > { %v7807_v24 = vpop.permute.xlu0 %2629 }
 0x350   : > { %v7794_v8 = vpop.permute.xlu1 %2397  ;;  %10453 = vst [vmem:[#allocation108_spill] sm:$0xff] %v7807_v24  ;;  %v10456_v24 = vld [vmem:[#allocation45_spill] sm:$0xff] }
 0x351   : > { %v7824_v51 = vrot.slane %v2183_v38, %v10456_v24  ;;  %v7840_v42 = vrot.slane %v5701_v21, %v10456_v24 }
 0x352   : > { %5811 = vset.pattern.permute.xlu1 %v10428_v6 }
 0x353   : > { %v7809_v52 = vpop.permute.xlu0 %2676 }
 0x354   : > { %v7799_v50 = vpop.permute.xlu1 %2475  ;;  %10454 = vst [vmem:[#allocation109_spill] sm:$0xff] %v7809_v52  ;;  %v10457_v52 = vld [vmem:[#allocation46_spill] sm:$0xff] }
 0x355   : > { %v7827_v55 = vrot.slane %v2183_v38, %v10457_v52  ;;  %v7843_v5 = vrot.slane %v5701_v21, %v10457_v52  ;;  %v5702_v38 = vld [vmem:[%s9836_s8 + $0x3] ss:$8 sm:$0x3]  ;;  %v2179_v21 = vsel %vm2174_vm9, %v7669_v31, %v7665_v14  ;;  %v7864_v17 = vrot.slane %v5700_v19, %v10457_v52 }
 0x356   : > { %v7877_v14 = vrot.slane %v5702_v38, %v10457_v52  ;;  %v7881_v31 = vmul.f32 %v7557_v39, %v7482_v16  ;;  %v7896_v16 = vmul.f32 %v7531_v9, %v7499_v18  ;;  %v2157_v18 = vmul.f32 %v7439_v34, %v7543_v22 }
 0x357   : > { %v7830_v45 = vpop.permute.xlu0 %2717  ;;  %v2196_v58 = vmul.f32 %v7827_v55, %v2175_v3  ;;  %v2330_v22 = vsel %vm2329_vm10, %v7682_v46, %v7677_v60 }
 0x358   : > { %v7803_v54 = vpop.permute.xlu1 %2553  ;;  %10458 = vst [vmem:[#allocation43_spill] sm:$0xff] %v7830_v45  ;;  %v2151_v45 = vmul.f32 %v7581_v36, %v7457_v11  ;;  %v7869_v11 = vmul.f32 %v7557_v39, %v7467_v35  ;;  %10460 = vst [vmem:[#allocation111_spill] sm:$0xff] %v7881_v31  ;;  %v5704_v39 = vld [vmem:[%s9836_s8 + $0x5] ss:$8 sm:$0x3] }
 0x359   : > { %10451 = vst [vmem:[#allocation106_spill] sm:$0xff] %v7803_v54  ;;  %v7874_v54 = vrot.slane %v5702_v38, %v10456_v24  ;;  %v2256_v38 = vsel %vm2251_vm11, %v7700_v25, %v7675_v20  ;;  %10461 = vst [vmem:[#allocation112_spill] sm:$0xff] %v7896_v16  ;;  %v7945_v53 = vrot.slane %v5704_v39, %v10457_v52 }
 0x35a   : > { %10459 = vst [vmem:[#allocation110_spill] sm:$0xff] %v7869_v11  ;;  %v2195_v11 = vmul.f32 %v7824_v51, %v2179_v21  ;;  %v2156_v21 = vmul.f32 %v7439_v34, %v7537_v48  ;;  %v5705_v34 = vld [vmem:[%s9836_s8 + $0x6] ss:$8 sm:$0x3] }
 0x35b   : > { %v7908_v3 = vpop.permute.xlu0 %2547  ;;  %10465 = vst [vmem:[#allocation115_spill] sm:$0xff] %v7945_v53  ;;  %v7986_v53 = vrot.slane %v5705_v34, %v10457_v52 }
 0x35c   : > { %v7805_v63 = vpop.permute.xlu1 %2631  ;;  %10464 = vst [vmem:[#allocation114_spill] sm:$0xff] %v7908_v3 }
 0x35d   : > { %10452 = vst [vmem:[#allocation107_spill] sm:$0xff] %v7805_v63  ;;  %v7861_v63 = vrot.slane %v5700_v19, %v10456_v24  ;;  %v5703_v19 = vld [vmem:[%s9836_s8 + $0x4] ss:$8 sm:$0x3] }
 0x35f   : > { %v2273_v3 = vmul.f32 %v7861_v63, %v2256_v38 }
 0x360   : > { %v2173_v44 = vpop.permute.xlu1 %2172 }
 0x361   : > { %v2182_v36 = vsel %vm2174_vm9, %v2173_v44, %v2165_v43  ;;  %v2178_v35 = vsel %vm2174_vm9, %v2165_v43, %v2173_v44  ;;  %v10462_v44 = vmov 2   ;;  %v7906_v43 = vmul.f32 %v7531_v9, %v7551_v47 }
 0x362   : > { %5818 = vset.pattern.permute.xlu0 %v10462_v44  ;;  %v2201_v16 = vmul.f32 %v7824_v51, %v2182_v36  ;;  %v2334_v44 = vsel %vm2329_vm10, %v7677_v60, %v7682_v46  ;;  %v7921_v9 = vrot.slane %v5703_v19, %v10456_v24  ;;  %v7924_v47 = vrot.slane %v5703_v19, %v10457_v52 }
 0x363   : > { %10463 = vst [vmem:[#allocation113_spill] sm:$0xff] %v7906_v43  ;;  %4070 = vperm.xlu0 %5818, %v7687_v13   ;;  %v2202_v48 = vmul.f32 %v7827_v55, %v2178_v35  ;;  %v2252_v36 = vsel %vm2251_vm11, %v7675_v20, %v7700_v25  ;;  %v7940_v19 = vrot.slane %v5704_v39, %v10456_v24 }
 0x364   : > { %v7821_v41 = vpop.permute.xlu1 %2327  ;;  %v2219_v35 = vmul.f32 %v7591_v61, %v2195_v11  ;;  %v2220_v43 = vmul.f32 %v7591_v61, %v2196_v58  ;;  %v2259_v60 = vsel %vm2251_vm11, %v7766_v23, %v7787_v7  ;;  %v2351_v46 = vmul.f32 %v7840_v42, %v2334_v44 }
 0x365   : > { %v2255_v20 = vsel %vm2251_vm11, %v7787_v7, %v7766_v23  ;;  %v2225_v25 = vmul.f32 %v7523_v28, %v2201_v16  ;;  %v7958_v11 = vrot.slane %v5705_v34, %v10456_v24  ;;  %v2352_v58 = vmul.f32 %v7843_v5, %v2330_v22  ;;  %v7972_v23 = vld [vmem:[%s9839_s11 + $0x10] sm:$0xff]  ;;  %v7976_v22 = vpop.permute.xlu0 %2627  ;;  %v5706_v34 = vld [vmem:[%s9836_s8 + $0x7] ss:$8 sm:$0x3] }
 0x366   : > { %v2274_v61 = vmul.f32 %v7864_v17, %v2252_v36  ;;  %v2226_v38 = vmul.f32 %v7523_v28, %v2202_v48  ;;  %v2337_v39 = vsel %vm2329_vm10, %v7821_v41, %v7791_v30  ;;  %v2297_v7 = vmul.f32 %v7615_v56, %v2273_v3  ;;  %10467 = vst [vmem:[#allocation117_spill] sm:$0xff] %v7976_v22 }
 0x367   : > { %10466 = vst [vmem:[#allocation116_spill] sm:$0xff] %v7958_v11  ;;  %v2279_v16 = vmul.f32 %v7861_v63, %v2259_v60  ;;  %v2333_v28 = vsel %vm2329_vm10, %v7791_v30, %v7821_v41  ;;  %4066 = vperm.xlu0 %5818, %v7972_v23   ;;  %3840 = vperm.xlu1 %5811, %v7972_v23  }
 0x368   : > { %v7901_v31 = vpop.permute.xlu1 %2483  ;;  %v2227_v48 = vadd.f32 %v2219_v35, %v2150_v59  ;;  %v2228_v36 = vadd.f32 %v2220_v43, %v2151_v45  ;;  %v2280_v11 = vmul.f32 %v7864_v17, %v2255_v20  ;;  %v2375_v3 = vmul.f32 %v7585_v12, %v2351_v46 }
 0x369   : > { %v2412_v60 = vsel %vm2407_vm12, %v7707_v27, %v7695_v29  ;;  %v2233_v22 = vadd.f32 %v2225_v25, %v2156_v21  ;;  %v2357_v30 = vmul.f32 %v7840_v42, %v2337_v39  ;;  %v2376_v41 = vmul.f32 %v7585_v12, %v2352_v58  ;;  %v8027_v25 = vpop.permute.xlu0 %2672 }
 0x36a   : > { %v2298_v59 = vmul.f32 %v7615_v56, %v2274_v61  ;;  %v2234_v45 = vadd.f32 %v2226_v38, %v2157_v18  ;;  %v2358_v43 = vmul.f32 %v7843_v5, %v2333_v28  ;;  %v2305_v46 = vadd.f32 %v2297_v7, %v2227_v48 }
 0x36b   : > { %v2408_v21 = vsel %vm2407_vm12, %v7695_v29, %v7707_v27  ;;  %v2303_v12 = vmul.f32 %v7545_v40, %v2279_v16  ;;  %4062 = vperm.xlu0 %5818, %v7835_v37   ;;  %5812 = vset.pattern.permute.xlu1 %v10431_v2  ;;  %v2429_v56 = vmul.f32 %v7874_v54, %v2412_v60 }
 0x36c   : > { %v7967_v44 = vpop.permute.xlu1 %2639  ;;  %v2180_v18 = vsel %vm2174_vm9, %v7702_v1, %v7713_v62  ;;  %v2304_v20 = vmul.f32 %v7545_v40, %v2280_v11  ;;  %v2415_v27 = vsel %vm2407_vm12, %v7775_v49, %v7794_v8  ;;  %3992 = vperm.xlu1 %5812, %v7687_v13   ;;  %v2411_v29 = vsel %vm2407_vm12, %v7794_v8, %v7775_v49 }
 0x36d   : > { %v2311_v58 = vadd.f32 %v2303_v12, %v2233_v22  ;;  %v2381_v61 = vmul.f32 %v7549_v0, %v2357_v30  ;;  %v8031_v40 = vrot.slane %v5706_v34, %v10456_v24  ;;  %v2306_v11 = vadd.f32 %v2298_v59, %v2228_v36  ;;  %v8080_v12 = vpop.permute.xlu0 %2715 }
 0x36e   : > { %v2430_v38 = vmul.f32 %v7877_v14, %v2408_v21  ;;  %v2312_v39 = vadd.f32 %v2304_v20, %v2234_v45  ;;  %v2382_v7 = vmul.f32 %v7549_v0, %v2358_v43  ;;  %v2197_v28 = vmul.f32 %v7824_v51, %v2180_v18 }
 0x36f   : > { %v2435_v49 = vmul.f32 %v7874_v54, %v2415_v27  ;;  %v2489_v8 = vsel %vm2485_vm13, %v7799_v50, %v7901_v31  ;;  %v2493_v22 = vsel %vm2485_vm13, %v7901_v31, %v7799_v50  ;;  %v2383_v48 = vadd.f32 %v2375_v3, %v2305_v46  ;;  %v10468_v27 = vld [vmem:[#allocation87_spill] sm:$0xff] }
 0x370   : > { %v2453_v36 = vmul.f32 %v7647_v26, %v2429_v56  ;;  %v2176_v0 = vsel %vm2174_vm9, %v7713_v62, %v7702_v1  ;;  %v2436_v60 = vmul.f32 %v7877_v14, %v2411_v29  ;;  %5813 = vset.pattern.permute.xlu1 %v10428_v6  ;;  %v2253_v30 = vsel %vm2251_vm11, %v7718_v4, %v7709_v57  ;;  %v8068_v62 = vld [vmem:[%s9839_s11] sm:$0xff]  ;;  %v10469_v29 = vld [vmem:[#allocation102_spill] sm:$0xff] }
 0x371   : > { %v2257_v50 = vsel %vm2251_vm11, %v7709_v57, %v7718_v4  ;;  %v2389_v31 = vadd.f32 %v2381_v61, %v2311_v58  ;;  %v8063_v3 = vrot.slane %v5706_v34, %v10457_v52  ;;  %3835 = vperm.xlu1 %5813, %v7835_v37   ;;  %v2384_v1 = vadd.f32 %v2376_v41, %v2306_v11  ;;  %v10470_v58 = vld [vmem:[#allocation106_spill] sm:$0xff] }
 0x372   : > { %v2390_v59 = vadd.f32 %v2382_v7, %v2312_v39  ;;  %v2513_v45 = vmul.f32 %v7921_v9, %v2489_v8  ;;  %v2514_v43 = vmul.f32 %v7924_v47, %v2493_v22  ;;  %4058 = vperm.xlu0 %5818, %v8068_v62   ;;  %v2454_v4 = vmul.f32 %v7647_v26, %v2430_v38 }
 0x373   : > { %v2198_v57 = vmul.f32 %v7827_v55, %v2176_v0  ;;  %v2221_v34 = vmul.f32 %v7525_v33, %v2197_v28  ;;  %v2459_v21 = vmul.f32 %v7605_v10, %v2435_v49  ;;  %v8082_v41 = vadd.f32 %v2453_v36, %v2383_v48  ;;  %v10473_v48 = vld [vmem:[#allocation110_spill] sm:$0xff]  ;;  %v10474_v0 = vld [vmem:[#allocation107_spill] sm:$0xff] }
 0x374   : > { %v2275_v56 = vmul.f32 %v7861_v63, %v2257_v50  ;;  %v2276_v18 = vmul.f32 %v7864_v17, %v2253_v30  ;;  %v2460_v20 = vmul.f32 %v7605_v10, %v2436_v60  ;;  %v2413_v26 = vsel %vm2407_vm12, %v10468_v27, %v7722_v32  ;;  %v10471_v10 = vld [vmem:[#allocation76_spill] sm:$0xff] }
 0x375   : > { %v2567_v61 = vsel %vm2563_vm14, %v10470_v58, %v10469_v29  ;;  %v2571_v11 = vsel %vm2563_vm14, %v10469_v29, %v10470_v58  ;;  %v2467_v38 = vadd.f32 %v2459_v21, %v2389_v31  ;;  %5814 = vset.pattern.permute.xlu1 %v10431_v2  ;;  %v2537_v7 = vmul.f32 %v10471_v10, %v2513_v45  ;;  %v10475_v50 = vld [vmem:[#allocation28_spill] sm:$0xff]  ;;  %v10477_v45 = vld [vmem:[#allocation89_spill] sm:$0xff]  ;;  %v8134_v29 = vpop.permute.xlu0 %2705 }
 0x376   : > { %v2468_v39 = vadd.f32 %v2460_v20, %v2390_v59  ;;  %v2538_v28 = vmul.f32 %v10471_v10, %v2514_v43  ;;  %v10472_v8 = vmov 3   ;;  %3988 = vperm.xlu1 %5814, %v7972_v23   ;;  %v2222_v22 = vmul.f32 %v7525_v33, %v2198_v57  ;;  %v10476_v59 = vld [vmem:[#allocation85_spill] sm:$0xff]  ;;  %v10478_v57 = vld [vmem:[#allocation115_spill] sm:$0xff]  ;;  %v10479_v10 = vld [vmem:[#allocation116_spill] sm:$0xff] }
 0x377   : > { %5822 = vset.pattern.permute.xlu0 %v10472_v8  ;;  %v2229_v36 = vadd.f32 %v2221_v34, %v10473_v48  ;;  %v2645_v60 = vsel %vm2641_vm15, %v10474_v0, %v7967_v44  ;;  %v2649_v30 = vsel %vm2641_vm15, %v7967_v44, %v10474_v0  ;;  %v2299_v31 = vmul.f32 %v10475_v50, %v2275_v56 }
 0x378   : > { %4140 = vperm.xlu0 %5822, %v7835_v37   ;;  %v2335_v33 = vsel %vm2329_vm10, %v10477_v45, %v10476_v59  ;;  %v2591_v43 = vmul.f32 %v7940_v19, %v2567_v61  ;;  %v2592_v34 = vmul.f32 %v10478_v57, %v2571_v11  ;;  %v2300_v21 = vmul.f32 %v10475_v50, %v2276_v18 }
 0x379   : > { %v7997_v35 = vpop.permute.xlu1 %2762  ;;  %v2409_v44 = vsel %vm2407_vm12, %v7722_v32, %v10468_v27  ;;  %v2431_v20 = vmul.f32 %v7874_v54, %v2413_v26  ;;  %v2331_v56 = vsel %vm2329_vm10, %v10476_v59, %v10477_v45  ;;  %v2545_v58 = vadd.f32 %v2537_v7, %v2467_v38  ;;  %v10480_v27 = vld [vmem:[#allocation111_spill] sm:$0xff]  ;;  %v10483_v7 = vld [vmem:[#allocation96_spill] sm:$0xff] }
 0x37a   : > { %v2546_v61 = vadd.f32 %v2538_v28, %v2468_v39  ;;  %v2669_v11 = vmul.f32 %v10479_v10, %v2645_v60  ;;  %v2670_v18 = vmul.f32 %v7986_v53, %v2649_v30  ;;  %5815 = vset.pattern.permute.xlu1 %v10428_v6  ;;  %v8141_v32 = vadd.f32 %v2454_v4, %v2384_v1  ;;  %v10482_v39 = vld [vmem:[#allocation88_spill] sm:$0xff]  ;;  %v10485_v30 = vld [vmem:[#allocation75_spill] sm:$0xff] }
 0x37b   : > { %v2230_v26 = vadd.f32 %v2222_v22, %v10480_v27  ;;  %v2353_v0 = vmul.f32 %v7840_v42, %v2335_v33  ;;  %v10481_v50 = vmov 5   ;;  %3830 = vperm.xlu1 %5815, %v8068_v62   ;;  %v2307_v38 = vadd.f32 %v2299_v31, %v2229_v36  ;;  %v10484_v60 = vld [vmem:[#allocation80_spill] sm:$0xff] }
 0x37c   : > { %5823 = vset.pattern.permute.xlu0 %v10481_v50  ;;  %v2181_v28 = vsel %vm2174_vm9, %v10483_v7, %v10482_v39  ;;  %v2615_v6 = vmul.f32 %v10484_v60, %v2591_v43  ;;  %v2616_v1 = vmul.f32 %v10484_v60, %v2592_v34  ;;  %v2432_v22 = vmul.f32 %v7877_v14, %v2409_v44  ;;  %v10486_v33 = vld [vmem:[#allocation84_spill] sm:$0xff]  ;;  %v10487_v43 = vld [vmem:[#allocation37_spill] sm:$0xff]  ;;  %v8164_v60 = vpop.permute.xlu0 %2750 }
 0x37d   : > { %v8035_v16 = vpop.permute.xlu1 %2469  ;;  %4226 = vperm.xlu0 %5823, %v7687_v13   ;;  %v2308_v4 = vadd.f32 %v2300_v21, %v2230_v26  ;;  %v8157_v59 = vmul.f32 %v10485_v30, %v2431_v20  ;;  %v2354_v45 = vmul.f32 %v7843_v5, %v2331_v56  ;;  %v2693_v27 = vmul.f32 %v10486_v33, %v2669_v11  ;;  %v10489_v21 = vld [vmem:[#allocation43_spill] sm:$0xff]  ;;  %v10492_v11 = vld [vmem:[#allocation97_spill] sm:$0xff] }
 0x37e   : > { %v2623_v36 = vadd.f32 %v2615_v6, %v2545_v58  ;;  %v2624_v31 = vadd.f32 %v2616_v1, %v2546_v61  ;;  %v2694_v50 = vmul.f32 %v10486_v33, %v2670_v18  ;;  %v2377_v24 = vmul.f32 %v10487_v43, %v2353_v0  ;;  %10488 = vst [vmem:[#allocation87_spill] sm:$0xff] %v8164_v60  ;;  %v10491_v61 = vld [vmem:[#allocation90_spill] sm:$0xff] }
 0x37f   : > { %v2199_v34 = vmul.f32 %v7824_v51, %v2181_v28  ;;  %v10490_v56 = vmov 0   ;;  %v2177_v58 = vsel %vm2174_vm9, %v10482_v39, %v10483_v7  ;;  %v2258_v51 = vsel %vm2251_vm11, %v10492_v11, %v10491_v61  ;;  %v10493_v7 = vld [vmem:[#allocation93_spill] sm:$0xff]  ;;  %v10494_v28 = vld [vmem:[#allocation98_spill] sm:$0xff] }
 0x380   : > { %5816 = vset.pattern.permute.xlu1 %v10490_v56  ;;  %v2378_v0 = vmul.f32 %v10487_v43, %v2354_v45  ;;  %v2254_v39 = vsel %vm2251_vm11, %v10491_v61, %v10492_v11  ;;  %v2336_v6 = vsel %vm2329_vm10, %v10494_v28, %v10493_v7  ;;  %v2701_v1 = vadd.f32 %v2693_v27, %v2623_v36  ;;  %v10495_v45 = vld [vmem:[#allocation91_spill] sm:$0xff]  ;;  %v10496_v43 = vld [vmem:[#allocation86_spill] sm:$0xff]  ;;  %v10497_v61 = vld [vmem:[#allocation21_spill] sm:$0xff] }
 0x381   : > { %v8073_v46 = vpop.permute.xlu1 %2549  ;;  %4222 = vperm.xlu0 %5823, %v7972_v23   ;;  %3902 = vperm.xlu1 %5816, %v8068_v62   ;;  %v2702_v33 = vadd.f32 %v2694_v50, %v2624_v31  ;;  %v2223_v11 = vmul.f32 %v10497_v61, %v2199_v34  ;;  %v2277_v60 = vmul.f32 %v7861_v63, %v2258_v51  ;;  %v10498_v63 = vld [vmem:[#allocation92_spill] sm:$0xff]  ;;  %v2811_v34 = vpop.permute.xlu0 %2810 }
 0x382   : > { %v2385_v56 = vadd.f32 %v2377_v24, %v2307_v38  ;;  %v2491_v36 = vsel %vm2485_vm13, %v10495_v45, %v10496_v43  ;;  %v2278_v27 = vmul.f32 %v7864_v17, %v2254_v39  ;;  %v2355_v50 = vmul.f32 %v7840_v42, %v2336_v6  ;;  %v10499_v24 = vld [vmem:[#allocation99_spill] sm:$0xff]  ;;  %v10500_v42 = vld [vmem:[#allocation112_spill] sm:$0xff] }
 0x383   : > { %v2414_v38 = vsel %vm2407_vm12, %v10499_v24, %v10498_v63  ;;  %v2231_v39 = vadd.f32 %v2223_v11, %v10500_v42  ;;  %v10506_v11 = vld [vmem:[#allocation30_spill] sm:$0xff]  ;;  %v10514_v42 = vld [vmem:[#allocation79_spill] sm:$0xff] }
 0x385   : > { %v8102_v49 = vpop.permute.xlu1 %2594  ;;  %4218 = vperm.xlu0 %5823, %v7835_v37   ;;  %5819 = vset.pattern.permute.xlu1 %v10472_v8 }
 0x386   : > { %4148 = vperm.xlu1 %5819, %v7687_v13  }
 0x389   : > { %v8138_v48 = vpop.permute.xlu1 %2637  ;;  %4214 = vperm.xlu0 %5823, %v8068_v62  }
 0x38a   : > { %5820 = vset.pattern.permute.xlu1 %v10431_v2 }
 0x38b   : > { %3980 = vperm.xlu1 %5820, %v8068_v62  }
 0x38d   : > { %v2710_v52 = vpop.permute.xlu1 %2709 }
 0x38e   : > { %v2723_v44 = vsel %vm2719_vm0, %v2710_v52, %v10489_v21  ;;  %v2727_v20 = vsel %vm2719_vm0, %v10489_v21, %v2710_v52  ;;  %v8185_v52 = vmul.f32 %v10485_v30, %v2432_v22 }
 0x38f   : > { %v2747_v18 = vmul.f32 %v8031_v40, %v2723_v44  ;;  %v2748_v26 = vmul.f32 %v8063_v3, %v2727_v20  ;;  %v2487_v44 = vsel %vm2485_vm13, %v10496_v43, %v10495_v45  ;;  %v2200_v20 = vmul.f32 %v7827_v55, %v2177_v58  ;;  %5821 = vset.pattern.permute.xlu1 %v10472_v8 }
 0x390   : > { %v2332_v55 = vsel %vm2329_vm10, %v10493_v7, %v10494_v28  ;;  %v10501_v7 = vld [vmem:[#allocation26_spill] sm:$0xff]  ;;  %4144 = vperm.xlu1 %5821, %v7972_v23  }
 0x391   : > { %v2771_v21 = vmul.f32 %v7997_v35, %v2747_v18  ;;  %v2772_v22 = vmul.f32 %v7997_v35, %v2748_v26  ;;  %v8199_v30 = vpop.permute.xlu1 %2758  ;;  %v2386_v18 = vadd.f32 %v2378_v0, %v2308_v4  ;;  %v2224_v26 = vmul.f32 %v10497_v61, %v2200_v20  ;;  %v10502_v4 = vld [vmem:[#allocation100_spill] sm:$0xff]  ;;  %v10503_v0 = vld [vmem:[#allocation95_spill] sm:$0xff] }
 0x392   : > { %v2301_v28 = vmul.f32 %v10501_v7, %v2277_v60  ;;  %v2356_v6 = vmul.f32 %v7843_v5, %v2332_v55  ;;  %v2488_v45 = vsel %vm2485_vm13, %v10503_v0, %v10502_v4  ;;  %v2509_v5 = vmul.f32 %v7921_v9, %v2487_v44 }
 0x393   : > { %v2779_v35 = vadd.f32 %v2771_v21, %v2701_v1  ;;  %v2780_v31 = vadd.f32 %v2772_v22, %v2702_v33  ;;  %v2410_v1 = vsel %vm2407_vm12, %v10498_v63, %v10499_v24  ;;  %v2433_v22 = vmul.f32 %v7874_v54, %v2414_v38  ;;  %v10507_v54 = vld [vmem:[#allocation113_spill] sm:$0xff] }
 0x394   : > { %v2510_v20 = vmul.f32 %v7924_v47, %v2491_v36  ;;  %v2302_v61 = vmul.f32 %v10501_v7, %v2278_v27  ;;  %v2232_v55 = vadd.f32 %v2224_v26, %v10507_v54  ;;  %v2309_v63 = vadd.f32 %v2301_v28, %v2231_v39 }
 0x395   : > { %vm2791_vm1 = vcmp.ge.f32.partialorder %v2779_v35, 0.0  ;;  %vm2792_vm2 = vcmp.ge.f32.partialorder %v2780_v31, 0.0  ;;  %v2819_v58 = vmul.f32 %v2811_v34, %v2779_v35  ;;  %v2820_v51 = vmul.f32 %v2811_v34, %v2780_v31  ;;  %v8224_v17 = vpop.permute.xlu1 %2555  ;;  %v10510_v34 = vld [vmem:[#allocation78_spill] sm:$0xff] }
 0x396   : > { %v2380_v36 = vmul.f32 %v10506_v11, %v2356_v6  ;;  %v2434_v27 = vmul.f32 %v7877_v14, %v2410_v1  ;;  %v2492_v2 = vsel %vm2485_vm13, %v10502_v4, %v10503_v0  ;;  %v2463_v38 = vadd.f32 %v8157_v59, %v2385_v56  ;;  %v10515_v6 = vld [vmem:[#allocation101_spill] sm:$0xff]  ;;  %v10516_v1 = vld [vmem:[#allocation94_spill] sm:$0xff] }
 0x397   : > { %v2827_v33 = vsel %vm2791_vm1, %v2779_v35, %v2819_v58  ;;  %v2828_v21 = vsel %vm2792_vm2, %v2780_v31, %v2820_v51  ;;  %v2379_v35 = vmul.f32 %v10506_v11, %v2355_v50  ;;  %v2511_v50 = vmul.f32 %v7921_v9, %v2488_v45 }
 0x398   : > { %v8241_v43 = vand.u32 4294901760, %v2828_v21  ;;  %v8243_v60 = vand.u32 4294901760, %v2827_v33  ;;  %v2457_v58 = vmul.f32 %v10510_v34, %v2433_v22  ;;  %v10513_v14 = vmov 6  }
 0x399   : > { %v8249_v31 = vpop.permute.xlu1 %2635  ;;  %5827 = vset.pattern.permute.xlu0 %v10513_v14  ;;  %v2533_v39 = vmul.f32 %v10514_v42, %v2509_v5  ;;  %v2310_v7 = vadd.f32 %v2302_v61, %v2232_v55  ;;  %v2387_v28 = vadd.f32 %v2379_v35, %v2309_v63  ;;  %v2566_v59 = vsel %vm2563_vm14, %v10516_v1, %v10515_v6  ;;  %v10517_v61 = vld [vmem:[#allocation77_spill] sm:$0xff] }
 0x39a   : > { %10504 = vst [vmem:[#allocation102_spill] sm:$0xff] %v8241_v43  ;;  %10505 = vst [vmem:[#allocation106_spill] sm:$0xff] %v8243_v60  ;;  %v8254_v24 = vsub.f32 %v2827_v33, %v8243_v60  ;;  %2911 = vmatprep.subr.mxu0 %v8241_v43  ;;  %v8258_v44 = vsub.f32 %v2828_v21, %v8241_v43  ;;  %4296 = vperm.xlu0 %5827, %v7835_v37   ;;  %vm3872_vm2 = vcmp.lt.s32.totalorder %v10455_v15, 51 }
 0x39b   : > { %2913 = vmatpush1.msra.mxu0 %v8243_v60  ;;  %v2512_v33 = vmul.f32 %v7924_v47, %v2492_v2  ;;  %v2570_v21 = vsel %vm2563_vm14, %v10515_v6, %v10516_v1  ;;  %v2464_v0 = vadd.f32 %v8185_v52, %v2386_v18  ;;  %v2388_v45 = vadd.f32 %v2380_v36, %v2310_v7  ;;  %v10520_v6 = vld [vmem:[#allocation108_spill] sm:$0xff] }
 0x39c   : > { %10508 = vst [vmem:[#allocation76_spill] sm:$0xff] %v8254_v24  ;;  %10509 = vst [vmem:[#allocation110_spill] sm:$0xff] %v8258_v44  ;;  %v8271_v51 = vand.u32 4294901760, %v8258_v44  ;;  %v8274_v26 = vand.u32 4294901760, %v8254_v24  ;;  %v2458_v5 = vmul.f32 %v10510_v34, %v2434_v27  ;;  %v2535_v11 = vmul.f32 %v10517_v61, %v2511_v50  ;;  %v10522_v1 = vld [vmem:[#allocation104_spill] sm:$0xff]  ;;  %5824 = vset.pattern.permute.xlu1 %v10513_v14 }
 0x39d   : > { %v2708_v56 = vpop.permute.xlu1 %2707  ;;  %v2465_v35 = vadd.f32 %v2457_v58, %v2387_v28  ;;  %v2589_v54 = vmul.f32 %v7940_v19, %v2566_v59  ;;  %v2590_v2 = vmul.f32 %v10478_v57, %v2570_v21  ;;  %v2644_v52 = vsel %vm2641_vm15, %v10520_v6, %v8138_v48  ;;  %4304 = vperm.xlu1 %5824, %v7687_v13  }
 0x39e   : > { %10511 = vst [vmem:[#allocation107_spill] sm:$0xff] %v8271_v51  ;;  %10512 = vst [vmem:[#allocation28_spill] sm:$0xff] %v8274_v26  ;;  %v3046_v22 = vsub.f32 %v8258_v44, %v8271_v51  ;;  %v3052_v4 = vsub.f32 %v8254_v24, %v8274_v26  ;;  %v2648_v18 = vsel %vm2641_vm15, %v8138_v48, %v10520_v6  ;;  %v10521_v27 = vmov 7   ;;  %v10526_v6 = vld [vmem:[#allocation103_spill] sm:$0xff] }
 0x39f   : > { %5828 = vset.pattern.permute.xlu0 %v10521_v27  ;;  %v2534_v50 = vmul.f32 %v10514_v42, %v2510_v20  ;;  %v8316_v34 = vadd.f32 %v2533_v39, %v2463_v38  ;;  %v2536_v58 = vmul.f32 %v10517_v61, %v2512_v33  ;;  %v2466_v7 = vadd.f32 %v2458_v5, %v2388_v45  ;;  %v10523_v33 = vld [vmem:[#allocation83_spill] sm:$0xff] }
 0x3a0   : > { %v8297_v55 = vand.u32 4294901760, %v3046_v22  ;;  %v8299_v63 = vand.u32 4294901760, %v3052_v4  ;;  %4382 = vperm.xlu0 %5828, %v7687_v13   ;;  %v2543_v28 = vadd.f32 %v2535_v11, %v2465_v35  ;;  %v2486_v48 = vsel %vm2485_vm13, %v8035_v16, %v10522_v1  ;;  %v10524_v4 = vld [vmem:[#allocation105_spill] sm:$0xff] }
 0x3a1   : > { %v8311_v36 = vpop.permute.xlu1 %2754  ;;  %v2490_v20 = vsel %vm2485_vm13, %v10522_v1, %v8035_v16  ;;  %v2667_v38 = vmul.f32 %v10479_v10, %v2644_v52  ;;  %v2668_v42 = vmul.f32 %v7986_v53, %v2648_v18  ;;  %v2722_v39 = vsel %vm2719_vm0, %v2708_v56, %v8080_v12  ;;  %v10525_v11 = vld [vmem:[#allocation117_spill] sm:$0xff]  ;;  %v10527_v1 = vld [vmem:[#allocation114_spill] sm:$0xff]  ;;  %5825 = vset.pattern.permute.xlu1 %v10472_v8 }
 0x3a2   : > { %10518 = vst [vmem:[#allocation85_spill] sm:$0xff] %v8297_v55  ;;  %10519 = vst [vmem:[#allocation89_spill] sm:$0xff] %v8299_v63  ;;  %3048 = vmatprep.subr.mxu1 %v8297_v55  ;;  %v2726_v59 = vsel %vm2719_vm0, %v8080_v12, %v2708_v56  ;;  %v2613_v21 = vmul.f32 %v10523_v33, %v2589_v54  ;;  %v2614_v22 = vmul.f32 %v10523_v33, %v2590_v2  ;;  %v10529_v33 = vld [vmem:[#allocation82_spill] sm:$0xff] }
 0x3a3   : > { %3054 = vmatpush1.msra.mxu1 %v8299_v63  ;;  %v2565_v16 = vsel %vm2563_vm14, %v8073_v46, %v10524_v4  ;;  %v2569_v45 = vsel %vm2563_vm14, %v10524_v4, %v8073_v46  ;;  %v2544_v61 = vadd.f32 %v2536_v58, %v2466_v7  ;;  %v2507_v12 = vmul.f32 %v7921_v9, %v2486_v48 }
 0x3a4   : > { %v2508_v56 = vmul.f32 %v7924_v47, %v2490_v20  ;;  %4378 = vperm.xlu0 %5828, %v7972_v23   ;;  %v2643_v35 = vsel %vm2641_vm15, %v10525_v11, %v8249_v31  ;;  %v2647_v46 = vsel %vm2641_vm15, %v8249_v31, %v10525_v11  ;;  %v2745_v54 = vmul.f32 %v8031_v40, %v2722_v39 }
 0x3a5   : > { %v2626_v5 = vpop.permute.xlu1 %2625  ;;  %v2746_v9 = vmul.f32 %v8063_v3, %v2726_v59  ;;  %v2587_v47 = vmul.f32 %v7940_v19, %v2565_v16  ;;  %v2588_v2 = vmul.f32 %v10478_v57, %v2569_v45  ;;  %v2691_v52 = vmul.f32 %v10526_v6, %v2667_v38  ;;  %4136 = vperm.xlu1 %5825, %v8068_v62  }
 0x3a6   : > { %v2692_v18 = vmul.f32 %v10526_v6, %v2668_v42  ;;  %v2542_v27 = vadd.f32 %v2534_v50, %v2464_v0  ;;  %v2621_v58 = vadd.f32 %v2613_v21, %v2543_v28  ;;  %v2622_v7 = vadd.f32 %v2614_v22, %v2544_v61  ;;  %v10528_v0 = vld [vmem:[#allocation81_spill] sm:$0xff] }
 0x3a7   : > { %v2564_v31 = vsel %vm2563_vm14, %v10527_v1, %v8224_v17  ;;  %v2568_v20 = vsel %vm2563_vm14, %v8224_v17, %v10527_v1  ;;  %v2665_v39 = vmul.f32 %v10479_v10, %v2643_v35  ;;  %v2666_v38 = vmul.f32 %v7986_v53, %v2647_v46 }
 0x3a8   : > { %4374 = vperm.xlu0 %5828, %v7835_v37   ;;  %v2531_v50 = vmul.f32 %v10528_v0, %v2507_v12  ;;  %v2532_v28 = vmul.f32 %v10528_v0, %v2508_v56  ;;  %v2769_v42 = vmul.f32 %v8199_v30, %v2745_v54  ;;  %v2770_v59 = vmul.f32 %v8199_v30, %v2746_v9  ;;  %v10530_v30 = vld [vmem:[#allocation109_spill] sm:$0xff] }
 0x3a9   : > { %v2634_v48 = vpop.permute.xlu1 %2633  ;;  %v2611_v17 = vmul.f32 %v10529_v33, %v2587_v47  ;;  %v2612_v21 = vmul.f32 %v10529_v33, %v2588_v2  ;;  %v2699_v22 = vadd.f32 %v2691_v52, %v2621_v58  ;;  %v2700_v4 = vadd.f32 %v2692_v18, %v2622_v7  ;;  %5826 = vset.pattern.permute.xlu1 %v10513_v14 }
 0x3aa   : > { %v2585_v16 = vmul.f32 %v7940_v19, %v2564_v31  ;;  %v2586_v8 = vmul.f32 %v10478_v57, %v2568_v20  ;;  %v2642_v45 = vsel %vm2641_vm15, %v2626_v5, %v2634_v48  ;;  %v2646_v61 = vsel %vm2641_vm15, %v2634_v48, %v2626_v5  ;;  %4300 = vperm.xlu1 %5826, %v7972_v23  }
 0x3ab   : > { %v2689_v56 = vmul.f32 %v10530_v30, %v2665_v39  ;;  %v2690_v11 = vmul.f32 %v10530_v30, %v2666_v38  ;;  %v2777_v5 = vadd.f32 %v2769_v42, %v2699_v22  ;;  %v2778_v54 = vadd.f32 %v2770_v59, %v2700_v4  ;;  %v2712_v39 = vpop.permute.xlu0 %2711 }
 0x3ac   : > { %4370 = vperm.xlu0 %5828, %v8068_v62   ;;  %v2539_v9 = vadd.f32 %v2531_v50, %v8082_v41  ;;  %v2540_v47 = vadd.f32 %v2532_v28, %v8141_v32  ;;  %v2663_v2 = vmul.f32 %v10479_v10, %v2642_v45  ;;  %v2664_v6 = vmul.f32 %v7986_v53, %v2646_v61  ;;  %v10537_v61 = vld [vmem:[#allocation87_spill] sm:$0xff] }
 0x3ad   : > { %v2714_v12 = vpop.permute.xlu1 %2713  ;;  %v2620_v52 = vadd.f32 %v2612_v21, %v2542_v27  ;;  %v2609_v18 = vmul.f32 %v8102_v49, %v2585_v16  ;;  %v2610_v58 = vmul.f32 %v8102_v49, %v2586_v8  ;;  %v10531_v48 = vmov 8  }
 0x3ae   : > { %v2721_v35 = vsel %vm2719_vm0, %v8134_v29, %v2714_v12  ;;  %v2725_v19 = vsel %vm2719_vm0, %v2714_v12, %v8134_v29  ;;  %v2619_v29 = vadd.f32 %v2611_v17, %v8316_v34  ;;  %vm2789_vm3 = vcmp.ge.f32.partialorder %v2777_v5, 0.0  ;;  %5829 = vset.pattern.permute.xlu1 %v10531_v48  ;;  %v2866_v17 = vld [vmem:[%s9838_s10 + $0x8] sm:$0xff] }
 0x3af   : > { %v2743_v57 = vmul.f32 %v8031_v40, %v2721_v35  ;;  %v2744_v46 = vmul.f32 %v8063_v3, %v2725_v19  ;;  %v2698_v53 = vadd.f32 %v2690_v11, %v2620_v52  ;;  %vm2790_vm4 = vcmp.ge.f32.partialorder %v2778_v54, 0.0  ;;  %4460 = vperm.xlu1 %5829, %v7687_v13  }
 0x3b0   : > { %5832 = vset.pattern.permute.xlu0 %v10531_v48  ;;  %v2697_v10 = vadd.f32 %v2689_v56, %v2619_v29  ;;  %v2687_v34 = vmul.f32 %v8027_v25, %v2663_v2  ;;  %v2688_v27 = vmul.f32 %v8027_v25, %v2664_v6  ;;  %v2618_v38 = vadd.f32 %v2610_v58, %v2540_v47 }
 0x3b1   : > { %v2806_v7 = vpop.permute.xlu1 %2805  ;;  %v2767_v1 = vmul.f32 %v8311_v36, %v2743_v57  ;;  %v2768_v41 = vmul.f32 %v8311_v36, %v2744_v46  ;;  %4448 = vperm.xlu0 %5832, %v8068_v62   ;;  %v2617_v36 = vadd.f32 %v2609_v18, %v2539_v9  ;;  %v10536_v45 = vmov 0   ;;  %v2796_v9 = vpop.permute.xlu0 %2795 }
 0x3b2   : > { %v2817_v31 = vmul.f32 %v2806_v7, %v2777_v5  ;;  %v2818_v32 = vmul.f32 %v2806_v7, %v2778_v54  ;;  %v2696_v8 = vadd.f32 %v2688_v27, %v2618_v38  ;;  %v2838_v7 = vld [vmem:[%s9837_s9 + $0x8] sm:$0xff] }
 0x3b3   : > { %v2775_v59 = vadd.f32 %v2767_v1, %v2697_v10  ;;  %v2776_v33 = vadd.f32 %v2768_v41, %v2698_v53  ;;  %v2695_v16 = vadd.f32 %v2687_v34, %v2617_v36  ;;  %5830 = vset.pattern.permute.xlu1 %v10513_v14  ;;  %v4482_v36 = vld [vmem:[%s9840_s12 + $0x18] sm:$0xff]  ;;  %v10552_v38 = vld [vmem:[#allocation32_spill] sm:$0xff] }
 0x3b4   : > { %v2825_v49 = vsel %vm2789_vm3, %v2777_v5, %v2817_v31  ;;  %v2826_v20 = vsel %vm2790_vm4, %v2778_v54, %v2818_v32  ;;  %4292 = vperm.xlu1 %5830, %v8068_v62   ;;  %vm4027_vm3 = vcmp.lt.s32.totalorder %v10455_v15, 45  ;;  %vm4183_vm4 = vcmp.lt.s32.totalorder %v10455_v15, 125 }
 0x3b5   : > { %v8419_v0 = vand.u32 4294901760, %v2826_v20  ;;  %v8421_v50 = vand.u32 4294901760, %v2825_v49  ;;  %v2704_v28 = vpop.permute.xlu1 %2703  ;;  %5833 = vset.pattern.permute.xlu0 %v10536_v45  ;;  %vm2787_vm6 = vcmp.ge.f32.partialorder %v2775_v59, 0.0  ;;  %vm2788_vm7 = vcmp.ge.f32.partialorder %v2776_v33, 0.0 }
 0x3b6   : > { %v2720_v42 = vsel %vm2719_vm0, %v2704_v28, %v2712_v39  ;;  %v2724_v25 = vsel %vm2719_vm0, %v2712_v39, %v2704_v28  ;;  %2876 = vperm.xlu0 %5833, %v2866_v17   ;;  %v10555_v17 = vld [vmem:[#allocation3_spill] sm:$0xff] }
 0x3b7   : > { %10532 = vst [vmem:[#allocation115_spill] sm:$0xff] %v8419_v0  ;;  %10533 = vst [vmem:[#allocation116_spill] sm:$0xff] %v8421_v50  ;;  %v8432_v21 = vsub.f32 %v2826_v20, %v8419_v0  ;;  %v8435_v22 = vsub.f32 %v2825_v49, %v8421_v50  ;;  %v2741_v13 = vmul.f32 %v8031_v40, %v2720_v42  ;;  %2915 = vmatprep.subr.mxu0 %v8419_v0 }
 0x3b8   : > { %v2742_v4 = vmul.f32 %v8063_v3, %v2724_v25  ;;  %2917 = vmatpush1.msra.mxu0 %v8421_v50  ;;  %v2837_v3 = vld [vmem:[%s9837_s9] sm:$0xff]  ;;  %5831 = vset.pattern.permute.xlu1 %v10531_v48 }
 0x3b9   : > { %10534 = vst [vmem:[#allocation111_spill] sm:$0xff] %v8432_v21  ;;  %10535 = vst [vmem:[#allocation88_spill] sm:$0xff] %v8435_v22  ;;  %v2765_v12 = vmul.f32 %v10537_v61, %v2741_v13  ;;  %v2801_v56 = vpop.permute.xlu1 %2800  ;;  %v8445_v11 = vand.u32 4294901760, %v8432_v21  ;;  %v8448_v40 = vand.u32 4294901760, %v8435_v22  ;;  %v2891_v6 = vsel %vm2889_vm5, %v2837_v3, 0  ;;  %4456 = vperm.xlu1 %5831, %v7972_v23   ;;  %v10556_v13 = vld [vmem:[#allocation9_spill] sm:$0xff] }
 0x3ba   : > { %v2766_v30 = vmul.f32 %v10537_v61, %v2742_v4  ;;  %v2815_v35 = vmul.f32 %v2801_v56, %v2775_v59  ;;  %v2816_v19 = vmul.f32 %v2801_v56, %v2776_v33  ;;  %3910 = vperm.xlu0 %5833, %v7972_v23   ;;  %v8473_v31 = vand.u32 4294901760, %v2891_v6  ;;  %v10560_v56 = vld [vmem:[#allocation15_spill] sm:$0xff] }
 0x3bb   : > { %10538 = vst [vmem:[#allocation96_spill] sm:$0xff] %v8445_v11  ;;  %10539 = vst [vmem:[#allocation80_spill] sm:$0xff] %v8448_v40  ;;  %v2773_v57 = vadd.f32 %v2765_v12, %v2695_v16  ;;  %v3058_v5 = vsub.f32 %v8432_v21, %v8445_v11  ;;  %v3064_v54 = vsub.f32 %v8435_v22, %v8448_v40  ;;  %v2894_v23 = vsel %vm2889_vm5, %v2838_v7, 0  ;;  %v10559_v12 = vld [vmem:[#allocation11_spill] sm:$0xff]  ;;  %v10576_v7 = vld [vmem:[#allocation8_spill] sm:$0xff] }
 0x3bc   : > { %v2774_v46 = vadd.f32 %v2766_v30, %v2696_v8  ;;  %v2823_v47 = vsel %vm2787_vm6, %v2775_v59, %v2815_v35  ;;  %v2824_v2 = vsel %vm2788_vm7, %v2776_v33, %v2816_v19  ;;  %v8507_v39 = vsub.f32 %v2891_v6, %v8473_v31  ;;  %v2839_v33 = vld [vmem:[%s9837_s9 + $0x10] sm:$0xff] }
 0x3bd   : > { %vm2785_vm8 = vcmp.ge.f32.partialorder %v2773_v57, 0.0  ;;  %v2813_v14 = vmul.f32 %v2796_v9, %v2773_v57  ;;  %v8461_v62 = vand.u32 4294901760, %v2824_v2  ;;  %v8463_v52 = vand.u32 4294901760, %v2823_v47  ;;  %4452 = vperm.xlu1 %5831, %v7835_v37  }
 0x3be   : > { %vm2786_vm9 = vcmp.ge.f32.partialorder %v2774_v46, 0.0  ;;  %v2814_v29 = vmul.f32 %v2796_v9, %v2774_v46  ;;  %v8465_v18 = vand.u32 4294901760, %v3058_v5  ;;  %v8467_v58 = vand.u32 4294901760, %v3064_v54  ;;  %3906 = vperm.xlu0 %5833, %v7835_v37   ;;  %v10564_v5 = vld [vmem:[#allocation40_spill] sm:$0xff]  ;;  %v2840_v54 = vld [vmem:[%s9837_s9 + $0x18] sm:$0xff]  ;;  %v10565_v9 = vld [vmem:[#allocation39_spill] sm:$0xff] }
 0x3bf   : > { %10540 = vst [vmem:[#allocation75_spill] sm:$0xff] %v8461_v62  ;;  %10541 = vst [vmem:[#allocation84_spill] sm:$0xff] %v8463_v52  ;;  %v2821_v1 = vsel %vm2785_vm8, %v2773_v57, %v2813_v14  ;;  %v8481_v53 = vsub.f32 %v2824_v2, %v8461_v62  ;;  %v8484_v34 = vsub.f32 %v2823_v47, %v8463_v52  ;;  %2919 = vmatprep.subr.mxu0 %v8461_v62  ;;  %v10563_v57 = vld [vmem:[#allocation35_spill] sm:$0xff]  ;;  %v10568_v14 = vld [vmem:[#allocation25_spill] sm:$0xff] }
 0x3c0   : > { %10542 = vst [vmem:[#allocation37_spill] sm:$0xff] %v8465_v18  ;;  %10543 = vst [vmem:[#allocation43_spill] sm:$0xff] %v8467_v58  ;;  %v2822_v41 = vsel %vm2786_vm9, %v2774_v46, %v2814_v29  ;;  %v8478_v10 = vand.u32 4294901760, %v2821_v1  ;;  %3060 = vmatprep.subr.mxu1 %v8465_v18  ;;  %2921 = vmatpush1.msra.mxu0 %v8463_v52  ;;  %v8528_v37 = vand.u32 4294901760, %v2894_v23  ;;  %v2897_v30 = vsel %vm2889_vm5, %v2839_v33, 0  ;;  %v10566_v47 = vld [vmem:[#allocation23_spill] sm:$0xff] }
 0x3c1   : > { %v8476_v32 = vand.u32 4294901760, %v2822_v41  ;;  %10546 = vst [vmem:[#allocation93_spill] sm:$0xff] %v8481_v53  ;;  %10547 = vst [vmem:[#allocation98_spill] sm:$0xff] %v8484_v34  ;;  %3066 = vmatpush1.msra.mxu1 %v8467_v58  ;;  %v8496_v27 = vand.u32 4294901760, %v8481_v53  ;;  %v8499_v49 = vand.u32 4294901760, %v8484_v34  ;;  %5834 = vset.pattern.permute.xlu1 %v10536_v45  ;;  %v10121_v19 = vand.u32 4294901760, %v8507_v39 }
 0x3c2   : > { %10545 = vst [vmem:[#allocation97_spill] sm:$0xff] %v8478_v10  ;;  %v8492_v48 = vsub.f32 %v2821_v1, %v8478_v10  ;;  %4508 = vperm.xlu0 %5833, %v4482_v36   ;;  %v8552_v46 = vsub.f32 %v2894_v23, %v8528_v37  ;;  %v8556_v45 = vand.u32 4294901760, %v2897_v30  ;;  %v10567_v2 = vld [vmem:[#allocation7_spill] sm:$0xff]  ;;  %v10569_v29 = vld [vmem:[#allocation6_spill] sm:$0xff]  ;;  %v2900_v1 = vsel %vm2889_vm5, %v2840_v54, 0  ;;  %v10571_v23 = vld [vmem:[#allocation53_spill] sm:$0xff] }
 0x3c3   : > { %10544 = vst [vmem:[#allocation90_spill] sm:$0xff] %v8476_v32  ;;  %2923 = vmatprep.subr.mxu0 %v8476_v32  ;;  %10549 = vst [vmem:[#allocation86_spill] sm:$0xff] %v8496_v27  ;;  %v8502_v20 = vsub.f32 %v2822_v41, %v8476_v32  ;;  %v3070_v28 = vsub.f32 %v8481_v53, %v8496_v27  ;;  %v3076_v42 = vsub.f32 %v8484_v34, %v8499_v49  ;;  %v10570_v41 = vld [vmem:[#allocation52_spill] sm:$0xff]  ;;  %v10574_v33 = vld [vmem:[#allocation10_spill] sm:$0xff] }
 0x3c4   : > { %10548 = vst [vmem:[#allocation91_spill] sm:$0xff] %v8492_v48  ;;  %10550 = vst [vmem:[#allocation21_spill] sm:$0xff] %v8499_v49  ;;  %2925 = vmatpush1.msra.mxu0 %v8478_v10  ;;  %v8522_v59 = vand.u32 4294901760, %v8492_v48  ;;  %v2994_v6 = vsub.f32 %v8507_v39, %v10121_v19  ;;  %v8575_v36 = vsub.f32 %v2897_v30, %v8556_v45  ;;  %v8581_v19 = vand.u32 4294901760, %v2900_v1  ;;  %v10577_v54 = vld [vmem:[#allocation63_spill] sm:$0xff] }
 0x3c5   : > { %10551 = vst [vmem:[#allocation92_spill] sm:$0xff] %v8502_v20  ;;  %2927 = vmatprep.subr.mxu0 %v10552_v38  ;;  %v8519_v25 = vand.u32 4294901760, %v8502_v20  ;;  %v8531_v4 = vand.u32 4294901760, %v3070_v28  ;;  %v8533_v16 = vand.u32 4294901760, %v3076_v42  ;;  %v10572_v28 = vld [vmem:[#allocation22_spill] sm:$0xff]  ;;  %v10573_v42 = vld [vmem:[#allocation49_spill] sm:$0xff] }
 0x3c6   : > { %10554 = vst [vmem:[#allocation112_spill] sm:$0xff] %v8522_v59  ;;  %2929 = vmatpush1.msra.mxu0 %v10555_v17  ;;  %v3088_v61 = vsub.f32 %v8492_v48, %v8522_v59  ;;  %vm3949_vm5 = vcmp.lt.s32.totalorder %v10455_v15, 48  ;;  %vm4105_vm6 = vcmp.lt.s32.totalorder %v10455_v15, 3  ;;  %vm4261_vm7 = vcmp.lt.s32.totalorder %v10455_v15, 83 }
 0x3c7   : > { %10553 = vst [vmem:[#allocation99_spill] sm:$0xff] %v8519_v25  ;;  %2931 = vmatprep.subr.mxu0 %v10556_v13  ;;  %10557 = vst [vmem:[#allocation26_spill] sm:$0xff] %v8531_v4  ;;  %v3082_v8 = vsub.f32 %v8502_v20, %v8519_v25  ;;  %3072 = vmatprep.subr.mxu1 %v8531_v4  ;;  %vm4339_vm8 = vcmp.lt.s32.totalorder %v10455_v15, 80  ;;  %vm4417_vm9 = vcmp.lt.s32.totalorder %v10455_v15, 77 }
 0x3c8   : > { %10558 = vst [vmem:[#allocation100_spill] sm:$0xff] %v8533_v16  ;;  %2933 = vmatpush1.msra.mxu0 %v10559_v12  ;;  %v8546_v35 = vand.u32 4294901760, %v3088_v61  ;;  %3078 = vmatpush1.msra.mxu1 %v8533_v16  ;;  %v2995_v61 = vand.u32 4294901760, %v2994_v6  ;;  %v10583_v6 = vld [vmem:[#allocation16_spill] sm:$0xff] }
 0x3c9   : > { %2935 = vmatprep.subr.mxu0 %v10560_v56  ;;  %v8544_v3 = vand.u32 4294901760, %v3082_v8  ;;  %v10575_v8 = vld [vmem:[#allocation62_spill] sm:$0xff] }
 0x3ca   : > { %10562 = vst [vmem:[#allocation30_spill] sm:$0xff] %v8546_v35  ;;  %2937 = vmatpush1.msra.mxu0 %v10563_v57 }
 0x3cb   : > { %10561 = vst [vmem:[#allocation95_spill] sm:$0xff] %v8544_v3  ;;  %2939 = vmatprep.subr.mxu0 %v10564_v5  ;;  %3084 = vmatprep.subr.mxu1 %v8544_v3  ;;  %v8595_v3 = vsub.f32 %v2900_v1, %v8581_v19 }
 0x3cc   : > { %2941 = vmatpush1.msra.mxu0 %v10565_v9  ;;  %3090 = vmatpush1.msra.mxu1 %v8546_v35  ;;  %v10581_v35 = vld [vmem:[#allocation36_spill] sm:$0xff] }
 0x3cd   : > { %2943 = vmatprep.subr.mxu0 %v10566_v47  ;;  %3096 = vmatprep.subr.mxu1 %v10567_v2  ;;  %v10580_v2 = vld [vmem:[#allocation65_spill] sm:$0xff]  ;;  %v10132_v1 = vand.u32 4294901760, %v8595_v3 }
 0x3ce   : > { %2945 = vmatpush1.msra.mxu0 %v10568_v14  ;;  %3102 = vmatpush1.msra.mxu1 %v10569_v29  ;;  %v10579_v29 = vld [vmem:[#allocation33_spill] sm:$0xff] }
 0x3cf   : > { %2947 = vmatprep.subr.mxu0 %v10570_v41  ;;  %3108 = vmatprep.subr.mxu1 %v10571_v23  ;;  %v10578_v23 = vand.u32 4294901760, %v8552_v46 }
 0x3d0   : > { %2949 = vmatpush1.msra.mxu0 %v10572_v28  ;;  %3114 = vmatpush1.msra.mxu1 %v10573_v42  ;;  %v10127_v42 = vand.u32 4294901760, %v8575_v36 }
 0x3d1   : > { %2951 = vmatprep.subr.mxu0 %v10574_v33  ;;  %3120 = vmatprep.subr.mxu1 %v10575_v8  ;;  %v3005_v30 = vsub.f32 %v8552_v46, %v10578_v23  ;;  %v10582_v8 = vld [vmem:[#allocation66_spill] sm:$0xff] }
 0x3d2   : > { %2953 = vmatpush1.msra.mxu0 %v10576_v7  ;;  %3126 = vmatpush1.msra.mxu1 %v10577_v54  ;;  %v10584_v54 = vld [vmem:[#allocation67_spill] sm:$0xff]  ;;  %v3016_v16 = vsub.f32 %v8575_v36, %v10127_v42  ;;  %v10590_v42 = vld [vmem:[#allocation73_spill] sm:$0xff] }
 0x3d3   : > { %2955 = vmatprep.subr.mxu0 %v10579_v29  ;;  %3132 = vmatprep.subr.mxu1 %v10580_v2  ;;  %v3006_v23 = vand.u32 4294901760, %v3005_v30  ;;  %v10585_v2 = vld [vmem:[#allocation69_spill] sm:$0xff]  ;;  %v10588_v30 = vld [vmem:[#allocation71_spill] sm:$0xff] }
 0x3d4   : > { %2957 = vmatpush1.msra.mxu0 %v10581_v35  ;;  %3138 = vmatpush1.msra.mxu1 %v10582_v8 }
 0x3d5   : > { %2996 = vmatmul.mubr.f32.vlgmr.msra.gmra.mxu0 %v2995_v61  ;;  %3144 = vmatprep.subr.mxu1 %v10583_v6  ;;  %v10586_v61 = vmov 0.0   ;;  %v10587_v6 = vld [vmem:[#allocation70_spill] sm:$0xff] }
 0x3d6   : > { %3258 = vmatprep.subr.mxu0 %v8258_v44  ;;  %3150 = vmatpush1.msra.mxu1 %v10584_v54  ;;  %v3017_v44 = vand.u32 4294901760, %v3016_v16  ;;  %v10592_v16 = vld [vmem:[#allocation31_spill] sm:$0xff] }
 0x3d7   : > { %3261 = vmatpush1.msra.mxu0 %v8254_v24  ;;  %3156 = vmatprep.subr.mxu1 %v10585_v2  ;;  %v10589_v24 = vld [vmem:[#allocation72_spill] sm:$0xff] }
 0x3d8   : > { %3264 = vmatprep.subr.mxu0 %v8432_v21  ;;  %3001 = vmatprep.mubr.f32.mxu0 %v10586_v61 }
 0x3d9   : > { %3162 = vmatpush1.msra.mxu1 %v10587_v6  ;;  %3267 = vmatpush1.msra.mxu0 %v8435_v22  ;;  %v3027_v22 = vsub.f32 %v8595_v3, %v10132_v1  ;;  %v10596_v1 = vld [vmem:[#allocation34_spill] sm:$0xff] }
 0x3da   : > { %3007 = vmatmul.mubr.f32.gmra.mxu0 %v3006_v23  ;;  %3168 = vmatprep.subr.mxu1 %v10588_v30  ;;  %v10591_v23 = vld [vmem:[#allocation74_spill] sm:$0xff] }
 0x3db   : > { %3270 = vmatprep.subr.mxu0 %v8481_v53  ;;  %3174 = vmatpush1.msra.mxu1 %v10589_v24  ;;  %v10594_v53 = vld [vmem:[#allocation41_spill] sm:$0xff] }
 0x3dc   : > { %3273 = vmatpush1.msra.mxu0 %v8484_v34  ;;  %3180 = vmatprep.subr.mxu1 %v10590_v42  ;;  %v10593_v34 = vld [vmem:[#allocation50_spill] sm:$0xff] }
 0x3dd   : > { %3276 = vmatprep.subr.mxu0 %v8502_v20  ;;  %3012 = vmatprep.mubr.f32.mxu0 %v10586_v61  ;;  %v3028_v20 = vand.u32 4294901760, %v3027_v22  ;;  %v10597_v22 = vld [vmem:[#allocation27_spill] sm:$0xff] }
 0x3de   : > { %3186 = vmatpush1.msra.mxu1 %v10591_v23  ;;  %3279 = vmatpush1.msra.mxu0 %v8492_v48 }
 0x3df   : > { %3018 = vmatmul.mubr.f32.gmra.mxu0 %v3017_v44  ;;  %3221 = vmatmul.mubr.f32.vlgmr.msra.gmra.mxu1 %v8473_v31  ;;  %v10595_v44 = vld [vmem:[#allocation44_spill] sm:$0xff] }
 0x3e0   : > { %3282 = vmatprep.subr.mxu0 %v10592_v16  ;;  %3402 = vmatprep.subr.mxu1 %v8241_v43 }
 0x3e1   : > { %3285 = vmatpush1.msra.mxu0 %v10593_v34  ;;  %3404 = vmatpush1.msra.mxu1 %v8243_v60 }
 0x3e2   : > { %3288 = vmatprep.subr.mxu0 %v10594_v53  ;;  %3406 = vmatprep.subr.mxu1 %v8419_v0  ;;  %v10598_v53 = vld [vmem:[#allocation29_spill] sm:$0xff] }
 0x3e3   : > { %3023 = vmatprep.mubr.f32.mxu0 %v10586_v61  ;;  %3226 = vmatprep.mubr.f32.mxu1 %v10586_v61 }
 0x3e4   : > { %3291 = vmatpush1.msra.mxu0 %v10595_v44  ;;  %3408 = vmatpush1.msra.mxu1 %v8421_v50  ;;  %v10599_v44 = vld [vmem:[#allocation47_spill] sm:$0xff] }
 0x3e5   : > { %3029 = vmatmul.mubr.f32.gmra.mxu0 %v3028_v20  ;;  %3228 = vmatmul.mubr.f32.gmra.mxu1 %v8528_v37  ;;  %v10600_v20 = vld [vmem:[#allocation38_spill] sm:$0xff] }
 0x3e6   : > { %3294 = vmatprep.subr.mxu0 %v10596_v1  ;;  %3410 = vmatprep.subr.mxu1 %v8461_v62  ;;  %v10601_v1 = vld [vmem:[#allocation13_spill] sm:$0xff] }
 0x3e7   : > { %3297 = vmatpush1.msra.mxu0 %v10597_v22  ;;  %3412 = vmatpush1.msra.mxu1 %v8463_v52  ;;  %v10602_v22 = vld [vmem:[#allocation14_spill] sm:$0xff] }
 0x3e8   : > { %3300 = vmatprep.subr.mxu0 %v10598_v53  ;;  %3414 = vmatprep.subr.mxu1 %v8476_v32  ;;  %v10603_v53 = vld [vmem:[#allocation12_spill] sm:$0xff] }
 0x3e9   : > { %3233 = vmatprep.mubr.f32.mxu1 %v10586_v61  ;;  %3303 = vmatpush1.msra.mxu0 %v10599_v44  ;;  %v10604_v44 = vld [vmem:[#allocation42_spill] sm:$0xff] }
 0x3ea   : > { %3416 = vmatpush1.msra.mxu1 %v8478_v10  ;;  %3306 = vmatprep.subr.mxu0 %v10600_v20  ;;  %v10605_v20 = vld [vmem:[#allocation20_spill] sm:$0xff] }
 0x3eb   : > { %3235 = vmatmul.mubr.f32.gmra.mxu1 %v8556_v45  ;;  %3418 = vmatprep.subr.mxu1 %v10552_v38 }
 0x3ec   : > { %3309 = vmatpush1.msra.mxu0 %v10601_v1  ;;  %3420 = vmatpush1.msra.mxu1 %v10555_v17  ;;  %v10606_v1 = vld [vmem:[#allocation58_spill] sm:$0xff] }
 0x3ed   : > { %3312 = vmatprep.subr.mxu0 %v10602_v22  ;;  %3422 = vmatprep.subr.mxu1 %v10556_v13  ;;  %v10607_v22 = vld [vmem:[#allocation61_spill] sm:$0xff] }
 0x3ee   : > { %3240 = vmatprep.mubr.f32.mxu1 %v10586_v61  ;;  %3315 = vmatpush1.msra.mxu0 %v10603_v53 }
 0x3ef   : > { %3424 = vmatpush1.msra.mxu1 %v10559_v12  ;;  %3318 = vmatprep.subr.mxu0 %v10604_v44 }
 0x3f0   : > { %3242 = vmatmul.mubr.f32.gmra.mxu1 %v8581_v19  ;;  %3426 = vmatprep.subr.mxu1 %v10560_v56 }
 0x3f1   : > { %3321 = vmatpush1.msra.mxu0 %v10605_v20  ;;  %3428 = vmatpush1.msra.mxu1 %v10563_v57 }
 0x3f2   : > { %3324 = vmatprep.subr.mxu0 %v10606_v1  ;;  %3430 = vmatprep.subr.mxu1 %v10564_v5 }
 0x3f3   : > { %3327 = vmatpush1.msra.mxu0 %v10607_v22  ;;  %3360 = vmatprep.mubr.f32.mxu0 %v10586_v61 }
 0x3f4   : > { %3432 = vmatpush1.msra.mxu1 %v10565_v9  ;;  %3363 = vmatmul.mubr.f32.vlgmr.msra.gmra.mxu0 %v8507_v39 }
 0x3f5   : > { %3434 = vmatprep.subr.mxu1 %v10566_v47  ;;  %3529 = vmatprep.subr.mxu0 %v8271_v51  ;;  %v2887_v51 = vpop.permute.xlu1 %2886 }
 0x3f6   : > { %3436 = vmatpush1.msra.mxu1 %v10568_v14  ;;  %3533 = vmatpush1.msra.mxu0 %v8274_v26 }
 0x3f7   : > { %3438 = vmatprep.subr.mxu1 %v10570_v41  ;;  %3537 = vmatprep.subr.mxu0 %v8445_v11 }
 0x3f8   : > { %3368 = vmatprep.mubr.f32.mxu0 %v10586_v61  ;;  %3440 = vmatpush1.msra.mxu1 %v10572_v28 }
 0x3f9   : > { %3541 = vmatpush1.msra.mxu0 %v8448_v40  ;;  %3442 = vmatprep.subr.mxu1 %v10574_v33  ;;  %v10609_v40 = vld [vmem:[#allocation5_spill] sm:$0xff]  ;;  %v2882_v53 = vpop.permute.xlu1 %2881 }
 0x3fa   : > { %3371 = vmatmul.mubr.f32.gmra.mxu0 %v8552_v46  ;;  %3545 = vmatprep.subr.mxu0 %v8496_v27  ;;  %v10608_v27 = vand.u32 4294901760, %v8507_v39  ;;  %v10614_v39 = vld [vmem:[#allocation51_spill] sm:$0xff] }
 0x3fb   : > { %3444 = vmatpush1.msra.mxu1 %v10576_v7  ;;  %3549 = vmatpush1.msra.mxu0 %v8499_v49  ;;  %v10610_v49 = vld [vmem:[#allocation4_spill] sm:$0xff] }
 0x3fc   : > { %3446 = vmatprep.subr.mxu1 %v10579_v29  ;;  %3553 = vmatprep.subr.mxu0 %v8519_v25  ;;  %v10611_v25 = vld [vmem:[#allocation48_spill] sm:$0xff] }
 0x3fd   : > { %3376 = vmatprep.mubr.f32.mxu0 %v10586_v61  ;;  %3448 = vmatpush1.msra.mxu1 %v10581_v35  ;;  %v2872_v58 = vpop.permute.xlu1 %2871 }
 0x3fe   : > { %3481 = vmatprep.mubr.f32.mxu1 %v10586_v61  ;;  %3557 = vmatpush1.msra.mxu0 %v8522_v59  ;;  %v10612_v59 = vld [vmem:[#allocation24_spill] sm:$0xff] }
 0x3ff   : > { %3379 = vmatmul.mubr.f32.gmra.mxu0 %v8575_v36  ;;  %3485 = vmatmul.mubr.f32.vlgmr.msra.gmra.mxu1 %v10608_v27  ;;  %v10613_v27 = vand.u32 4294901760, %v8552_v46  ;;  %v10618_v46 = vld [vmem:[#allocation17_spill] sm:$0xff] }
 0x400   : > { %3561 = vmatprep.subr.mxu0 %v10609_v40  ;;  %3692 = vmatprep.subr.mxu1 %v8241_v43 }
 0x401   : > { %3565 = vmatpush1.msra.mxu0 %v10610_v49  ;;  %3694 = vmatpush1.msra.mxu1 %v8243_v60  ;;  %v10616_v49 = vld [vmem:[#allocation59_spill] sm:$0xff] }
 0x402   : > { %3569 = vmatprep.subr.mxu0 %v10611_v25  ;;  %3696 = vmatprep.subr.mxu1 %v8419_v0  ;;  %v10615_v25 = vld [vmem:[#allocation54_spill] sm:$0xff]  ;;  %v5708_v60 = vld [vmem:[%s9841_s13 + $0x2] ss:$8 sm:$0x3] }
 0x403   : > { %3384 = vmatprep.mubr.f32.mxu0 %v10586_v61  ;;  %3490 = vmatprep.mubr.f32.mxu1 %v10586_v61 }
 0x404   : > { %3573 = vmatpush1.msra.mxu0 %v10612_v59  ;;  %3698 = vmatpush1.msra.mxu1 %v8421_v50  ;;  %v10617_v59 = vld [vmem:[#allocation60_spill] sm:$0xff]  ;;  %v10647_v50 = vld [vmem:[#allocation46_spill] sm:$0xff] }
 0x405   : > { %3387 = vmatmul.mubr.f32.gmra.mxu0 %v8595_v3  ;;  %3494 = vmatmul.mubr.f32.gmra.mxu1 %v10613_v27  ;;  %v10619_v27 = vand.u32 4294901760, %v8575_v36  ;;  %v10624_v36 = vand.u32 4294901760, %v8595_v3  ;;  %v8758_v3 = vpop.permute.xlu0 %3845 }
 0x406   : > { %3577 = vmatprep.subr.mxu0 %v10614_v39  ;;  %3700 = vmatprep.subr.mxu1 %v8461_v62  ;;  %10628 = vst [vmem:[#allocation113_spill] sm:$0xff] %v8758_v3 }
 0x407   : > { %3581 = vmatpush1.msra.mxu0 %v10615_v25  ;;  %3702 = vmatpush1.msra.mxu1 %v8463_v52  ;;  %v10620_v25 = vld [vmem:[#allocation18_spill] sm:$0xff] }
 0x408   : > { %3585 = vmatprep.subr.mxu0 %v10616_v49  ;;  %3704 = vmatprep.subr.mxu1 %v8476_v32  ;;  %v10621_v49 = vld [vmem:[#allocation19_spill] sm:$0xff] }
 0x409   : > { %3499 = vmatprep.mubr.f32.mxu1 %v10586_v61  ;;  %3589 = vmatpush1.msra.mxu0 %v10617_v59  ;;  %v10622_v59 = vld [vmem:[#allocation55_spill] sm:$0xff] }
 0x40a   : > { %3706 = vmatpush1.msra.mxu1 %v8478_v10  ;;  %3593 = vmatprep.subr.mxu0 %v10618_v46  ;;  %v10623_v46 = vld [vmem:[#allocation56_spill] sm:$0xff] }
 0x40b   : > { %3503 = vmatmul.mubr.f32.gmra.mxu1 %v10619_v27  ;;  %3708 = vmatprep.subr.mxu1 %v10552_v38  ;;  %v10625_v27 = vld [vmem:[#allocation57_spill] sm:$0xff] }
 0x40c   : > { %3597 = vmatpush1.msra.mxu0 %v10620_v25  ;;  %3710 = vmatpush1.msra.mxu1 %v10555_v17  ;;  %v10627_v25 = vld [vmem:[#allocation68_spill] sm:$0xff] }
 0x40d   : > { %3601 = vmatprep.subr.mxu0 %v10621_v49  ;;  %3712 = vmatprep.subr.mxu1 %v10556_v13  ;;  %v10626_v49 = vld [vmem:[#allocation64_spill] sm:$0xff] }
 0x40e   : > { %3508 = vmatprep.mubr.f32.mxu1 %v10586_v61  ;;  %3605 = vmatpush1.msra.mxu0 %v10622_v59 }
 0x40f   : > { %3714 = vmatpush1.msra.mxu1 %v10559_v12  ;;  %3609 = vmatprep.subr.mxu0 %v10623_v46 }
 0x410   : > { %3512 = vmatmul.mubr.f32.gmra.mxu1 %v10624_v36  ;;  %3716 = vmatprep.subr.mxu1 %v10560_v56 }
 0x411   : > { %3613 = vmatpush1.msra.mxu0 %v10625_v27  ;;  %3718 = vmatpush1.msra.mxu1 %v10563_v57 }
 0x412   : > { %3617 = vmatprep.subr.mxu0 %v10626_v49  ;;  %3720 = vmatprep.subr.mxu1 %v10564_v5 }
 0x413   : > { %3621 = vmatpush1.msra.mxu0 %v10627_v25  ;;  %3654 = vmatprep.mubr.f32.mxu0 %v10586_v61 }
 0x414   : > { %3722 = vmatpush1.msra.mxu1 %v10565_v9  ;;  %3656 = vmatmul.mubr.f32.vlgmr.msra.gmra.mxu0 %v8473_v31 }
 0x415   : > { %3724 = vmatprep.subr.mxu1 %v10566_v47  ;;  %3661 = vmatprep.mubr.f32.mxu0 %v10586_v61 }
 0x416   : > { %3726 = vmatpush1.msra.mxu1 %v10568_v14  ;;  %3771 = vmatprep.mubr.f32.mxu1 %v10586_v61 }
 0x417   : > { %3728 = vmatprep.subr.mxu1 %v10570_v41 }
 0x418   : > { %3730 = vmatpush1.msra.mxu1 %v10572_v28  ;;  %3663 = vmatmul.mubr.f32.gmra.mxu0 %v8528_v37 }
 0x419   : > { %3732 = vmatprep.subr.mxu1 %v10574_v33  ;;  %3668 = vmatprep.mubr.f32.mxu0 %v10586_v61 }
 0x41a   : > { %3734 = vmatpush1.msra.mxu1 %v10576_v7 }
 0x41b   : > { %3736 = vmatprep.subr.mxu1 %v10579_v29 }
 0x41c   : > { %3738 = vmatpush1.msra.mxu1 %v10581_v35  ;;  %3670 = vmatmul.mubr.f32.gmra.mxu0 %v8556_v45 }
 0x41d   : > { %3773 = vmatmul.mubr.f32.vlgmr.msra.gmra.mxu1 %v8473_v31  ;;  %3675 = vmatprep.mubr.f32.mxu0 %v10586_v61  ;;  %v4481_v31 = vld [vmem:[%s9840_s12 + $0x10] sm:$0xff] }
 0x41e   : > { %3778 = vmatprep.mubr.f32.mxu1 %v10586_v61  ;;  %4503 = vperm.xlu1 %5834, %v4481_v31  }
 0x420   : > { %3677 = vmatmul.mubr.f32.gmra.mxu0 %v8581_v19 }
 0x421   : > { %3780 = vmatmul.mubr.f32.gmra.mxu1 %v8528_v37  ;;  %4691 = vmatprep.mubr.f32.mxu0 %v10586_v61  ;;  %v8760_v37 = vpop.permute.xlu0 %3984 }
 0x422   : > { %3785 = vmatprep.mubr.f32.mxu1 %v10586_v61 }
 0x425   : > { %3787 = vmatmul.mubr.f32.gmra.mxu1 %v8556_v45  ;;  %v8762_v36 = vpop.permute.xlu0 %4070 }
 0x426   : > { %3792 = vmatprep.mubr.f32.mxu1 %v10586_v61  ;;  %10629 = vst [vmem:[#allocation78_spill] sm:$0xff] %v8762_v36 }
 0x429   : > { %3794 = vmatmul.mubr.f32.gmra.mxu1 %v8581_v19  ;;  %v8764_v25 = vpop.permute.xlu0 %4066 }
 0x42a   : > { %4960 = vmatprep.mubr.f32.mxu1 %v10586_v61 }
 0x42d   : > { %v8766_v45 = vpop.permute.xlu0 %4062 }
 0x431   : > { %v8768_v49 = vpop.permute.xlu0 %4058 }
 0x435   : > { %v8770_v46 = vpop.permute.xlu0 %4140 }
 0x439   : > { %v8776_v31 = vpop.permute.xlu0 %4226 }
 0x43a   : > { %10630 = vst [vmem:[#allocation79_spill] sm:$0xff] %v8776_v31  ;;  %v9048_v31 = vrot.slane %v5708_v60, %v10647_v50 }
 0x43d   : > { %v8778_v22 = vpop.permute.xlu0 %4222 }
 0x43e   : > { %10631 = vst [vmem:[#allocation101_spill] sm:$0xff] %v8778_v22 }
 0x441   : > { %v8784_v48 = vpop.permute.xlu0 %4218 }
 0x445   : > { %v8788_v54 = vpop.permute.xlu0 %4214 }
 0x449   : > { %v8790_v28 = vpop.permute.xlu0 %4296 }
 0x495   : > { %v2997_v19 = vpop.f32.mrf.mxu0 }
 0x497   : > { %v2999_v27 = vpop.f32.mrf.mxu0 }
 0x49a   : > { %v8772_v59 = vpop.f32.mrf.mxu0 }
 0x49c   : > { %v8774_v39 = vpop.f32.mrf.mxu0 }
 0x49f   : > { %v3222_v40 = vpop.f32.mrf.mxu1  ;;  %v3019_v26 = vpop.f32.mrf.mxu0 }
 0x4a0   : > { %v3020_v34 = vadd.f32 %v3019_v26, %v2882_v53 }
 0x4a1   : > { %v3224_v11 = vpop.f32.mrf.mxu1  ;;  %v3021_v20 = vpop.f32.mrf.mxu0 }
 0x4a2   : > { %v3022_v23 = vadd.f32 %v3021_v20, %v2882_v53 }
 0x4a5   : > { %v8780_v1 = vpop.f32.mrf.mxu1  ;;  %v3030_v16 = vpop.f32.mrf.mxu0 }
 0x4a6   : > { %v3031_v61 = vadd.f32 %v3030_v16, %v2887_v51 }
 0x4a7   : > { %v8782_v44 = vpop.f32.mrf.mxu1  ;;  %v3032_v30 = vpop.f32.mrf.mxu0 }
 0x4a8   : > { %v3033_v8 = vadd.f32 %v3032_v30, %v2887_v51 }
 0x4ab   : > { %v3236_v21 = vpop.f32.mrf.mxu1 }
 0x4ac   : > { %v8786_v42 = vadd.f32 %v3236_v21, %v3020_v34  ;;  %v8794_v21 = vpop.permute.xlu0 %4382 }
 0x4ad   : > { %v3238_v24 = vpop.f32.mrf.mxu1  ;;  %10632 = vst [vmem:[#allocation94_spill] sm:$0xff] %v8794_v21 }
 0x4ae   : > { %v3239_v6 = vadd.f32 %v3238_v24, %v3022_v23 }
 0x4b0   : > { %v3243_v2 = vpop.f32.mrf.mxu1  ;;  %v8798_v20 = vpop.permute.xlu0 %4378 }
 0x4b1   : > { %v3244_v35 = vadd.f32 %v3243_v2, %v3031_v61  ;;  %10633 = vst [vmem:[#allocation77_spill] sm:$0xff] %v8798_v20  ;;  %v5711_v20 = vld [vmem:[%s9841_s13 + $0x5] ss:$8 sm:$0x3] }
 0x4b2   : > { %v3245_v29 = vpop.f32.mrf.mxu1 }
 0x4b3   : > { %v3246_v7 = vadd.f32 %v3245_v29, %v3033_v8 }
 0x4b4   : > { %v3364_v33 = vpop.f32.mrf.mxu0  ;;  %v8802_v47 = vpop.permute.xlu0 %4374 }
 0x4b6   : > { %v3366_v26 = vpop.f32.mrf.mxu0 }
 0x4b8   : > { %v8808_v4 = vpop.permute.xlu0 %4370 }
 0x4ba   : > { %v3372_v41 = vpop.f32.mrf.mxu0 }
 0x4bc   : > { %v8792_v14 = vpop.f32.mrf.mxu0 }
 0x4bf   : > { %v8796_v53 = vpop.f32.mrf.mxu0  ;;  %v3486_v24 = vpop.f32.mrf.mxu1 }
 0x4c1   : > { %v3382_v34 = vpop.f32.mrf.mxu0  ;;  %v3488_v23 = vpop.f32.mrf.mxu1 }
 0x4c2   : > { %v3383_v16 = vadd.f32 %v3382_v34, %v3239_v6 }
 0x4c5   : > { %v3388_v51 = vpop.f32.mrf.mxu0  ;;  %v3495_v2 = vpop.f32.mrf.mxu1 }
 0x4c6   : > { %v3389_v29 = vadd.f32 %v3388_v51, %v3244_v35  ;;  %v2998_v35 = vadd.f32 %v2997_v19, %v2872_v58  ;;  %v8814_v51 = vpop.permute.xlu0 %4448 }
 0x4c7   : > { %v3390_v8 = vpop.f32.mrf.mxu0  ;;  %v8800_v61 = vpop.f32.mrf.mxu1  ;;  %10634 = vst [vmem:[#allocation108_spill] sm:$0xff] %v8814_v51 }
 0x4c8   : > { %v3391_v30 = vadd.f32 %v3390_v8, %v3246_v7  ;;  %v3000_v7 = vadd.f32 %v2999_v27, %v2872_v58  ;;  %v3223_v8 = vadd.f32 %v3222_v40, %v2998_v35 }
 0x4ca   : > { %v3225_v13 = vadd.f32 %v3224_v11, %v3000_v7  ;;  %v3365_v63 = vadd.f32 %v3364_v33, %v3223_v8  ;;  %v3381_v8 = vadd.f32 %v8796_v53, %v8786_v42 }
 0x4cb   : > { %v8804_v9 = vpop.f32.mrf.mxu1 }
 0x4cc   : > { %v3367_v17 = vadd.f32 %v3366_v26, %v3225_v13 }
 0x4cd   : > { %v3506_v5 = vpop.f32.mrf.mxu1 }
 0x4ce   : > { %v8806_v57 = vadd.f32 %v3506_v5, %v3383_v16  ;;  %v3487_v5 = vadd.f32 %v3486_v24, %v3365_v63  ;;  %v2877_v16 = vpop.permute.xlu0 %2876  ;;  %v3489_v38 = vadd.f32 %v3488_v23, %v3367_v17  ;;  %v8834_v17 = vpop.permute.xlu1 %3914 }
 0x4cf   : > { %10635 = vst [vmem:[#allocation104_spill] sm:$0xff] %v8834_v17 }
 0x4d0   : > { %v3513_v56 = vpop.f32.mrf.mxu1 }
 0x4d1   : > { %v8810_v6 = vadd.f32 %v3513_v56, %v3389_v29  ;;  %v3009_v29 = vadd.f32 %v8772_v59, %v2877_v16 }
 0x4d2   : > { %v3515_v34 = vpop.f32.mrf.mxu1 }
 0x4d3   : > { %v8812_v12 = vadd.f32 %v3515_v34, %v3391_v30  ;;  %v3230_v40 = vadd.f32 %v8780_v1, %v3009_v29 }
 0x4d4   : > { %v3657_v18 = vpop.f32.mrf.mxu0 }
 0x4d5   : > { %v3658_v10 = vadd.f32 %v3657_v18, %v3487_v5 }
 0x4d6   : > { %v3659_v55 = vpop.f32.mrf.mxu0 }
 0x4d7   : > { %v3660_v32 = vadd.f32 %v3659_v55, %v3489_v38  ;;  %v3373_v55 = vadd.f32 %v3372_v41, %v3230_v40  ;;  %v8841_v41 = vpop.permute.xlu1 %3840 }
 0x4d8   : > { %v3664_v63 = vpop.f32.mrf.mxu0 }
 0x4d9   : > { %v3496_v18 = vadd.f32 %v3495_v2, %v3373_v55 }
 0x4da   : > { %v3666_v27 = vpop.f32.mrf.mxu0 }
 0x4db   : > { %v3665_v38 = vadd.f32 %v3664_v63, %v3496_v18  ;;  %v8852_v24 = vpop.permute.xlu1 %3992 }
 0x4dc   : > { %10636 = vst [vmem:[#allocation83_spill] sm:$0xff] %v8852_v24  ;;  %v3671_v5 = vpop.f32.mrf.mxu0 }
 0x4dd   : > { %v3774_v56 = vpop.f32.mrf.mxu1 }
 0x4de   : > { %v3775_v30 = vadd.f32 %v3774_v56, %v3658_v10  ;;  %v3673_v40 = vpop.f32.mrf.mxu0 }
 0x4df   : > { %v3776_v34 = vpop.f32.mrf.mxu1  ;;  %v3674_v63 = vadd.f32 %v3673_v40, %v8806_v57  ;;  %v8980_v40 = vpop.permute.xlu0 %3910 }
 0x4e0   : > { %vm3800_vm10 = vcmp.ge.f32.partialorder %v3775_v30, 0.0  ;;  %v3808_v19 = vmul.f32 0.01, %v3775_v30  ;;  %v3777_v52 = vadd.f32 %v3776_v34, %v3660_v32  ;;  %v3678_v18 = vpop.f32.mrf.mxu0 }
 0x4e1   : > { %v3781_v32 = vpop.f32.mrf.mxu1 }
 0x4e2   : > { %v8818_v58 = vsel %vm3800_vm10, %v3775_v30, %v3808_v19  ;;  %v3809_v11 = vmul.f32 0.01, %v3777_v52  ;;  %vm3801_vm11 = vcmp.ge.f32.partialorder %v3777_v52, 0.0  ;;  %v3782_v59 = vadd.f32 %v3781_v32, %v3665_v38 }
 0x4e3   : > { %4245 = vrot.lane.b32.xlu0 %v8818_v58, %s5878_s23  ;;  %3856 = vrot.lane.b32.xlu1 %v8818_v58, %s5879_s24  ;;  %v3783_v23 = vpop.f32.mrf.mxu1 }
 0x4e4   : > { %v8824_v10 = vsel %vm3801_vm11, %v3777_v52, %v3809_v11  ;;  %v3011_v52 = vadd.f32 %v8774_v39, %v2877_v16  ;;  %v3810_v13 = vmul.f32 0.01, %v3782_v59  ;;  %vm3802_vm12 = vcmp.ge.f32.partialorder %v3782_v59, 0.0 }
 0x4e5   : > { %v3505_v16 = vadd.f32 %v8804_v9, %v3381_v8  ;;  %v3788_v56 = vpop.f32.mrf.mxu1 }
 0x4e6   : > { %v3232_v33 = vadd.f32 %v8782_v44, %v3011_v52  ;;  %v8844_v1 = vsel %vm3802_vm12, %v3782_v59, %v3810_v13  ;;  %v3679_v52 = vadd.f32 %v3678_v18, %v8810_v6  ;;  %v3680_v13 = vpop.f32.mrf.mxu0 }
 0x4e7   : > { %3864 = vrot.lane.b32.xlu0 %v8824_v10, %s5879_s24  ;;  %3933 = vrot.lane.b32.xlu1 %v8818_v58, %s5880_s30  ;;  %v3672_v29 = vadd.f32 %v3671_v5, %v3505_v16  ;;  %v3790_v55 = vpop.f32.mrf.mxu1  ;;  %v3681_v57 = vadd.f32 %v3680_v13, %v8812_v12 }
 0x4e8   : > { %v3375_v39 = vadd.f32 %v8792_v14, %v3232_v33  ;;  %v8862_v14 = vpop.permute.xlu1 %3835  ;;  %v3791_v32 = vadd.f32 %v3790_v55, %v3674_v63  ;;  %v8986_v63 = vpop.permute.xlu0 %3906 }
 0x4e9   : > { %v3789_v34 = vadd.f32 %v3788_v56, %v3672_v29  ;;  %v3795_v38 = vpop.f32.mrf.mxu1  ;;  %v4479_v29 = vld [vmem:[%s9840_s12] sm:$0xff] }
 0x4ea   : > { %v3498_v26 = vadd.f32 %v8800_v61, %v3375_v39  ;;  %v3813_v33 = vmul.f32 0.01, %v3791_v32  ;;  %v3796_v39 = vadd.f32 %v3795_v38, %v3679_v52  ;;  %vm3805_vm15 = vcmp.ge.f32.partialorder %v3791_v32, 0.0 }
 0x4eb   : > { %4019 = vrot.lane.b32.xlu0 %v8824_v10, %s5881_s17  ;;  %4011 = vrot.lane.b32.xlu1 %v8818_v58, %s5881_s17  ;;  %v3812_v9 = vmul.f32 0.01, %v3789_v34  ;;  %vm3804_vm14 = vcmp.ge.f32.partialorder %v3789_v34, 0.0 }
 0x4ec   : > { %v3667_v44 = vadd.f32 %v3666_v27, %v3498_v26  ;;  %v8870_v7 = vpop.permute.xlu1 %3988  ;;  %v3797_v27 = vpop.f32.mrf.mxu1  ;;  %vm3806_vm0 = vcmp.ge.f32.partialorder %v3796_v39, 0.0 }
 0x4ed   : > { %v8895_v53 = vsel %vm3804_vm14, %v3789_v34, %v3812_v9  ;;  %v4573_v9 = vld [vmem:[%s9843_s15 + $0x10] sm:$0xff] }
 0x4ee   : > { %v3784_v2 = vadd.f32 %v3783_v23, %v3667_v44  ;;  %v8928_v23 = vsel %vm3805_vm15, %v3791_v32, %v3813_v33  ;;  %v3814_v44 = vmul.f32 0.01, %v3796_v39  ;;  %v8994_v32 = vpop.permute.xlu0 %4508 }
 0x4ef   : > { %4175 = vrot.lane.b32.xlu0 %v8824_v10, %s5882_s0  ;;  %4089 = vrot.lane.b32.xlu1 %v8818_v58, %s5883_s26  ;;  %10645 = vst [vmem:[#allocation118_spill] sm:$0xff] %v8994_v32 }
 0x4f0   : > { %v3811_v61 = vmul.f32 0.01, %v3784_v2  ;;  %vm3803_vm13 = vcmp.ge.f32.partialorder %v3784_v2, 0.0  ;;  %v8883_v30 = vpop.permute.xlu1 %3830  ;;  %v8934_v6 = vsel %vm3806_vm0, %v3796_v39, %v3814_v44 }
 0x4f1   : > { %10640 = vst [vmem:[#allocation114_spill] sm:$0xff] %v8934_v6  ;;  %v3848_v36 = vmul.f32 %v8883_v30, %v8818_v58 }
 0x4f2   : > { %v8868_v35 = vsel %vm3803_vm13, %v3784_v2, %v3811_v61  ;;  %v3798_v2 = vadd.f32 %v3797_v27, %v3681_v57 }
 0x4f3   : > { %4013 = vrot.lane.b32.xlu0 %v8844_v1, %s5881_s17  ;;  %4167 = vrot.lane.b32.xlu1 %v8818_v58, %s5882_s0 }
 0x4f4   : > { %v8889_v42 = vpop.permute.xlu1 %3902  ;;  %v3815_v61 = vmul.f32 0.01, %v3798_v2  ;;  %vm3807_vm1 = vcmp.ge.f32.partialorder %v3798_v2, 0.0 }
 0x4f6   : > { %v8942_v8 = vsel %vm3807_vm1, %v3798_v2, %v3815_v61 }
 0x4f7   : > { %4169 = vrot.lane.b32.xlu0 %v8844_v1, %s5882_s0  ;;  %4323 = vrot.lane.b32.xlu1 %v8818_v58, %s5884_s28 }
 0x4f8   : > { %v8901_v19 = vpop.permute.xlu1 %4148 }
 0x4f9   : > { %10637 = vst [vmem:[#allocation105_spill] sm:$0xff] %v8901_v19  ;;  %v3849_v19 = vmul.f32 %v8883_v30, %v8824_v10 }
 0x4fb   : > { %4325 = vrot.lane.b32.xlu0 %v8844_v1, %s5884_s28  ;;  %3941 = vrot.lane.b32.xlu1 %v8824_v10, %s5880_s30 }
 0x4fc   : > { %v8907_v11 = vpop.permute.xlu1 %3980 }
 0x4ff   : > { %4403 = vrot.lane.b32.xlu0 %v8844_v1, %s5885_s19  ;;  %4097 = vrot.lane.b32.xlu1 %v8824_v10, %s5883_s26 }
 0x500   : > { %v8918_v59 = vpop.permute.xlu1 %4144 }
 0x501   : > { %10638 = vst [vmem:[#allocation117_spill] sm:$0xff] %v8918_v59 }
 0x503   : > { %3866 = vrot.lane.b32.xlu0 %v8868_v35, %s5879_s24  ;;  %4253 = vrot.lane.b32.xlu1 %v8824_v10, %s5878_s23 }
 0x504   : > { %v8926_v26 = vpop.permute.xlu1 %4304 }
 0x505   : > { %10639 = vst [vmem:[#allocation103_spill] sm:$0xff] %v8926_v26 }
 0x507   : > { %3943 = vrot.lane.b32.xlu0 %v8868_v35, %s5880_s30  ;;  %4331 = vrot.lane.b32.xlu1 %v8824_v10, %s5884_s28 }
 0x508   : > { %v8940_v12 = vpop.permute.xlu1 %4136 }
 0x50b   : > { %4099 = vrot.lane.b32.xlu0 %v8868_v35, %s5883_s26  ;;  %3858 = vrot.lane.b32.xlu1 %v8844_v1, %s5879_s24 }
 0x50c   : > { %v8948_v5 = vpop.permute.xlu1 %4300 }
 0x50d   : > { %10641 = vst [vmem:[#allocation81_spill] sm:$0xff] %v8948_v5  ;;  %v9108_v5 = vrot.slane %v5711_v20, %v10647_v50 }
 0x50f   : > { %4255 = vrot.lane.b32.xlu0 %v8868_v35, %s5878_s23  ;;  %3935 = vrot.lane.b32.xlu1 %v8844_v1, %s5880_s30 }
 0x510   : > { %v8958_v16 = vpop.permute.xlu1 %4460 }
 0x511   : > { %10642 = vst [vmem:[#allocation82_spill] sm:$0xff] %v8958_v16  ;;  %v5707_v16 = vld [vmem:[%s9841_s13 + $0x1] ss:$8 sm:$0x3] }
 0x513   : > { %3860 = vrot.lane.b32.xlu0 %v8895_v53, %s5879_s24  ;;  %4091 = vrot.lane.b32.xlu1 %v8844_v1, %s5883_s26 }
 0x514   : > { %v8964_v56 = vpop.permute.xlu1 %4292 }
 0x517   : > { %3937 = vrot.lane.b32.xlu0 %v8895_v53, %s5880_s30  ;;  %4247 = vrot.lane.b32.xlu1 %v8844_v1, %s5878_s23 }
 0x518   : > { %v8975_v34 = vpop.permute.xlu1 %4456 }
 0x519   : > { %10643 = vst [vmem:[#allocation109_spill] sm:$0xff] %v8975_v34 }
 0x51b   : > { %4015 = vrot.lane.b32.xlu0 %v8895_v53, %s5881_s17  ;;  %4021 = vrot.lane.b32.xlu1 %v8868_v35, %s5881_s17 }
 0x51c   : > { %v8984_v55 = vpop.permute.xlu1 %4452 }
 0x51f   : > { %4171 = vrot.lane.b32.xlu0 %v8895_v53, %s5882_s0  ;;  %4177 = vrot.lane.b32.xlu1 %v8868_v35, %s5882_s0 }
 0x520   : > { %v8992_v18 = vpop.permute.xlu1 %4503 }
 0x521   : > { %10644 = vst [vmem:[#allocation87_spill] sm:$0xff] %v8992_v18 }
 0x523   : > { %4327 = vrot.lane.b32.xlu0 %v8895_v53, %s5884_s28  ;;  %4333 = vrot.lane.b32.xlu1 %v8868_v35, %s5884_s28 }
 0x527   : > { %4413 = vrot.lane.b32.xlu0 %v8928_v23, %s5885_s19  ;;  %4411 = vrot.lane.b32.xlu1 %v8868_v35, %s5885_s19 }
 0x52b   : > { %3862 = vrot.lane.b32.xlu0 %v8934_v6, %s5879_s24  ;;  %4093 = vrot.lane.b32.xlu1 %v8895_v53, %s5883_s26 }
 0x52f   : > { %3947 = vrot.lane.b32.xlu0 %v8942_v8, %s5880_s30  ;;  %4249 = vrot.lane.b32.xlu1 %v8895_v53, %s5878_s23 }
 0x533   : > { %4103 = vrot.lane.b32.xlu0 %v8942_v8, %s5883_s26  ;;  %4405 = vrot.lane.b32.xlu1 %v8895_v53, %s5885_s19 }
 0x537   : > { %4259 = vrot.lane.b32.xlu0 %v8942_v8, %s5878_s23  ;;  %3868 = vrot.lane.b32.xlu1 %v8928_v23, %s5879_s24 }
 0x53b   : > { %4415 = vrot.lane.b32.xlu0 %v8942_v8, %s5885_s19  ;;  %3945 = vrot.lane.b32.xlu1 %v8928_v23, %s5880_s30 }
 0x53f   : > { %4409 = vrot.lane.b32.xlu0 %v8824_v10, %s5885_s19  ;;  %4023 = vrot.lane.b32.xlu1 %v8928_v23, %s5881_s17 }
 0x543   : > { %4493 = vperm.xlu0 %5833, %v4479_v29   ;;  %4101 = vrot.lane.b32.xlu1 %v8928_v23, %s5883_s26  ;;  %v3881_v29 = vld [vmem:[%s9841_s13] ss:$8 sm:$0x3] }
 0x544   : > { %v9026_v0 = vrot.slane %v3881_v29, %v10647_v50 }
 0x547   : > { %4587 = vperm.xlu0 %5833, %v4573_v9   ;;  %4179 = vrot.lane.b32.xlu1 %v8928_v23, %s5882_s0 }
 0x54b   : > { %4257 = vrot.lane.b32.xlu1 %v8928_v23, %s5878_s23 }
 0x54f   : > { %4335 = vrot.lane.b32.xlu1 %v8928_v23, %s5884_s28 }
 0x553   : > { %3939 = vrot.lane.b32.xlu1 %v8934_v6, %s5880_s30 }
 0x555   : > { %v8998_v38 = vpop.permute.xlu0 %4245  ;;  %v3857_v52 = vpop.permute.xlu1 %3856 }
 0x557   : > { %4017 = vrot.lane.b32.xlu1 %v8934_v6, %s5881_s17 }
 0x559   : > { %v3865_v13 = vpop.permute.xlu0 %3864  ;;  %v3934_v33 = vpop.permute.xlu1 %3933 }
 0x55a   : > { %v3873_v39 = vsel %vm3872_vm2, %v3857_v52, %v3865_v13  ;;  %v3877_v27 = vsel %vm3872_vm2, %v3865_v13, %v3857_v52  ;;  %v10646_v13 = vld [vmem:[#allocation45_spill] sm:$0xff] }
 0x55b   : > { %4095 = vrot.lane.b32.xlu1 %v8934_v6, %s5883_s26  ;;  %v9023_v62 = vrot.slane %v3881_v29, %v10646_v13  ;;  %v3894_v29 = vmul.f32 %v9026_v0, %v3873_v39  ;;  %v9045_v21 = vrot.slane %v5708_v60, %v10646_v13  ;;  %v9061_v39 = vrot.slane %v5707_v16, %v10646_v13  ;;  %v5709_v60 = vld [vmem:[%s9841_s13 + $0x3] ss:$8 sm:$0x3] }
 0x55c   : > { %v9092_v30 = vrot.slane %v5709_v60, %v10646_v13 }
 0x55d   : > { %v4020_v57 = vpop.permute.xlu0 %4019  ;;  %v4012_v44 = vpop.permute.xlu1 %4011  ;;  %v3893_v51 = vmul.f32 %v9023_v62, %v3877_v27  ;;  %v5710_v27 = vld [vmem:[%s9841_s13 + $0x4] ss:$8 sm:$0x3]  ;;  %v3918_v17 = vmul.f32 %v8889_v42, %v3894_v29  ;;  %v9101_v29 = vrot.slane %v5709_v60, %v10647_v50 }
 0x55e   : > { %v4028_v2 = vsel %vm4027_vm3, %v4012_v44, %v4020_v57  ;;  %v4032_v61 = vsel %vm4027_vm3, %v4020_v57, %v4012_v44 }
 0x55f   : > { %4173 = vrot.lane.b32.xlu1 %v8934_v6, %s5882_s0  ;;  %v3917_v18 = vmul.f32 %v8889_v42, %v3893_v51  ;;  %v4049_v24 = vmul.f32 %v9045_v21, %v4032_v61  ;;  %v4050_v3 = vmul.f32 %v9048_v31, %v4028_v2 }
 0x561   : > { %v4176_v9 = vpop.permute.xlu0 %4175  ;;  %v4090_v52 = vpop.permute.xlu1 %4089 }
 0x563   : > { %4251 = vrot.lane.b32.xlu1 %v8934_v6, %s5878_s23 }
 0x565   : > { %v9028_v57 = vpop.permute.xlu0 %4013  ;;  %v4168_v44 = vpop.permute.xlu1 %4167 }
 0x566   : > { %v4184_v43 = vsel %vm4183_vm4, %v4168_v44, %v4176_v9  ;;  %v4188_v32 = vsel %vm4183_vm4, %v4176_v9, %v4168_v44  ;;  %v9064_v44 = vrot.slane %v5707_v16, %v10647_v50  ;;  %v9078_v16 = vrot.slane %v5710_v27, %v10646_v13 }
 0x567   : > { %4329 = vrot.lane.b32.xlu1 %v8934_v6, %s5884_s28 }
 0x569   : > { %v9050_v26 = vpop.permute.xlu0 %4169  ;;  %v9052_v9 = vpop.permute.xlu1 %4323 }
 0x56b   : > { %4407 = vrot.lane.b32.xlu1 %v8934_v6, %s5885_s19  ;;  %v9081_v6 = vrot.slane %v5710_v27, %v10647_v50  ;;  %v9105_v27 = vrot.slane %v5711_v20, %v10646_v13 }
 0x56d   : > { %v3942_v34 = vpop.permute.xlu1 %3941  ;;  %v9094_v42 = vpop.permute.xlu0 %4325 }
 0x56e   : > { %v3950_v51 = vsel %vm3949_vm5, %v3934_v33, %v3942_v34  ;;  %v3954_v10 = vsel %vm3949_vm5, %v3942_v34, %v3934_v33  ;;  %v3925_v34 = vadd.f32 %v3917_v18, %v3848_v36  ;;  %v3926_v33 = vadd.f32 %v3918_v17, %v3849_v19  ;;  %v5712_v36 = vld [vmem:[%s9841_s13 + $0x6] ss:$8 sm:$0x3] }
 0x56f   : > { %v3971_v2 = vmul.f32 %v9061_v39, %v3954_v10  ;;  %v3972_v61 = vmul.f32 %v9064_v44, %v3950_v51  ;;  %3870 = vrot.lane.b32.xlu1 %v8942_v8, %s5879_s24  ;;  %v4073_v10 = vmul.f32 %v8768_v49, %v4049_v24  ;;  %v4074_v51 = vmul.f32 %v8768_v49, %v4050_v3 }
 0x570   : > { %v4205_v17 = vmul.f32 %v9078_v16, %v4184_v43  ;;  %v4206_v19 = vmul.f32 %v9081_v6, %v4188_v32  ;;  %v9129_v43 = vrot.slane %v5712_v36, %v10646_v13  ;;  %v9132_v32 = vrot.slane %v5712_v36, %v10647_v50 }
 0x571   : > { %v3995_v22 = vmul.f32 %v8907_v11, %v3971_v2  ;;  %v3996_v59 = vmul.f32 %v8907_v11, %v3972_v61  ;;  %v4098_v60 = vpop.permute.xlu1 %4097  ;;  %v9134_v2 = vpop.permute.xlu0 %4403 }
 0x572   : > { %v4106_v20 = vsel %vm4105_vm6, %v4090_v52, %v4098_v60  ;;  %v4110_v24 = vsel %vm4105_vm6, %v4098_v60, %v4090_v52  ;;  %v4230_v60 = vmul.f32 %v8788_v54, %v4206_v19 }
 0x573   : > { %v4003_v49 = vadd.f32 %v3995_v22, %v3925_v34  ;;  %v4004_v3 = vadd.f32 %v3996_v59, %v3926_v33  ;;  %v4127_v18 = vmul.f32 %v9092_v30, %v4110_v24  ;;  %v4128_v11 = vmul.f32 %v9101_v29, %v4106_v20  ;;  %4025 = vrot.lane.b32.xlu1 %v8942_v8, %s5881_s17 }
 0x574   : > { %v4229_v33 = vmul.f32 %v8788_v54, %v4205_v17 }
 0x575   : > { %v4082_v52 = vadd.f32 %v4074_v51, %v4004_v3  ;;  %v4081_v22 = vadd.f32 %v4073_v10, %v4003_v49  ;;  %v4151_v59 = vmul.f32 %v8940_v12, %v4127_v18  ;;  %v4152_v61 = vmul.f32 %v8940_v12, %v4128_v11  ;;  %v4254_v34 = vpop.permute.xlu1 %4253  ;;  %v3867_v11 = vpop.permute.xlu0 %3866 }
 0x576   : > { %v4262_v20 = vsel %vm4261_vm7, %v8998_v38, %v4254_v34  ;;  %v4266_v36 = vsel %vm4261_vm7, %v4254_v34, %v8998_v38 }
 0x577   : > { %v4159_v24 = vadd.f32 %v4151_v59, %v4081_v22  ;;  %v4160_v51 = vadd.f32 %v4152_v61, %v4082_v52  ;;  %v4283_v10 = vmul.f32 %v9105_v27, %v4262_v20  ;;  %v4284_v49 = vmul.f32 %v9108_v5, %v4266_v36  ;;  %4181 = vrot.lane.b32.xlu1 %v8942_v8, %s5882_s0 }
 0x579   : > { %v4238_v12 = vadd.f32 %v4230_v60, %v4160_v51  ;;  %v4237_v17 = vadd.f32 %v4229_v33, %v4159_v24  ;;  %v4307_v54 = vmul.f32 %v8964_v56, %v4283_v10  ;;  %v4308_v19 = vmul.f32 %v8964_v56, %v4284_v49  ;;  %v4332_v3 = vpop.permute.xlu1 %4331  ;;  %v3944_v10 = vpop.permute.xlu0 %3943 }
 0x57a   : > { %v4340_v38 = vsel %vm4339_vm8, %v9052_v9, %v4332_v3  ;;  %v4344_v18 = vsel %vm4339_vm8, %v4332_v3, %v9052_v9  ;;  %v3850_v49 = vmul.f32 %v8862_v14, %v8844_v1 }
 0x57b   : > { %v4315_v52 = vadd.f32 %v4307_v54, %v4237_v17  ;;  %v4316_v22 = vadd.f32 %v4308_v19, %v4238_v12  ;;  %v4361_v59 = vmul.f32 %v9129_v43, %v4340_v38  ;;  %v4362_v61 = vmul.f32 %v9132_v32, %v4344_v18  ;;  %4337 = vrot.lane.b32.xlu1 %v8942_v8, %s5884_s28 }
 0x57c   : > { %v3851_v12 = vmul.f32 %v8862_v14, %v8868_v35  ;;  %v4571_v14 = vld [vmem:[%s9843_s15] sm:$0xff] }
 0x57d   : > { %v4385_v56 = vmul.f32 %v8808_v4, %v4361_v59  ;;  %v4386_v34 = vmul.f32 %v8808_v4, %v4362_v61  ;;  %v3859_v33 = vpop.permute.xlu1 %3858  ;;  %v4480_v4 = vld [vmem:[%s9840_s12 + $0x8] sm:$0xff]  ;;  %v4100_v61 = vpop.permute.xlu0 %4099 }
 0x57e   : > { %v3874_v60 = vsel %vm3872_vm2, %v3859_v33, %v3867_v11  ;;  %v3878_v9 = vsel %vm3872_vm2, %v3867_v11, %v3859_v33 }
 0x57f   : > { %v9168_v20 = vadd.f32 %v4385_v56, %v4315_v52  ;;  %v9170_v36 = vadd.f32 %v4386_v34, %v4316_v22  ;;  %v3895_v24 = vmul.f32 %v9023_v62, %v3878_v9  ;;  %v3896_v51 = vmul.f32 %v9026_v0, %v3874_v60  ;;  %4401 = vrot.lane.b32.xlu1 %v8818_v58, %s5885_s19  ;;  %v4572_v56 = vld [vmem:[%s9843_s15 + $0x8] sm:$0xff] }
 0x581   : > { %v3919_v17 = vmul.f32 %v8986_v63, %v3895_v24  ;;  %v3920_v54 = vmul.f32 %v8986_v63, %v3896_v51  ;;  %v3936_v19 = vpop.permute.xlu1 %3935 }
 0x582   : > { %v3951_v3 = vsel %vm3949_vm5, %v3936_v19, %v3944_v10  ;;  %v3955_v58 = vsel %vm3949_vm5, %v3944_v10, %v3936_v19 }
 0x583   : > { %v3927_v38 = vadd.f32 %v3919_v17, %v3850_v49  ;;  %v3928_v18 = vadd.f32 %v3920_v54, %v3851_v12  ;;  %v3973_v11 = vmul.f32 %v9061_v39, %v3955_v58  ;;  %v3974_v1 = vmul.f32 %v9064_v44, %v3951_v3  ;;  %4498 = vperm.xlu1 %5834, %v4480_v4   ;;  %v4256_v4 = vpop.permute.xlu0 %4255 }
 0x585   : > { %v3997_v35 = vmul.f32 %v8760_v37, %v3973_v11  ;;  %v3998_v63 = vmul.f32 %v8760_v37, %v3974_v1  ;;  %v4092_v52 = vpop.permute.xlu1 %4091  ;;  %v4574_v37 = vld [vmem:[%s9843_s15 + $0x18] sm:$0xff]  ;;  %v5713_v11 = vld [vmem:[%s9841_s13 + $0x7] ss:$8 sm:$0x3] }
 0x586   : > { %v4107_v33 = vsel %vm4105_vm6, %v4092_v52, %v4100_v61  ;;  %v4111_v60 = vsel %vm4105_vm6, %v4100_v61, %v4092_v52 }
 0x587   : > { %v4005_v22 = vadd.f32 %v3997_v35, %v3927_v38  ;;  %v4006_v59 = vadd.f32 %v3998_v63, %v3928_v18  ;;  %4577 = vperm.xlu1 %5834, %v4571_v14   ;;  %v4129_v9 = vmul.f32 %v9092_v30, %v4111_v60  ;;  %v4130_v24 = vmul.f32 %v9101_v29, %v4107_v33 }
 0x589   : > { %v4248_v34 = vpop.permute.xlu1 %4247  ;;  %v4153_v3 = vmul.f32 %v8770_v46, %v4129_v9  ;;  %v4154_v58 = vmul.f32 %v8770_v46, %v4130_v24 }
 0x58a   : > { %v4263_v12 = vsel %vm4261_vm7, %v4248_v34, %v4256_v4  ;;  %v4267_v17 = vsel %vm4261_vm7, %v4256_v4, %v4248_v34  ;;  %v9242_v34 = vrot.slane %v5713_v11, %v10647_v50 }
 0x58b   : > { %4582 = vperm.xlu1 %5834, %v4572_v56   ;;  %v4285_v1 = vmul.f32 %v9105_v27, %v4263_v12  ;;  %v4286_v14 = vmul.f32 %v9108_v5, %v4267_v17  ;;  %v9239_v56 = vrot.slane %v5713_v11, %v10646_v13  ;;  %v3861_v11 = vpop.permute.xlu0 %3860 }
 0x58d   : > { %v4022_v51 = vpop.permute.xlu1 %4021  ;;  %v4310_v9 = vmul.f32 %v8790_v28, %v4286_v14 }
 0x58e   : > { %v4029_v10 = vsel %vm4027_vm3, %v9028_v57, %v4022_v51  ;;  %v4033_v49 = vsel %vm4027_vm3, %v4022_v51, %v9028_v57 }
 0x58f   : > { %v4051_v54 = vmul.f32 %v9045_v21, %v4033_v49  ;;  %v4052_v19 = vmul.f32 %v9048_v31, %v4029_v10  ;;  %4592 = vperm.xlu1 %5834, %v4574_v37  }
 0x591   : > { %v4075_v38 = vmul.f32 %v8766_v45, %v4051_v54  ;;  %v4076_v18 = vmul.f32 %v8766_v45, %v4052_v19  ;;  %v4178_v57 = vpop.permute.xlu1 %4177 }
 0x592   : > { %v4185_v35 = vsel %vm4183_vm4, %v9050_v26, %v4178_v57  ;;  %v4189_v46 = vsel %vm4183_vm4, %v4178_v57, %v9050_v26 }
 0x593   : > { %v4083_v63 = vadd.f32 %v4075_v38, %v4005_v22  ;;  %v4084_v52 = vadd.f32 %v4076_v18, %v4006_v59  ;;  %v4207_v45 = vmul.f32 %v9078_v16, %v4185_v35  ;;  %v4208_v61 = vmul.f32 %v9081_v6, %v4189_v46  ;;  %v3938_v46 = vpop.permute.xlu0 %3937 }
 0x594   : > { %v4309_v59 = vmul.f32 %v8790_v28, %v4285_v1 }
 0x595   : > { %v4161_v33 = vadd.f32 %v4153_v3, %v4083_v63  ;;  %v4162_v60 = vadd.f32 %v4154_v58, %v4084_v52  ;;  %v4231_v37 = vmul.f32 %v8784_v48, %v4207_v45  ;;  %v4232_v26 = vmul.f32 %v8784_v48, %v4208_v61  ;;  %v4334_v22 = vpop.permute.xlu1 %4333 }
 0x596   : > { %v4341_v24 = vsel %vm4339_vm8, %v9094_v42, %v4334_v22  ;;  %v4345_v50 = vsel %vm4339_vm8, %v4334_v22, %v9094_v42 }
 0x597   : > { %v4239_v13 = vadd.f32 %v4231_v37, %v4161_v33  ;;  %v4240_v51 = vadd.f32 %v4232_v26, %v4162_v60  ;;  %v4363_v4 = vmul.f32 %v9129_v43, %v4341_v24  ;;  %v4364_v10 = vmul.f32 %v9132_v32, %v4345_v50  ;;  %v4016_v52 = vpop.permute.xlu0 %4015 }
 0x599   : > { %v4317_v48 = vadd.f32 %v4309_v59, %v4239_v13  ;;  %v4318_v49 = vadd.f32 %v4310_v9, %v4240_v51  ;;  %v4387_v12 = vmul.f32 %v8802_v47, %v4363_v4  ;;  %v4388_v28 = vmul.f32 %v8802_v47, %v4364_v10  ;;  %v4412_v17 = vpop.permute.xlu1 %4411 }
 0x59a   : > { %v4419_v54 = vsel %vm4417_vm9, %v9134_v2, %v4412_v17  ;;  %v4423_v42 = vsel %vm4417_vm9, %v4412_v17, %v9134_v2  ;;  %v3852_v10 = vmul.f32 %v8841_v41, %v8895_v53 }
 0x59b   : > { %v4395_v19 = vadd.f32 %v4387_v12, %v4317_v48  ;;  %v4396_v3 = vadd.f32 %v4388_v28, %v4318_v49  ;;  %v4441_v58 = vmul.f32 %v9239_v56, %v4419_v54  ;;  %v4442_v38 = vmul.f32 %v9242_v34, %v4423_v42  ;;  %v4172_v22 = vpop.permute.xlu0 %4171 }
 0x59c   : > { %v3853_v48 = vmul.f32 %v8841_v41, %v8928_v23 }
 0x59d   : > { %v4465_v18 = vmul.f32 %v8984_v55, %v4441_v58  ;;  %v4466_v57 = vmul.f32 %v8984_v55, %v4442_v38  ;;  %v4094_v47 = vpop.permute.xlu1 %4093 }
 0x59f   : > { %v9268_v1 = vadd.f32 %v4465_v18, %v4395_v19  ;;  %v9270_v14 = vadd.f32 %v4466_v57, %v4396_v3  ;;  %v4328_v19 = vpop.permute.xlu0 %4327 }
 0x5a1   : > { %v4250_v35 = vpop.permute.xlu1 %4249  ;;  %vm4485_vm0 = vcmp.ge.f32.partialorder %v9268_v1, 0.0  ;;  %vm4486_vm1 = vcmp.ge.f32.partialorder %v9270_v14, 0.0 }
 0x5a5   : > { %v4406_v63 = vpop.permute.xlu1 %4405 }
 0x5a9   : > { %v3869_v2 = vpop.permute.xlu1 %3868 }
 0x5aa   : > { %v3875_v45 = vsel %vm3872_vm2, %v3861_v11, %v3869_v2  ;;  %v3879_v61 = vsel %vm3872_vm2, %v3869_v2, %v3861_v11 }
 0x5ab   : > { %v3897_v37 = vmul.f32 %v9023_v62, %v3879_v61  ;;  %v3898_v26 = vmul.f32 %v9026_v0, %v3875_v45 }
 0x5ad   : > { %v3946_v33 = vpop.permute.xlu1 %3945  ;;  %v3921_v51 = vmul.f32 %v8980_v40, %v3897_v37  ;;  %v3922_v4 = vmul.f32 %v8980_v40, %v3898_v26 }
 0x5ae   : > { %v3952_v55 = vsel %vm3949_vm5, %v3938_v46, %v3946_v33  ;;  %v3956_v60 = vsel %vm3949_vm5, %v3946_v33, %v3938_v46  ;;  %v10648_v46 = vld [vmem:[#allocation117_spill] sm:$0xff]  ;;  %v4414_v33 = vpop.permute.xlu0 %4413 }
 0x5af   : > { %v3975_v9 = vmul.f32 %v9061_v39, %v3956_v60  ;;  %v3976_v24 = vmul.f32 %v9064_v44, %v3952_v55  ;;  %v3929_v23 = vadd.f32 %v3921_v51, %v3852_v10  ;;  %v3930_v3 = vadd.f32 %v3922_v4, %v3853_v48  ;;  %v10649_v60 = vld [vmem:[#allocation101_spill] sm:$0xff] }
 0x5b1   : > { %v4024_v59 = vpop.permute.xlu1 %4023  ;;  %v3999_v17 = vmul.f32 %v8870_v7, %v3975_v9  ;;  %v4000_v54 = vmul.f32 %v8870_v7, %v3976_v24  ;;  %v4420_v9 = vsel %vm4417_vm9, %v4406_v63, %v4414_v33 }
 0x5b2   : > { %v4030_v50 = vsel %vm4027_vm3, %v4016_v52, %v4024_v59  ;;  %v4034_v13 = vsel %vm4027_vm3, %v4024_v59, %v4016_v52 }
 0x5b3   : > { %v4053_v49 = vmul.f32 %v9045_v21, %v4034_v13  ;;  %v4054_v12 = vmul.f32 %v9048_v31, %v4030_v50  ;;  %v4007_v57 = vadd.f32 %v3999_v17, %v3929_v23  ;;  %v4008_v7 = vadd.f32 %v4000_v54, %v3930_v3 }
 0x5b5   : > { %v4102_v28 = vpop.permute.xlu1 %4101  ;;  %v4077_v58 = vmul.f32 %v8764_v25, %v4053_v49  ;;  %v4078_v38 = vmul.f32 %v8764_v25, %v4054_v12  ;;  %v10650_v12 = vld [vmem:[#allocation81_spill] sm:$0xff] }
 0x5b6   : > { %v4108_v42 = vsel %vm4105_vm6, %v4094_v47, %v4102_v28  ;;  %v4112_v40 = vsel %vm4105_vm6, %v4102_v28, %v4094_v47 }
 0x5b7   : > { %v4131_v53 = vmul.f32 %v9092_v30, %v4112_v40  ;;  %v4132_v41 = vmul.f32 %v9101_v29, %v4108_v42  ;;  %v4085_v55 = vadd.f32 %v4077_v58, %v4007_v57  ;;  %v4086_v25 = vadd.f32 %v4078_v38, %v4008_v7  ;;  %v10651_v58 = vld [vmem:[#allocation77_spill] sm:$0xff] }
 0x5b8   : > { %v10652_v7 = vld [vmem:[#allocation109_spill] sm:$0xff] }
 0x5b9   : > { %v4180_v18 = vpop.permute.xlu1 %4179  ;;  %v4155_v2 = vmul.f32 %v10648_v46, %v4131_v53  ;;  %v4156_v52 = vmul.f32 %v10648_v46, %v4132_v41 }
 0x5ba   : > { %v4186_v11 = vsel %vm4183_vm4, %v4172_v22, %v4180_v18  ;;  %v4190_v47 = vsel %vm4183_vm4, %v4180_v18, %v4172_v22  ;;  %v4424_v22 = vsel %vm4417_vm9, %v4414_v33, %v4406_v63  ;;  %v4443_v63 = vmul.f32 %v9239_v56, %v4420_v9  ;;  %v3863_v33 = vpop.permute.xlu0 %3862 }
 0x5bb   : > { %v4209_v45 = vmul.f32 %v9078_v16, %v4186_v11  ;;  %v4210_v61 = vmul.f32 %v9081_v6, %v4190_v47  ;;  %v4163_v13 = vadd.f32 %v4155_v2, %v4085_v55  ;;  %v4164_v51 = vadd.f32 %v4156_v52, %v4086_v25 }
 0x5bc   : > { %v4444_v42 = vmul.f32 %v9242_v34, %v4424_v22  ;;  %v4467_v11 = vmul.f32 %v10652_v7, %v4443_v63  ;;  %v10655_v63 = vld [vmem:[#allocation83_spill] sm:$0xff] }
 0x5bd   : > { %v4233_v37 = vmul.f32 %v10649_v60, %v4209_v45  ;;  %v4234_v26 = vmul.f32 %v10649_v60, %v4210_v61  ;;  %v4258_v59 = vpop.permute.xlu1 %4257 }
 0x5be   : > { %v4264_v24 = vsel %vm4261_vm7, %v4250_v35, %v4258_v59  ;;  %v4268_v50 = vsel %vm4261_vm7, %v4258_v59, %v4250_v35  ;;  %v4468_v47 = vmul.f32 %v10652_v7, %v4444_v42  ;;  %v3948_v60 = vpop.permute.xlu0 %3947 }
 0x5bf   : > { %v4287_v4 = vmul.f32 %v9105_v27, %v4264_v24  ;;  %v4288_v10 = vmul.f32 %v9108_v5, %v4268_v50  ;;  %v4241_v48 = vadd.f32 %v4233_v37, %v4163_v13  ;;  %v4242_v49 = vadd.f32 %v4234_v26, %v4164_v51 }
 0x5c1   : > { %v4311_v28 = vmul.f32 %v10650_v12, %v4287_v4  ;;  %v4312_v17 = vmul.f32 %v10650_v12, %v4288_v10  ;;  %v4336_v54 = vpop.permute.xlu1 %4335  ;;  %v10653_v12 = vld [vmem:[#allocation114_spill] sm:$0xff] }
 0x5c2   : > { %v4342_v35 = vsel %vm4339_vm8, %v4328_v19, %v4336_v54  ;;  %v4346_v40 = vsel %vm4339_vm8, %v4336_v54, %v4328_v19  ;;  %v4104_v26 = vpop.permute.xlu0 %4103 }
 0x5c3   : > { %v4319_v53 = vadd.f32 %v4311_v28, %v4241_v48  ;;  %v4320_v41 = vadd.f32 %v4312_v17, %v4242_v49  ;;  %v4365_v23 = vmul.f32 %v9129_v43, %v4342_v35  ;;  %v4366_v3 = vmul.f32 %v9132_v32, %v4346_v40  ;;  %v10654_v28 = vld [vmem:[#allocation113_spill] sm:$0xff] }
 0x5c4   : > { %v3854_v17 = vmul.f32 %v10654_v28, %v10653_v12 }
 0x5c5   : > { %v4389_v38 = vmul.f32 %v10651_v58, %v4365_v23  ;;  %v4390_v18 = vmul.f32 %v10651_v58, %v4366_v3  ;;  %v3940_v57 = vpop.permute.xlu1 %3939  ;;  %v10656_v3 = vld [vmem:[#allocation104_spill] sm:$0xff] }
 0x5c6   : > { %v3953_v59 = vsel %vm3949_vm5, %v3940_v57, %v3948_v60  ;;  %v3957_v9 = vsel %vm3949_vm5, %v3948_v60, %v3940_v57  ;;  %v4260_v49 = vpop.permute.xlu0 %4259 }
 0x5c7   : > { %v4397_v46 = vadd.f32 %v4389_v38, %v4319_v53  ;;  %v4398_v2 = vadd.f32 %v4390_v18, %v4320_v41  ;;  %v3977_v24 = vmul.f32 %v9061_v39, %v3957_v9  ;;  %v3978_v50 = vmul.f32 %v9064_v44, %v3953_v59 }
 0x5c8   : > { %v3855_v39 = vmul.f32 %v10654_v28, %v8942_v8 }
 0x5c9   : > { %v9340_v52 = vadd.f32 %v4467_v11, %v4397_v46  ;;  %v9342_v19 = vadd.f32 %v4468_v47, %v4398_v2  ;;  %v4018_v45 = vpop.permute.xlu1 %4017  ;;  %v4001_v42 = vmul.f32 %v10655_v63, %v3977_v24  ;;  %v4002_v35 = vmul.f32 %v10655_v63, %v3978_v50  ;;  %v10658_v47 = vld [vmem:[#allocation105_spill] sm:$0xff] }
 0x5cb   : > { %vm4488_vm10 = vcmp.ge.f32.partialorder %v9342_v19, 0.0  ;;  %vm4487_vm11 = vcmp.ge.f32.partialorder %v9340_v52, 0.0 }
 0x5cd   : > { %v4096_v61 = vpop.permute.xlu1 %4095 }
 0x5ce   : > { %v4109_v13 = vsel %vm4105_vm6, %v4096_v61, %v4104_v26  ;;  %v4113_v51 = vsel %vm4105_vm6, %v4104_v26, %v4096_v61  ;;  %v10659_v26 = vld [vmem:[#allocation78_spill] sm:$0xff] }
 0x5cf   : > { %v4133_v40 = vmul.f32 %v9092_v30, %v4113_v51  ;;  %v4134_v53 = vmul.f32 %v9101_v29, %v4109_v13  ;;  %v10657_v30 = vld [vmem:[#allocation87_spill] sm:$0xff] }
 0x5d0   : > { %v4516_v29 = vmul.f32 %v10657_v30, %v9342_v19 }
 0x5d1   : > { %v4174_v55 = vpop.permute.xlu1 %4173  ;;  %v4157_v46 = vmul.f32 %v10658_v47, %v4133_v40  ;;  %v4158_v2 = vmul.f32 %v10658_v47, %v4134_v53 }
 0x5d5   : > { %v4252_v25 = vpop.permute.xlu1 %4251 }
 0x5d6   : > { %v4265_v41 = vsel %vm4261_vm7, %v4252_v25, %v4260_v49  ;;  %v4269_v23 = vsel %vm4261_vm7, %v4260_v49, %v4252_v25 }
 0x5d7   : > { %v4289_v61 = vmul.f32 %v9105_v27, %v4265_v41  ;;  %v4524_v41 = vsel %vm4488_vm10, %v9342_v19, %v4516_v29 }
 0x5d9   : > { %v9344_v37 = vpop.permute.xlu1 %4329 }
 0x5dd   : > { %v4408_v22 = vpop.permute.xlu1 %4407 }
 0x5e1   : > { %v3871_v4 = vpop.permute.xlu1 %3870 }
 0x5e2   : > { %v3876_v10 = vsel %vm3872_vm2, %v3863_v33, %v3871_v4  ;;  %v3880_v48 = vsel %vm3872_vm2, %v3871_v4, %v3863_v33  ;;  %v4290_v33 = vmul.f32 %v9108_v5, %v4269_v23 }
 0x5e3   : > { %v3899_v44 = vmul.f32 %v9023_v62, %v3880_v48  ;;  %v3900_v54 = vmul.f32 %v9026_v0, %v3876_v10  ;;  %v10660_v10 = vld [vmem:[#allocation103_spill] sm:$0xff] }
 0x5e4   : > { %v4313_v48 = vmul.f32 %v10660_v10, %v4289_v61  ;;  %v4314_v49 = vmul.f32 %v10660_v10, %v4290_v33  ;;  %v10664_v61 = vld [vmem:[#allocation108_spill] sm:$0xff] }
 0x5e5   : > { %v3923_v8 = vmul.f32 %v10656_v3, %v3899_v44  ;;  %v3924_v62 = vmul.f32 %v10656_v3, %v3900_v54  ;;  %v4026_v58 = vpop.permute.xlu1 %4025 }
 0x5e6   : > { %v4031_v0 = vsel %vm4027_vm3, %v4018_v45, %v4026_v58  ;;  %v4035_v38 = vsel %vm4027_vm3, %v4026_v58, %v4018_v45  ;;  %v4416_v45 = vpop.permute.xlu0 %4415  ;;  %v10662_v58 = vld [vmem:[#allocation94_spill] sm:$0xff] }
 0x5e7   : > { %v3931_v18 = vadd.f32 %v3923_v8, %v3854_v17  ;;  %v3932_v57 = vadd.f32 %v3924_v62, %v3855_v39  ;;  %v4055_v7 = vmul.f32 %v9045_v21, %v4035_v38  ;;  %v4056_v11 = vmul.f32 %v9048_v31, %v4031_v0  ;;  %v10661_v17 = vld [vmem:[#allocation79_spill] sm:$0xff] }
 0x5e8   : > { %v4421_v21 = vsel %vm4417_vm9, %v4408_v22, %v4416_v45  ;;  %v4425_v31 = vsel %vm4417_vm9, %v4416_v45, %v4408_v22  ;;  %v4515_v22 = vmul.f32 %v10657_v30, %v9340_v52  ;;  %v10663_v30 = vld [vmem:[#allocation82_spill] sm:$0xff] }
 0x5e9   : > { %v4009_v25 = vadd.f32 %v4001_v42, %v3931_v18  ;;  %v4010_v60 = vadd.f32 %v4002_v35, %v3932_v57  ;;  %v4079_v59 = vmul.f32 %v10659_v26, %v4055_v7  ;;  %v4080_v9 = vmul.f32 %v10659_v26, %v4056_v11  ;;  %v4182_v24 = vpop.permute.xlu1 %4181 }
 0x5ea   : > { %v4187_v50 = vsel %vm4183_vm4, %v4174_v55, %v4182_v24  ;;  %v4191_v5 = vsel %vm4183_vm4, %v4182_v24, %v4174_v55  ;;  %v4523_v23 = vsel %vm4487_vm11, %v9340_v52, %v4515_v22  ;;  %v4410_v3 = vpop.permute.xlu0 %4409  ;;  %v9434_v11 = vand.u32 4294901760, %v4524_v41 }
 0x5eb   : > { %v4087_v27 = vadd.f32 %v4079_v59, %v4009_v25  ;;  %v4088_v13 = vadd.f32 %v4080_v9, %v4010_v60  ;;  %v4211_v51 = vmul.f32 %v9078_v16, %v4187_v50  ;;  %v4212_v4 = vmul.f32 %v9081_v6, %v4191_v5  ;;  %v10665_v60 = vld [vmem:[#allocation118_spill] sm:$0xff] }
 0x5ec   : > { %v4445_v16 = vmul.f32 %v9239_v56, %v4421_v21  ;;  %v4446_v6 = vmul.f32 %v9242_v34, %v4425_v31  ;;  %v9436_v47 = vand.u32 4294901760, %v4523_v23  ;;  %v9448_v9 = vsub.f32 %v4524_v41, %v9434_v11 }
 0x5ed   : > { %v4165_v12 = vadd.f32 %v4157_v46, %v4087_v27  ;;  %v4166_v28 = vadd.f32 %v4158_v2, %v4088_v13  ;;  %v4235_v39 = vmul.f32 %v10661_v17, %v4211_v51  ;;  %v4236_v55 = vmul.f32 %v10661_v17, %v4212_v4  ;;  %v4338_v44 = vpop.permute.xlu1 %4337 }
 0x5ee   : > { %v4343_v54 = vsel %vm4339_vm8, %v9344_v37, %v4338_v44  ;;  %v4347_v63 = vsel %vm4339_vm8, %v4338_v44, %v9344_v37  ;;  %v9445_v59 = vsub.f32 %v4523_v23, %v9436_v47  ;;  %v4750_v4 = vand.u32 4294901760, %v9448_v9 }
 0x5ef   : > { %v4243_v42 = vadd.f32 %v4235_v39, %v4165_v12  ;;  %v4244_v35 = vadd.f32 %v4236_v55, %v4166_v28  ;;  %v4367_v40 = vmul.f32 %v9129_v43, %v4343_v54  ;;  %v4368_v53 = vmul.f32 %v9132_v32, %v4347_v63 }
 0x5f0   : > { %v4469_v43 = vmul.f32 %v10663_v30, %v4445_v16  ;;  %v4470_v32 = vmul.f32 %v10663_v30, %v4446_v6  ;;  %v4756_v10 = vand.u32 4294901760, %v9445_v59  ;;  %v4751_v44 = vsub.f32 %v9448_v9, %v4750_v4 }
 0x5f1   : > { %v4321_v8 = vadd.f32 %v4313_v48, %v4243_v42  ;;  %v4322_v62 = vadd.f32 %v4314_v49, %v4244_v35  ;;  %v4391_v0 = vmul.f32 %v10662_v58, %v4367_v40  ;;  %v4392_v37 = vmul.f32 %v10662_v58, %v4368_v53  ;;  %v4402_v38 = vpop.permute.xlu1 %4401 }
 0x5f2   : > { %v4418_v18 = vsel %vm4417_vm9, %v4402_v38, %v4410_v3  ;;  %v4422_v19 = vsel %vm4417_vm9, %v4410_v3, %v4402_v38  ;;  %v4757_v16 = vsub.f32 %v9445_v59, %v4756_v10  ;;  %v10666_v38 = vld [vmem:[#allocation102_spill] sm:$0xff] }
 0x5f3   : > { %v4399_v29 = vadd.f32 %v4391_v0, %v4321_v8  ;;  %v4400_v52 = vadd.f32 %v4392_v37, %v4322_v62  ;;  %v4439_v57 = vmul.f32 %v9239_v56, %v4418_v18  ;;  %v4440_v7 = vmul.f32 %v9242_v34, %v4422_v19  ;;  %v4494_v56 = vpop.permute.xlu0 %4493  ;;  %v10667_v18 = vld [vmem:[#allocation106_spill] sm:$0xff] }
 0x5f4   : > { %v4758_v62 = vand.u32 4294901760, %v4757_v16 }
 0x5f5   : > { %v4477_v46 = vadd.f32 %v4469_v43, %v4399_v29  ;;  %v4478_v2 = vadd.f32 %v4470_v32, %v4400_v52  ;;  %v4463_v33 = vmul.f32 %v10664_v61, %v4439_v57  ;;  %v4464_v45 = vmul.f32 %v10664_v61, %v4440_v7  ;;  %v4535_v29 = vld [vmem:[%s9842_s14] sm:$0xff] }
 0x5f6   : > { %v10668_v52 = vld [vmem:[#allocation115_spill] sm:$0xff] }
 0x5f7   : > { %v4471_v25 = vadd.f32 %v4463_v33, %v9168_v20  ;;  %v4472_v15 = vadd.f32 %v4464_v45, %v9170_v36  ;;  %vm4490_vm12 = vcmp.ge.f32.partialorder %v4478_v2, 0.0  ;;  %v4518_v26 = vmul.f32 %v10665_v60, %v4478_v2  ;;  %v10671_v45 = vld [vmem:[#allocation84_spill] sm:$0xff] }
 0x5f8   : > { %vm4489_vm13 = vcmp.ge.f32.partialorder %v4477_v46, 0.0  ;;  %v4517_v34 = vmul.f32 %v10665_v60, %v4477_v46  ;;  %v9534_v33 = vand.u32 4294901760, %v4535_v29  ;;  %v4536_v60 = vld [vmem:[%s9842_s14 + $0x8] sm:$0xff] }
 0x5f9   : > { %v4511_v24 = vmul.f32 %v4494_v56, %v4471_v25  ;;  %v4512_v21 = vmul.f32 %v4494_v56, %v4472_v15  ;;  %v4526_v31 = vsel %vm4490_vm12, %v4478_v2, %v4518_v26  ;;  %vm4484_vm14 = vcmp.ge.f32.partialorder %v4472_v15, 0.0  ;;  %v10670_v2 = vld [vmem:[#allocation75_spill] sm:$0xff]  ;;  %v10673_v26 = vld [vmem:[#allocation97_spill] sm:$0xff]  ;;  %v10674_v56 = vld [vmem:[#allocation32_spill] sm:$0xff] }
 0x5fa   : > { %v9450_v20 = vand.u32 4294901760, %v4526_v31  ;;  %v4525_v36 = vsel %vm4489_vm13, %v4477_v46, %v4517_v34  ;;  %vm4483_vm15 = vcmp.ge.f32.partialorder %v4471_v25, 0.0  ;;  %v10669_v46 = vld [vmem:[#allocation116_spill] sm:$0xff]  ;;  %v10675_v34 = vld [vmem:[#allocation85_spill] sm:$0xff] }
 0x5fb   : > { %v9452_v50 = vand.u32 4294901760, %v4525_v36  ;;  %v4520_v5 = vsel %vm4484_vm14, %v4472_v15, %v4512_v21  ;;  %v4519_v27 = vsel %vm4483_vm15, %v4471_v25, %v4511_v24  ;;  %v10672_v15 = vld [vmem:[#allocation90_spill] sm:$0xff]  ;;  %v9545_v24 = vsub.f32 %v4535_v29, %v9534_v33  ;;  %v10676_v21 = vld [vmem:[#allocation3_spill] sm:$0xff]  ;;  %v10692_v29 = vld [vmem:[#allocation25_spill] sm:$0xff] }
 0x5fc   : > { %4596 = vmatprep.subr.mxu0 %v9450_v20  ;;  %v9456_v13 = vsub.f32 %v4526_v31, %v9450_v20  ;;  %v9458_v51 = vand.u32 4294901760, %v4520_v5  ;;  %v9466_v49 = vand.u32 4294901760, %v4519_v27  ;;  %v10677_v31 = vld [vmem:[#allocation89_spill] sm:$0xff] }
 0x5fd   : > { %4598 = vmatpush1.msra.mxu0 %v9452_v50  ;;  %v9464_v48 = vsub.f32 %v4525_v36, %v9452_v50  ;;  %v9549_v36 = vand.u32 4294901760, %v4536_v60  ;;  %v10199_v16 = vand.u32 4294901760, %v9545_v24 }
 0x5fe   : > { %4600 = vmatprep.subr.mxu0 %v9434_v11  ;;  %v4499_v22 = vpop.permute.xlu1 %4498  ;;  %v4738_v12 = vand.u32 4294901760, %v9456_v13  ;;  %v9486_v6 = vsub.f32 %v4520_v5, %v9458_v51  ;;  %v9494_v35 = vsub.f32 %v4519_v27, %v9466_v49  ;;  %v10678_v5 = vld [vmem:[#allocation9_spill] sm:$0xff] }
 0x5ff   : > { %v4513_v28 = vmul.f32 %v4499_v22, %v9268_v1  ;;  %v4514_v17 = vmul.f32 %v4499_v22, %v9270_v14  ;;  %4602 = vmatpush1.msra.mxu0 %v9436_v47  ;;  %v4744_v39 = vand.u32 4294901760, %v9464_v48  ;;  %v10679_v27 = vld [vmem:[#allocation37_spill] sm:$0xff]  ;;  %v10680_v22 = vld [vmem:[#allocation11_spill] sm:$0xff] }
 0x600   : > { %v4739_v55 = vsub.f32 %v9456_v13, %v4738_v12  ;;  %v10202_v8 = vand.u32 4294901760, %v9486_v6  ;;  %v10200_v58 = vand.u32 4294901760, %v9494_v35 }
 0x601   : > { %v4521_v54 = vsel %vm4485_vm0, %v9268_v1, %v4513_v28  ;;  %v4522_v63 = vsel %vm4486_vm1, %v9270_v14, %v4514_v17  ;;  %v4745_v42 = vsub.f32 %v9464_v48, %v4744_v39  ;;  %v4752_v14 = vand.u32 4294901760, %v4751_v44  ;;  %v10681_v28 = vld [vmem:[#allocation43_spill] sm:$0xff]  ;;  %v4537_v17 = vld [vmem:[%s9842_s14 + $0x10] sm:$0xff]  ;;  %v10683_v44 = vld [vmem:[#allocation26_spill] sm:$0xff] }
 0x602   : > { %v9496_v40 = vand.u32 4294901760, %v4522_v63  ;;  %v9498_v53 = vand.u32 4294901760, %v4521_v54  ;;  %v4740_v41 = vand.u32 4294901760, %v4739_v55  ;;  %v4775_v32 = vsub.f32 %v9486_v6, %v10202_v8  ;;  %v10682_v55 = vld [vmem:[#allocation15_spill] sm:$0xff] }
 0x603   : > { %v4746_v23 = vand.u32 4294901760, %v4745_v42  ;;  %v4781_v19 = vsub.f32 %v9494_v35, %v10200_v58  ;;  %v9564_v42 = vsub.f32 %v4536_v60, %v9549_v36  ;;  %v10695_v60 = vld [vmem:[#allocation53_spill] sm:$0xff] }
 0x604   : > { %v9501_v3 = vsub.f32 %v4522_v63, %v9496_v40  ;;  %v9504_v1 = vsub.f32 %v4521_v54, %v9498_v53  ;;  %4604 = vmatprep.subr.mxu0 %v9496_v40  ;;  %4741 = vmatprep.subr.mxu1 %v4740_v41  ;;  %v4776_v61 = vand.u32 4294901760, %v4775_v32  ;;  %v10684_v54 = vld [vmem:[#allocation35_spill] sm:$0xff]  ;;  %v10685_v63 = vld [vmem:[#allocation100_spill] sm:$0xff] }
 0x605   : > { %4606 = vmatpush1.msra.mxu0 %v9498_v53  ;;  %4747 = vmatpush1.msra.mxu1 %v4746_v23  ;;  %v4782_v25 = vand.u32 4294901760, %v4781_v19  ;;  %v10686_v41 = vld [vmem:[#allocation40_spill] sm:$0xff]  ;;  %v10687_v23 = vld [vmem:[#allocation95_spill] sm:$0xff]  ;;  %v4695_v19 = vsub.f32 %v9545_v24, %v10199_v16 }
 0x606   : > { %4608 = vmatprep.subr.mxu0 %v9458_v51  ;;  %4753 = vmatprep.subr.mxu1 %v4752_v14  ;;  %v4762_v0 = vand.u32 4294901760, %v9501_v3  ;;  %v4768_v37 = vand.u32 4294901760, %v9504_v1  ;;  %v9568_v14 = vand.u32 4294901760, %v4537_v17  ;;  %v10691_v32 = vld [vmem:[#allocation7_spill] sm:$0xff]  ;;  %v10704_v16 = vld [vmem:[#allocation36_spill] sm:$0xff] }
 0x607   : > { %4610 = vmatpush1.msra.mxu0 %v9466_v49  ;;  %4759 = vmatpush1.msra.mxu1 %v4758_v62  ;;  %v10688_v62 = vld [vmem:[#allocation39_spill] sm:$0xff] }
 0x608   : > { %4612 = vmatprep.subr.mxu0 %v10666_v38  ;;  %v4763_v30 = vsub.f32 %v9501_v3, %v4762_v0  ;;  %v4769_v43 = vsub.f32 %v9504_v1, %v4768_v37 }
 0x609   : > { %4614 = vmatpush1.msra.mxu0 %v10667_v18 }
 0x60a   : > { %4616 = vmatprep.subr.mxu0 %v10668_v52  ;;  %v4764_v57 = vand.u32 4294901760, %v4763_v30  ;;  %v4770_v7 = vand.u32 4294901760, %v4769_v43  ;;  %v10689_v30 = vld [vmem:[#allocation30_spill] sm:$0xff]  ;;  %v10690_v43 = vld [vmem:[#allocation23_spill] sm:$0xff] }
 0x60b   : > { %4618 = vmatpush1.msra.mxu0 %v10669_v46 }
 0x60c   : > { %4620 = vmatprep.subr.mxu0 %v10670_v2  ;;  %4765 = vmatprep.subr.mxu1 %v4764_v57  ;;  %v10693_v57 = vld [vmem:[#allocation6_spill] sm:$0xff] }
 0x60d   : > { %4622 = vmatpush1.msra.mxu0 %v10671_v45  ;;  %4771 = vmatpush1.msra.mxu1 %v4770_v7  ;;  %v10201_v7 = vand.u32 4294901760, %v9564_v42 }
 0x60e   : > { %4624 = vmatprep.subr.mxu0 %v10672_v15  ;;  %4777 = vmatprep.subr.mxu1 %v4776_v61  ;;  %v4538_v61 = vld [vmem:[%s9842_s14 + $0x18] sm:$0xff] }
 0x60f   : > { %4626 = vmatpush1.msra.mxu0 %v10673_v26  ;;  %4783 = vmatpush1.msra.mxu1 %v4782_v25  ;;  %v10694_v25 = vld [vmem:[#allocation52_spill] sm:$0xff] }
 0x610   : > { %4628 = vmatprep.subr.mxu0 %v10674_v56  ;;  %4789 = vmatprep.subr.mxu1 %v10675_v34  ;;  %v9586_v34 = vsub.f32 %v4537_v17, %v9568_v14  ;;  %v4706_v17 = vsub.f32 %v9564_v42, %v10201_v7 }
 0x611   : > { %4630 = vmatpush1.msra.mxu0 %v10676_v21  ;;  %4795 = vmatpush1.msra.mxu1 %v10677_v31  ;;  %v10696_v31 = vld [vmem:[#allocation22_spill] sm:$0xff] }
 0x612   : > { %4632 = vmatprep.subr.mxu0 %v10678_v5  ;;  %4801 = vmatprep.subr.mxu1 %v10679_v27  ;;  %v10697_v27 = vld [vmem:[#allocation49_spill] sm:$0xff]  ;;  %v4707_v7 = vand.u32 4294901760, %v4706_v17  ;;  %v10711_v17 = vld [vmem:[#allocation71_spill] sm:$0xff] }
 0x613   : > { %4634 = vmatpush1.msra.mxu0 %v10680_v22  ;;  %4807 = vmatpush1.msra.mxu1 %v10681_v28  ;;  %v10698_v28 = vld [vmem:[#allocation10_spill] sm:$0xff] }
 0x614   : > { %4636 = vmatprep.subr.mxu0 %v10682_v55  ;;  %4813 = vmatprep.subr.mxu1 %v10683_v44  ;;  %v10699_v44 = vld [vmem:[#allocation62_spill] sm:$0xff] }
 0x615   : > { %4638 = vmatpush1.msra.mxu0 %v10684_v54  ;;  %4819 = vmatpush1.msra.mxu1 %v10685_v63  ;;  %v4696_v63 = vand.u32 4294901760, %v4695_v19  ;;  %v10706_v19 = vld [vmem:[#allocation16_spill] sm:$0xff] }
 0x616   : > { %4640 = vmatprep.subr.mxu0 %v10686_v41  ;;  %4825 = vmatprep.subr.mxu1 %v10687_v23  ;;  %v9592_v23 = vand.u32 4294901760, %v4538_v61 }
 0x617   : > { %4642 = vmatpush1.msra.mxu0 %v10688_v62  ;;  %4831 = vmatpush1.msra.mxu1 %v10689_v30  ;;  %v10700_v30 = vld [vmem:[#allocation8_spill] sm:$0xff] }
 0x618   : > { %4644 = vmatprep.subr.mxu0 %v10690_v43  ;;  %4837 = vmatprep.subr.mxu1 %v10691_v32  ;;  %v10701_v32 = vld [vmem:[#allocation63_spill] sm:$0xff]  ;;  %v9606_v58 = vsub.f32 %v4538_v61, %v9592_v23 }
 0x619   : > { %4646 = vmatpush1.msra.mxu0 %v10692_v29  ;;  %4843 = vmatpush1.msra.mxu1 %v10693_v57  ;;  %v10702_v57 = vld [vmem:[#allocation33_spill] sm:$0xff] }
 0x61a   : > { %4648 = vmatprep.subr.mxu0 %v10694_v25  ;;  %4849 = vmatprep.subr.mxu1 %v10695_v60  ;;  %v10703_v60 = vld [vmem:[#allocation65_spill] sm:$0xff]  ;;  %v4727_v61 = vand.u32 4294901760, %v9606_v58 }
 0x61b   : > { %4650 = vmatpush1.msra.mxu0 %v10696_v31  ;;  %4855 = vmatpush1.msra.mxu1 %v10697_v27  ;;  %v4716_v27 = vand.u32 4294901760, %v9586_v34 }
 0x61c   : > { %4652 = vmatprep.subr.mxu0 %v10698_v28  ;;  %4861 = vmatprep.subr.mxu1 %v10699_v44  ;;  %v10705_v44 = vld [vmem:[#allocation66_spill] sm:$0xff] }
 0x61d   : > { %4654 = vmatpush1.msra.mxu0 %v10700_v30  ;;  %4867 = vmatpush1.msra.mxu1 %v10701_v32  ;;  %v10707_v32 = vld [vmem:[#allocation67_spill] sm:$0xff]  ;;  %v4717_v8 = vsub.f32 %v9586_v34, %v4716_v27 }
 0x61e   : > { %4656 = vmatprep.subr.mxu0 %v10702_v57  ;;  %4873 = vmatprep.subr.mxu1 %v10703_v60  ;;  %v10708_v60 = vld [vmem:[#allocation69_spill] sm:$0xff] }
 0x61f   : > { %4658 = vmatpush1.msra.mxu0 %v10704_v16  ;;  %4879 = vmatpush1.msra.mxu1 %v10705_v44  ;;  %v10710_v44 = vld [vmem:[#allocation70_spill] sm:$0xff] }
 0x620   : > { %4697 = vmatmul.mubr.f32.vlgmr.msra.gmra.mxu0 %v4696_v63  ;;  %4885 = vmatprep.subr.mxu1 %v10706_v19  ;;  %v10709_v63 = vmov 0.0   ;;  %v10712_v19 = vld [vmem:[#allocation72_spill] sm:$0xff] }
 0x621   : > { %4991 = vmatprep.subr.mxu0 %v9456_v13  ;;  %4891 = vmatpush1.msra.mxu1 %v10707_v32  ;;  %v4718_v32 = vand.u32 4294901760, %v4717_v8  ;;  %v10715_v8 = vld [vmem:[#allocation110_spill] sm:$0xff]  ;;  %v10741_v13 = vand.u32 4294901760, %v9545_v24 }
 0x622   : > { %4994 = vmatpush1.msra.mxu0 %v9464_v48  ;;  %4897 = vmatprep.subr.mxu1 %v10708_v60  ;;  %v10713_v60 = vld [vmem:[#allocation73_spill] sm:$0xff]  ;;  %v10744_v48 = vld [vmem:[#allocation96_spill] sm:$0xff] }
 0x623   : > { %4997 = vmatprep.subr.mxu0 %v9448_v9  ;;  %4702 = vmatprep.mubr.f32.mxu0 %v10709_v63  ;;  %v10739_v9 = vand.u32 4294901760, %v9486_v6 }
 0x624   : > { %4903 = vmatpush1.msra.mxu1 %v10710_v44  ;;  %5000 = vmatpush1.msra.mxu0 %v9445_v59  ;;  %v4728_v44 = vsub.f32 %v9606_v58, %v4727_v61  ;;  %v10740_v59 = vand.u32 4294901760, %v9494_v35 }
 0x625   : > { %4708 = vmatmul.mubr.f32.gmra.mxu0 %v4707_v7  ;;  %4909 = vmatprep.subr.mxu1 %v10711_v17  ;;  %v10714_v7 = vld [vmem:[#allocation74_spill] sm:$0xff]  ;;  %v10716_v17 = vld [vmem:[#allocation76_spill] sm:$0xff] }
 0x626   : > { %5003 = vmatprep.subr.mxu0 %v9501_v3  ;;  %4915 = vmatpush1.msra.mxu1 %v10712_v19  ;;  %v4729_v19 = vand.u32 4294901760, %v4728_v44  ;;  %v10720_v44 = vld [vmem:[#allocation98_spill] sm:$0xff]  ;;  %v10757_v3 = vld [vmem:[#allocation59_spill] sm:$0xff] }
 0x627   : > { %5006 = vmatpush1.msra.mxu0 %v9504_v1  ;;  %4921 = vmatprep.subr.mxu1 %v10713_v60  ;;  %v10717_v60 = vld [vmem:[#allocation111_spill] sm:$0xff]  ;;  %v10758_v1 = vld [vmem:[#allocation60_spill] sm:$0xff] }
 0x628   : > { %5009 = vmatprep.subr.mxu0 %v9486_v6  ;;  %4713 = vmatprep.mubr.f32.mxu0 %v10709_v63  ;;  %v10751_v6 = vld [vmem:[#allocation5_spill] sm:$0xff] }
 0x629   : > { %4927 = vmatpush1.msra.mxu1 %v10714_v7  ;;  %5012 = vmatpush1.msra.mxu0 %v9494_v35  ;;  %v10719_v7 = vld [vmem:[#allocation93_spill] sm:$0xff]  ;;  %v10752_v35 = vld [vmem:[#allocation4_spill] sm:$0xff] }
 0x62a   : > { %4719 = vmatmul.mubr.f32.gmra.mxu0 %v4718_v32  ;;  %4962 = vmatmul.mubr.f32.vlgmr.msra.gmra.mxu1 %v9534_v33  ;;  %v10718_v32 = vld [vmem:[#allocation88_spill] sm:$0xff] }
 0x62b   : > { %5015 = vmatprep.subr.mxu0 %v10715_v8  ;;  %5151 = vmatprep.subr.mxu1 %v9450_v20  ;;  %v10721_v8 = vld [vmem:[#allocation92_spill] sm:$0xff] }
 0x62c   : > { %5018 = vmatpush1.msra.mxu0 %v10716_v17  ;;  %5153 = vmatpush1.msra.mxu1 %v9452_v50  ;;  %v10722_v17 = vld [vmem:[#allocation91_spill] sm:$0xff] }
 0x62d   : > { %5021 = vmatprep.subr.mxu0 %v10717_v60  ;;  %5155 = vmatprep.subr.mxu1 %v9434_v11  ;;  %v10724_v60 = vld [vmem:[#allocation50_spill] sm:$0xff] }
 0x62e   : > { %4724 = vmatprep.mubr.f32.mxu0 %v10709_v63  ;;  %4967 = vmatprep.mubr.f32.mxu1 %v10709_v63 }
 0x62f   : > { %5024 = vmatpush1.msra.mxu0 %v10718_v32  ;;  %5157 = vmatpush1.msra.mxu1 %v9436_v47  ;;  %v10725_v32 = vld [vmem:[#allocation41_spill] sm:$0xff] }
 0x630   : > { %4730 = vmatmul.mubr.f32.gmra.mxu0 %v4729_v19  ;;  %4969 = vmatmul.mubr.f32.gmra.mxu1 %v9549_v36  ;;  %v10723_v19 = vld [vmem:[#allocation31_spill] sm:$0xff] }
 0x631   : > { %5027 = vmatprep.subr.mxu0 %v10719_v7  ;;  %5159 = vmatprep.subr.mxu1 %v9496_v40  ;;  %v10726_v7 = vld [vmem:[#allocation44_spill] sm:$0xff] }
 0x632   : > { %5030 = vmatpush1.msra.mxu0 %v10720_v44  ;;  %5161 = vmatpush1.msra.mxu1 %v9498_v53  ;;  %v10727_v44 = vld [vmem:[#allocation34_spill] sm:$0xff] }
 0x633   : > { %5033 = vmatprep.subr.mxu0 %v10721_v8  ;;  %5163 = vmatprep.subr.mxu1 %v9458_v51  ;;  %v10728_v8 = vld [vmem:[#allocation27_spill] sm:$0xff] }
 0x634   : > { %4974 = vmatprep.mubr.f32.mxu1 %v10709_v63  ;;  %5036 = vmatpush1.msra.mxu0 %v10722_v17  ;;  %v10729_v17 = vld [vmem:[#allocation29_spill] sm:$0xff] }
 0x635   : > { %5165 = vmatpush1.msra.mxu1 %v9466_v49  ;;  %5039 = vmatprep.subr.mxu0 %v10723_v19  ;;  %v10730_v19 = vld [vmem:[#allocation47_spill] sm:$0xff] }
 0x636   : > { %4976 = vmatmul.mubr.f32.gmra.mxu1 %v9568_v14  ;;  %5167 = vmatprep.subr.mxu1 %v10666_v38 }
 0x637   : > { %5042 = vmatpush1.msra.mxu0 %v10724_v60  ;;  %5169 = vmatpush1.msra.mxu1 %v10667_v18  ;;  %v10731_v60 = vld [vmem:[#allocation38_spill] sm:$0xff] }
 0x638   : > { %5045 = vmatprep.subr.mxu0 %v10725_v32  ;;  %5171 = vmatprep.subr.mxu1 %v10668_v52  ;;  %v10732_v32 = vld [vmem:[#allocation13_spill] sm:$0xff] }
 0x639   : > { %4981 = vmatprep.mubr.f32.mxu1 %v10709_v63  ;;  %5048 = vmatpush1.msra.mxu0 %v10726_v7  ;;  %v10733_v7 = vld [vmem:[#allocation14_spill] sm:$0xff] }
 0x63a   : > { %5173 = vmatpush1.msra.mxu1 %v10669_v46  ;;  %5051 = vmatprep.subr.mxu0 %v10727_v44  ;;  %v10734_v44 = vld [vmem:[#allocation12_spill] sm:$0xff] }
 0x63b   : > { %4983 = vmatmul.mubr.f32.gmra.mxu1 %v9592_v23  ;;  %5175 = vmatprep.subr.mxu1 %v10670_v2 }
 0x63c   : > { %5054 = vmatpush1.msra.mxu0 %v10728_v8  ;;  %5177 = vmatpush1.msra.mxu1 %v10671_v45  ;;  %v10735_v8 = vld [vmem:[#allocation42_spill] sm:$0xff] }
 0x63d   : > { %5057 = vmatprep.subr.mxu0 %v10729_v17  ;;  %5179 = vmatprep.subr.mxu1 %v10672_v15  ;;  %v10736_v17 = vld [vmem:[#allocation20_spill] sm:$0xff] }
 0x63e   : > { %5060 = vmatpush1.msra.mxu0 %v10730_v19  ;;  %5181 = vmatpush1.msra.mxu1 %v10673_v26  ;;  %v10737_v19 = vld [vmem:[#allocation58_spill] sm:$0xff] }
 0x63f   : > { %5063 = vmatprep.subr.mxu0 %v10731_v60  ;;  %5183 = vmatprep.subr.mxu1 %v10674_v56  ;;  %v10738_v60 = vld [vmem:[#allocation61_spill] sm:$0xff] }
 0x640   : > { %5066 = vmatpush1.msra.mxu0 %v10732_v32  ;;  %5185 = vmatpush1.msra.mxu1 %v10676_v21 }
 0x641   : > { %5069 = vmatprep.subr.mxu0 %v10733_v7  ;;  %5187 = vmatprep.subr.mxu1 %v10678_v5 }
 0x642   : > { %5072 = vmatpush1.msra.mxu0 %v10734_v44  ;;  %5189 = vmatpush1.msra.mxu1 %v10680_v22 }
 0x643   : > { %5075 = vmatprep.subr.mxu0 %v10735_v8  ;;  %5191 = vmatprep.subr.mxu1 %v10682_v55 }
 0x644   : > { %5078 = vmatpush1.msra.mxu0 %v10736_v17  ;;  %5193 = vmatpush1.msra.mxu1 %v10684_v54 }
 0x645   : > { %5081 = vmatprep.subr.mxu0 %v10737_v19  ;;  %5195 = vmatprep.subr.mxu1 %v10686_v41 }
 0x646   : > { %5084 = vmatpush1.msra.mxu0 %v10738_v60  ;;  %5117 = vmatprep.mubr.f32.mxu0 %v10709_v63 }
 0x647   : > { %5197 = vmatpush1.msra.mxu1 %v10688_v62  ;;  %5120 = vmatmul.mubr.f32.vlgmr.msra.gmra.mxu0 %v9545_v24 }
 0x648   : > { %5199 = vmatprep.subr.mxu1 %v10690_v43  ;;  %5286 = vmatprep.subr.mxu0 %v4738_v12  ;;  %v10745_v12 = vld [vmem:[#allocation80_spill] sm:$0xff] }
 0x649   : > { %5201 = vmatpush1.msra.mxu1 %v10692_v29  ;;  %5290 = vmatpush1.msra.mxu0 %v4744_v39  ;;  %v10747_v39 = vld [vmem:[#allocation86_spill] sm:$0xff] }
 0x64a   : > { %5203 = vmatprep.subr.mxu1 %v10694_v25  ;;  %5294 = vmatprep.subr.mxu0 %v4750_v4  ;;  %v10742_v4 = vld [vmem:[#allocation107_spill] sm:$0xff] }
 0x64b   : > { %5125 = vmatprep.mubr.f32.mxu0 %v10709_v63  ;;  %5205 = vmatpush1.msra.mxu1 %v10696_v31 }
 0x64c   : > { %5298 = vmatpush1.msra.mxu0 %v4756_v10  ;;  %5207 = vmatprep.subr.mxu1 %v10698_v28  ;;  %v10743_v10 = vld [vmem:[#allocation28_spill] sm:$0xff] }
 0x64d   : > { %5128 = vmatmul.mubr.f32.gmra.mxu0 %v9564_v42  ;;  %5302 = vmatprep.subr.mxu0 %v4762_v0  ;;  %v10759_v0 = vld [vmem:[#allocation17_spill] sm:$0xff] }
 0x64e   : > { %5209 = vmatpush1.msra.mxu1 %v10700_v30  ;;  %5306 = vmatpush1.msra.mxu0 %v4768_v37  ;;  %v10761_v37 = vld [vmem:[#allocation19_spill] sm:$0xff] }
 0x64f   : > { %5211 = vmatprep.subr.mxu1 %v10702_v57  ;;  %5310 = vmatprep.subr.mxu0 %v10739_v9 }
 0x650   : > { %5133 = vmatprep.mubr.f32.mxu0 %v10709_v63  ;;  %5213 = vmatpush1.msra.mxu1 %v10704_v16 }
 0x651   : > { %5246 = vmatprep.mubr.f32.mxu1 %v10709_v63  ;;  %5314 = vmatpush1.msra.mxu0 %v10740_v59 }
 0x652   : > { %5136 = vmatmul.mubr.f32.gmra.mxu0 %v9586_v34  ;;  %5250 = vmatmul.mubr.f32.vlgmr.msra.gmra.mxu1 %v10741_v13 }
 0x653   : > { %5318 = vmatprep.subr.mxu0 %v10742_v4  ;;  %5473 = vmatprep.subr.mxu1 %v9450_v20  ;;  %v10746_v20 = vand.u32 4294901760, %v9564_v42 }
 0x654   : > { %5322 = vmatpush1.msra.mxu0 %v10743_v10  ;;  %5475 = vmatpush1.msra.mxu1 %v9452_v50  ;;  %v10748_v50 = vld [vmem:[#allocation21_spill] sm:$0xff] }
 0x655   : > { %5326 = vmatprep.subr.mxu0 %v10744_v48  ;;  %5477 = vmatprep.subr.mxu1 %v9434_v11  ;;  %v10749_v11 = vld [vmem:[#allocation99_spill] sm:$0xff] }
 0x656   : > { %5141 = vmatprep.mubr.f32.mxu0 %v10709_v63  ;;  %5255 = vmatprep.mubr.f32.mxu1 %v10709_v63 }
 0x657   : > { %5330 = vmatpush1.msra.mxu0 %v10745_v12  ;;  %5479 = vmatpush1.msra.mxu1 %v9436_v47  ;;  %v10750_v47 = vld [vmem:[#allocation112_spill] sm:$0xff] }
 0x658   : > { %5144 = vmatmul.mubr.f32.gmra.mxu0 %v9606_v58  ;;  %5259 = vmatmul.mubr.f32.gmra.mxu1 %v10746_v20  ;;  %v10760_v58 = vld [vmem:[#allocation18_spill] sm:$0xff]  ;;  %v4588_v20 = vpop.permute.xlu0 %4587 }
 0x659   : > { %5334 = vmatprep.subr.mxu0 %v10747_v39  ;;  %5481 = vmatprep.subr.mxu1 %v9496_v40  ;;  %v10753_v40 = vld [vmem:[#allocation48_spill] sm:$0xff] }
 0x65a   : > { %5338 = vmatpush1.msra.mxu0 %v10748_v50  ;;  %5483 = vmatpush1.msra.mxu1 %v9498_v53  ;;  %v10756_v53 = vld [vmem:[#allocation54_spill] sm:$0xff] }
 0x65b   : > { %5342 = vmatprep.subr.mxu0 %v10749_v11  ;;  %5485 = vmatprep.subr.mxu1 %v9458_v51  ;;  %v10754_v51 = vld [vmem:[#allocation24_spill] sm:$0xff] }
 0x65c   : > { %5264 = vmatprep.mubr.f32.mxu1 %v10709_v63  ;;  %5346 = vmatpush1.msra.mxu0 %v10750_v47 }
 0x65d   : > { %5487 = vmatpush1.msra.mxu1 %v9466_v49  ;;  %5350 = vmatprep.subr.mxu0 %v10751_v6  ;;  %v10755_v49 = vld [vmem:[#allocation51_spill] sm:$0xff] }
 0x65e   : > { %5268 = vmatmul.mubr.f32.gmra.mxu1 %v4716_v27  ;;  %5489 = vmatprep.subr.mxu1 %v10666_v38  ;;  %v10762_v38 = vld [vmem:[#allocation55_spill] sm:$0xff] }
 0x65f   : > { %5354 = vmatpush1.msra.mxu0 %v10752_v35  ;;  %5491 = vmatpush1.msra.mxu1 %v10667_v18  ;;  %v10763_v18 = vld [vmem:[#allocation56_spill] sm:$0xff] }
 0x660   : > { %5358 = vmatprep.subr.mxu0 %v10753_v40  ;;  %5493 = vmatprep.subr.mxu1 %v10668_v52  ;;  %v10764_v52 = vld [vmem:[#allocation57_spill] sm:$0xff] }
 0x661   : > { %5273 = vmatprep.mubr.f32.mxu1 %v10709_v63  ;;  %5362 = vmatpush1.msra.mxu0 %v10754_v51 }
 0x662   : > { %5495 = vmatpush1.msra.mxu1 %v10669_v46  ;;  %5366 = vmatprep.subr.mxu0 %v10755_v49  ;;  %v10765_v46 = vld [vmem:[#allocation64_spill] sm:$0xff] }
 0x663   : > { %5277 = vmatmul.mubr.f32.gmra.mxu1 %v4727_v61  ;;  %5497 = vmatprep.subr.mxu1 %v10670_v2  ;;  %v10766_v2 = vld [vmem:[#allocation68_spill] sm:$0xff]  ;;  %v4578_v61 = vpop.permute.xlu1 %4577 }
 0x664   : > { %5370 = vmatpush1.msra.mxu0 %v10756_v53  ;;  %5499 = vmatpush1.msra.mxu1 %v10671_v45 }
 0x665   : > { %5374 = vmatprep.subr.mxu0 %v10757_v3  ;;  %5501 = vmatprep.subr.mxu1 %v10672_v15 }
 0x666   : > { %5378 = vmatpush1.msra.mxu0 %v10758_v1  ;;  %5503 = vmatpush1.msra.mxu1 %v10673_v26 }
 0x667   : > { %5382 = vmatprep.subr.mxu0 %v10759_v0  ;;  %5505 = vmatprep.subr.mxu1 %v10674_v56  ;;  %v4583_v9 = vpop.permute.xlu1 %4582 }
 0x668   : > { %5386 = vmatpush1.msra.mxu0 %v10760_v58  ;;  %5507 = vmatpush1.msra.mxu1 %v10676_v21 }
 0x669   : > { %5390 = vmatprep.subr.mxu0 %v10761_v37  ;;  %5509 = vmatprep.subr.mxu1 %v10678_v5 }
 0x66a   : > { %5394 = vmatpush1.msra.mxu0 %v10762_v38  ;;  %5511 = vmatpush1.msra.mxu1 %v10680_v22 }
 0x66b   : > { %5398 = vmatprep.subr.mxu0 %v10763_v18  ;;  %5513 = vmatprep.subr.mxu1 %v10682_v55  ;;  %v4593_v1 = vpop.permute.xlu1 %4592 }
 0x66c   : > { %5402 = vmatpush1.msra.mxu0 %v10764_v52  ;;  %5515 = vmatpush1.msra.mxu1 %v10684_v54 }
 0x66d   : > { %5406 = vmatprep.subr.mxu0 %v10765_v46  ;;  %5517 = vmatprep.subr.mxu1 %v10686_v41 }
 0x66e   : > { %5410 = vmatpush1.msra.mxu0 %v10766_v2  ;;  %5443 = vmatprep.mubr.f32.mxu0 %v10709_v63 }
 0x66f   : > { %5519 = vmatpush1.msra.mxu1 %v10688_v62  ;;  %5445 = vmatmul.mubr.f32.vlgmr.msra.gmra.mxu0 %v9534_v33 }
 0x670   : > { %5521 = vmatprep.subr.mxu1 %v10690_v43  ;;  %5450 = vmatprep.mubr.f32.mxu0 %v10709_v63 }
 0x671   : > { %5523 = vmatpush1.msra.mxu1 %v10692_v29  ;;  %5568 = vmatprep.mubr.f32.mxu1 %v10709_v63 }
 0x672   : > { %5525 = vmatprep.subr.mxu1 %v10694_v25 }
 0x673   : > { %5527 = vmatpush1.msra.mxu1 %v10696_v31  ;;  %5452 = vmatmul.mubr.f32.gmra.mxu0 %v9549_v36 }
 0x674   : > { %5529 = vmatprep.subr.mxu1 %v10698_v28  ;;  %5457 = vmatprep.mubr.f32.mxu0 %v10709_v63 }
 0x675   : > { %5531 = vmatpush1.msra.mxu1 %v10700_v30 }
 0x676   : > { %5533 = vmatprep.subr.mxu1 %v10702_v57 }
 0x677   : > { %5535 = vmatpush1.msra.mxu1 %v10704_v16  ;;  %5459 = vmatmul.mubr.f32.gmra.mxu0 %v9568_v14 }
 0x678   : > { %5570 = vmatmul.mubr.f32.vlgmr.msra.gmra.mxu1 %v9534_v33  ;;  %5464 = vmatprep.mubr.f32.mxu0 %v10709_v63 }
 0x679   : > { %5575 = vmatprep.mubr.f32.mxu1 %v10709_v63 }
 0x67b   : > { %5466 = vmatmul.mubr.f32.gmra.mxu0 %v9592_v23 }
 0x67c   : > { %5577 = vmatmul.mubr.f32.gmra.mxu1 %v9549_v36 }
 0x67d   : > { %5582 = vmatprep.mubr.f32.mxu1 %v10709_v63 }
 0x680   : > { %5584 = vmatmul.mubr.f32.gmra.mxu1 %v9568_v14 }
 0x681   : > { %5589 = vmatprep.mubr.f32.mxu1 %v10709_v63 }
 0x684   : > { %5591 = vmatmul.mubr.f32.gmra.mxu1 %v9592_v23 }
 0x6e0   : > { %v4698_v45 = vpop.f32.mrf.mxu0 }
 0x6e1   : > { %v4699_v44 = vadd.f32 %v4698_v45, %v4578_v61 }
 0x6e2   : > { %v4700_v15 = vpop.f32.mrf.mxu0 }
 0x6e3   : > { %v4701_v17 = vadd.f32 %v4700_v15, %v4578_v61 }
 0x6e5   : > { %v4709_v26 = vpop.f32.mrf.mxu0 }
 0x6e6   : > { %v4710_v13 = vadd.f32 %v4709_v26, %v4583_v9 }
 0x6e7   : > { %v4711_v56 = vpop.f32.mrf.mxu0 }
 0x6e8   : > { %v4712_v12 = vadd.f32 %v4711_v56, %v4583_v9 }
 0x6ea   : > { %v4963_v33 = vpop.f32.mrf.mxu1  ;;  %v4720_v21 = vpop.f32.mrf.mxu0 }
 0x6eb   : > { %v4964_v19 = vadd.f32 %v4963_v33, %v4699_v44  ;;  %v4721_v6 = vadd.f32 %v4720_v21, %v4588_v20 }
 0x6ec   : > { %v4965_v24 = vpop.f32.mrf.mxu1  ;;  %v4722_v22 = vpop.f32.mrf.mxu0 }
 0x6ed   : > { %v4966_v4 = vadd.f32 %v4965_v24, %v4701_v17  ;;  %v4723_v0 = vadd.f32 %v4722_v22, %v4588_v20 }
 0x6f0   : > { %v4970_v5 = vpop.f32.mrf.mxu1  ;;  %v4731_v16 = vpop.f32.mrf.mxu0 }
 0x6f1   : > { %v4971_v39 = vadd.f32 %v4970_v5, %v4710_v13  ;;  %v4732_v18 = vadd.f32 %v4731_v16, %v4593_v1 }
 0x6f2   : > { %v4972_v55 = vpop.f32.mrf.mxu1  ;;  %v4733_v54 = vpop.f32.mrf.mxu0 }
 0x6f3   : > { %v4973_v35 = vadd.f32 %v4972_v55, %v4712_v12  ;;  %v4734_v15 = vadd.f32 %v4733_v54, %v4593_v1 }
 0x6f6   : > { %v4977_v36 = vpop.f32.mrf.mxu1 }
 0x6f7   : > { %v4978_v58 = vadd.f32 %v4977_v36, %v4721_v6 }
 0x6f8   : > { %v4979_v42 = vpop.f32.mrf.mxu1 }
 0x6f9   : > { %v4980_v26 = vadd.f32 %v4979_v42, %v4723_v0 }
 0x6fb   : > { %v4984_v14 = vpop.f32.mrf.mxu1 }
 0x6fc   : > { %v4985_v55 = vadd.f32 %v4984_v14, %v4732_v18 }
 0x6fd   : > { %v9804_v43 = vpop.f32.mrf.mxu1 }
 0x707   : > { %v5121_v41 = vpop.f32.mrf.mxu0 }
 0x708   : > { %v5122_v10 = vadd.f32 %v5121_v41, %v4964_v19 }
 0x709   : > { %v5123_v62 = vpop.f32.mrf.mxu0 }
 0x70a   : > { %v5124_v50 = vadd.f32 %v5123_v62, %v4966_v4 }
 0x70d   : > { %v5129_v29 = vpop.f32.mrf.mxu0 }
 0x70e   : > { %v5130_v51 = vadd.f32 %v5129_v29, %v4971_v39 }
 0x70f   : > { %v5131_v34 = vpop.f32.mrf.mxu0 }
 0x710   : > { %v5132_v37 = vadd.f32 %v5131_v34, %v4973_v35  ;;  %v4987_v34 = vadd.f32 %v9804_v43, %v4734_v15 }
 0x712   : > { %v5251_v25 = vpop.f32.mrf.mxu1  ;;  %v5137_v28 = vpop.f32.mrf.mxu0 }
 0x713   : > { %v5252_v11 = vadd.f32 %v5251_v25, %v5122_v10  ;;  %v5138_v33 = vadd.f32 %v5137_v28, %v4978_v58 }
 0x714   : > { %v5253_v31 = vpop.f32.mrf.mxu1  ;;  %v5139_v30 = vpop.f32.mrf.mxu0 }
 0x715   : > { %v5254_v49 = vadd.f32 %v5253_v31, %v5124_v50  ;;  %v5140_v16 = vadd.f32 %v5139_v30, %v4980_v26 }
 0x718   : > { %v5260_v23 = vpop.f32.mrf.mxu1  ;;  %v5145_v27 = vpop.f32.mrf.mxu0 }
 0x719   : > { %v5261_v52 = vadd.f32 %v5260_v23, %v5130_v51  ;;  %v5146_v31 = vadd.f32 %v5145_v27, %v4985_v55 }
 0x71a   : > { %v5262_v57 = vpop.f32.mrf.mxu1  ;;  %v9806_v32 = vpop.f32.mrf.mxu0 }
 0x71b   : > { %v5263_v56 = vadd.f32 %v5262_v57, %v5132_v37 }
 0x71e   : > { %v5269_v63 = vpop.f32.mrf.mxu1 }
 0x71f   : > { %v5270_v36 = vadd.f32 %v5269_v63, %v5138_v33  ;;  %v5148_v63 = vadd.f32 %v9806_v32, %v4987_v34 }
 0x720   : > { %v5271_v7 = vpop.f32.mrf.mxu1 }
 0x721   : > { %v5272_v28 = vadd.f32 %v5271_v7, %v5140_v16 }
 0x723   : > { %v5278_v59 = vpop.f32.mrf.mxu1 }
 0x724   : > { %v5279_v44 = vadd.f32 %v5278_v59, %v5146_v31 }
 0x725   : > { %v5280_v40 = vpop.f32.mrf.mxu1 }
 0x726   : > { %v5281_v7 = vadd.f32 %v5280_v40, %v5148_v63 }
 0x72f   : > { %v5446_v8 = vpop.f32.mrf.mxu0 }
 0x730   : > { %v5447_v53 = vadd.f32 %v5446_v8, %v5252_v11 }
 0x731   : > { %v5448_v60 = vpop.f32.mrf.mxu0 }
 0x732   : > { %v5449_v46 = vadd.f32 %v5448_v60, %v5254_v49 }
 0x733   : > { %v5453_v48 = vpop.f32.mrf.mxu0 }
 0x734   : > { %v5454_v21 = vadd.f32 %v5453_v48, %v5261_v52 }
 0x735   : > { %v5455_v47 = vpop.f32.mrf.mxu0 }
 0x736   : > { %v5456_v41 = vadd.f32 %v5455_v47, %v5263_v56 }
 0x737   : > { %v5460_v3 = vpop.f32.mrf.mxu0 }
 0x738   : > { %v5571_v38 = vpop.f32.mrf.mxu1  ;;  %v5461_v23 = vadd.f32 %v5460_v3, %v5270_v36 }
 0x739   : > { %v5572_v2 = vadd.f32 %v5571_v38, %v5447_v53  ;;  %v5462_v45 = vpop.f32.mrf.mxu0 }
 0x73a   : > { %v5573_v24 = vpop.f32.mrf.mxu1  ;;  %v5463_v8 = vadd.f32 %v5462_v45, %v5272_v28 }
 0x73b   : > { %vm5597_vm2 = vcmp.ge.f32.partialorder %v5572_v2, 0.0  ;;  %v5605_v5 = vmul.f32 0.01, %v5572_v2  ;;  %v5574_v22 = vadd.f32 %v5573_v24, %v5449_v46  ;;  %v5467_v29 = vpop.f32.mrf.mxu0 }
 0x73c   : > { %v5578_v54 = vpop.f32.mrf.mxu1  ;;  %v5468_v9 = vadd.f32 %v5467_v29, %v5279_v44 }
 0x73d   : > { %v5613_v42 = vsel %vm5597_vm2, %v5572_v2, %v5605_v5  ;;  %vm5598_vm3 = vcmp.ge.f32.partialorder %v5574_v22, 0.0  ;;  %v5606_v62 = vmul.f32 0.01, %v5574_v22  ;;  %v5579_v25 = vadd.f32 %v5578_v54, %v5454_v21  ;;  %v5469_v60 = vpop.f32.mrf.mxu0 }
 0x73e   : > { %5621 = vst [vmem:[%s9813_s25] sm:$0xff] %v5613_v42  ;;  %v5580_v57 = vpop.f32.mrf.mxu1  ;;  %v5470_v59 = vadd.f32 %v5469_v60, %v5281_v7 }
 0x73f   : > { %v5614_v61 = vsel %vm5598_vm3, %v5574_v22, %v5606_v62  ;;  %vm5599_vm4 = vcmp.ge.f32.partialorder %v5579_v25, 0.0  ;;  %v5607_v14 = vmul.f32 0.01, %v5579_v25  ;;  %v5581_v30 = vadd.f32 %v5580_v57, %v5456_v41 }
 0x740   : > { %5622 = vst [vmem:[%s9813_s25 + $0x8] sm:$0xff] %v5614_v61  ;;  %v5585_v17 = vpop.f32.mrf.mxu1 }
 0x741   : > { %v5615_v19 = vsel %vm5599_vm4, %v5579_v25, %v5607_v14  ;;  %vm5600_vm5 = vcmp.ge.f32.partialorder %v5581_v30, 0.0  ;;  %v5608_v43 = vmul.f32 0.01, %v5581_v30  ;;  %v5586_v27 = vadd.f32 %v5585_v17, %v5461_v23 }
 0x742   : > { %5623 = vst [vmem:[%s9813_s25 + $0x10] sm:$0xff] %v5615_v19  ;;  %v5587_v13 = vpop.f32.mrf.mxu1 }
 0x743   : > { %v5616_v4 = vsel %vm5600_vm5, %v5581_v30, %v5608_v43  ;;  %vm5601_vm6 = vcmp.ge.f32.partialorder %v5586_v27, 0.0  ;;  %v5609_v10 = vmul.f32 0.01, %v5586_v27  ;;  %v5588_v32 = vadd.f32 %v5587_v13, %v5463_v8 }
 0x744   : > { %5624 = vst [vmem:[%s9813_s25 + $0x18] sm:$0xff] %v5616_v4  ;;  %v5592_v48 = vpop.f32.mrf.mxu1 }
 0x745   : > { %v5617_v12 = vsel %vm5601_vm6, %v5586_v27, %v5609_v10  ;;  %vm5602_vm7 = vcmp.ge.f32.partialorder %v5588_v32, 0.0  ;;  %v5610_v20 = vmul.f32 0.01, %v5588_v32  ;;  %v5593_v39 = vadd.f32 %v5592_v48, %v5468_v9 }
 0x746   : > { %5625 = vst [vmem:[%s9813_s25 + $0x20] sm:$0xff] %v5617_v12  ;;  %v5594_v50 = vpop.f32.mrf.mxu1 }
 0x747   : > { %v5618_v11 = vsel %vm5602_vm7, %v5588_v32, %v5610_v20  ;;  %vm5603_vm8 = vcmp.ge.f32.partialorder %v5593_v39, 0.0  ;;  %v5611_v47 = vmul.f32 0.01, %v5593_v39  ;;  %v5595_v6 = vadd.f32 %v5594_v50, %v5470_v59 }
 0x748   : > { %5626 = vst [vmem:[%s9813_s25 + $0x28] sm:$0xff] %v5618_v11 }
 0x749   : > { %v5619_v35 = vsel %vm5603_vm8, %v5593_v39, %v5611_v47  ;;  %vm5604_vm9 = vcmp.ge.f32.partialorder %v5595_v6, 0.0  ;;  %v5612_v40 = vmul.f32 0.01, %v5595_v6 }
 0x74a   : > { %5627 = vst [vmem:[%s9813_s25 + $0x30] sm:$0xff] %v5619_v35 }
 0x74b   : > { %v5620_v51 = vsel %vm5604_vm9, %v5595_v6, %v5612_v40 }
 0x74c   : > { %5628 = vst [vmem:[%s9813_s25 + $0x38] sm:$0xff] %v5620_v51 }
 0x74d PF: > { %s26_s21 = sadd.s32 1, %s5850_s21  }
 0x74e   : > { %p23_p4 = scmp.ge.s32.totalorder %s26_s21, 4  }
 0x750   :  { %25 = sbr.rel (!%p23_p4) target bundleno = 2 (0x2), region = 135 }

</bundles_post_ra>
